<compile_context>
chip_gen: v7x
topology: tpu7x:2x2x1
jax: 0.10.0
libtpu: 0.0.40
codegen_flags: <defaults>
</compile_context>

<pallas_src>
import jax
import jax.numpy as jnp
from jax.experimental import pallas as pl
from jax.experimental.pallas import tpu as pltpu

IMAGE_SHAPE = (1, 28, 28)
LATENT_DIM = 100
LATENT_PAD = 128                 # 100 -> 128 (lane-aligned K for layer 1)
OUT_DIM = 28 * 28                # 784
OUT_PAD = 896                    # 784 -> 896 = 7*128 (lane-dense output tile)
LAYER_DIMS = [LATENT_DIM, 128, 256, 512, 1024, OUT_DIM]
PADDED_DIMS = [LATENT_PAD, 128, 256, 512, 1024, OUT_PAD]
BN_EPS = 0.8  # faithful to BatchNorm1d(out_feat, 0.8): 2nd positional arg is eps


def _leaky_relu(x, slope=0.2):
    return jnp.where(x >= 0.0, x, slope * x)


def _batchnorm(x, gamma, beta, eps=BN_EPS):
    # Training-mode BatchNorm1d (batch mean, biased batch variance), fused:
    #   var = E[x^2] - E[x]^2 (clamped >= 0) ; y = x * scale + shift
    mu = jnp.mean(x, axis=0, keepdims=True)
    ex2 = jnp.mean(x * x, axis=0, keepdims=True)
    var = jnp.maximum(ex2 - mu * mu, 0.0)
    scale = gamma * jax.lax.rsqrt(var + eps)
    shift = beta - mu * scale
    return x * scale + shift


def _mm(x_f32, w_bf16):
    # bf16 x bf16 -> f32 accumulation on the MXU.
    return jnp.dot(
        x_f32.astype(jnp.bfloat16), w_bf16, preferred_element_type=jnp.float32
    )


def generator_kernel(
    z_ref,
    w1_ref, b1_ref,
    w2_ref, g2_ref, be2_ref,
    w3_ref, g3_ref, be3_ref,
    w4_hbm_ref, g4_ref, be4_ref,
    w5_hbm_ref, b5_ref,
    o_ref,
    zp_ref, w4_vmem, w5_vmem, dma_sem,
):
    # Kick off HBM->VMEM prefetch of the two largest weights so their DMA
    # overlaps layers 1-3 compute (no grid => no auto-pipelining to hide it).
    cp4 = pltpu.make_async_copy(w4_hbm_ref, w4_vmem, dma_sem.at[0])
    cp5 = pltpu.make_async_copy(w5_hbm_ref, w5_vmem, dma_sem.at[1])
    cp4.start()
    cp5.start()

    # In-kernel latent pad 100 -> 128: zero tail, masked store of the real
    # lanes. Padded lanes multiply zero-padded rows of w1, so the math is exact.
    zp_ref[...] = jnp.zeros_like(zp_ref)
    zp_ref[:, :LATENT_DIM] = z_ref[...].astype(jnp.bfloat16)

    # Layer 1: Linear(100->128) + bias + LeakyReLU (no BN).
    h = _leaky_relu(
        jnp.dot(zp_ref[...], w1_ref[...], preferred_element_type=jnp.float32)
        + b1_ref[...]
    )

    # Layers 2-4: Linear -> BatchNorm(train) -> LeakyReLU.
    # Linear biases omitted: the BN batch-mean subtraction cancels any
    # per-feature bias exactly (mathematical no-op, saves VALU work + DMA).
    h = _leaky_relu(_batchnorm(_mm(h, w2_ref[...]), g2_ref[...], be2_ref[...]))
    h = _leaky_relu(_batchnorm(_mm(h, w3_ref[...]), g3_ref[...], be3_ref[...]))

    cp4.wait()
    h = _leaky_relu(_batchnorm(_mm(h, w4_vmem[...]), g4_ref[...], be4_ref[...]))

    cp5.wait()
    o_ref[...] = jnp.tanh(_mm(h, w5_vmem[...]) + b5_ref[...])


def init_params(key):
    """PyTorch-like uniform +-1/sqrt(fan_in) init, zero-padded to lane-aligned
    shapes and stored as bf16 (weights) / f32 (biases, BN params).
    Biases of BN'd layers (2-4) are generated for parameter-set fidelity but
    are provably inert under training-mode BN and are not used."""
    params = []
    keys = jax.random.split(key, 2 * (len(LAYER_DIMS) - 1))
    for li in range(len(LAYER_DIMS) - 1):
        fan_in, fan_out = LAYER_DIMS[li], LAYER_DIMS[li + 1]
        fan_in_p, fan_out_p = PADDED_DIMS[li], PADDED_DIMS[li + 1]
        bound = 1.0 / float(fan_in) ** 0.5
        w = jax.random.uniform(
            keys[2 * li], (fan_in, fan_out), jnp.float32, -bound, bound
        )
        b = jax.random.uniform(
            keys[2 * li + 1], (1, fan_out), jnp.float32, -bound, bound
        )
        # Zero-pad: padded K-rows multiply zero inputs, padded N-cols are
        # sliced off in the wrapper, so the result is exact.
        w = jnp.pad(w, ((0, fan_in_p - fan_in), (0, fan_out_p - fan_out)))
        b = jnp.pad(b, ((0, 0), (0, fan_out_p - fan_out)))
        params.append((w.astype(jnp.bfloat16), b))
    # BatchNorm params for layers 2, 3, 4 (gamma=1, beta=0).
    bn_params = []
    for li in (1, 2, 3):
        c = PADDED_DIMS[li + 1]
        bn_params.append(
            (jnp.ones((1, c), jnp.float32), jnp.zeros((1, c), jnp.float32))
        )
    return params, bn_params


@jax.jit
def generator_forward(z, params, bn_params):
    (w1, b1), (w2, _b2), (w3, _b3), (w4, _b4), (w5, b5) = params
    (g2, be2), (g3, be3), (g4, be4) = bn_params

    batch = z.shape[0]

    vmem = pl.BlockSpec(memory_space=pltpu.MemorySpace.VMEM)
    hbm = pl.BlockSpec(memory_space=pl.ANY)   # manual DMA inside the kernel
    in_specs = [
        vmem,                 # z (unpadded; padded in-kernel)
        vmem, vmem,           # w1, b1
        vmem, vmem, vmem,     # w2, gamma2, beta2
        vmem, vmem, vmem,     # w3, gamma3, beta3
        hbm, vmem, vmem,      # w4 (prefetched), gamma4, beta4
        hbm, vmem,            # w5 (prefetched), b5
    ]

    flops = 2 * batch * sum(
        PADDED_DIMS[i] * PADDED_DIMS[i + 1] for i in range(len(PADDED_DIMS) - 1)
    )
    bytes_accessed = (
        z.size * 4
        + (w1.size + w2.size + w3.size + w4.size + w5.size) * 2
        + (b1.size + b5.size) * 4
        + sum(g.size * 4 + be.size * 4 for (g, be) in bn_params)
        + batch * OUT_PAD * 4
    )
    cost = pl.CostEstimate(
        flops=flops,
        transcendentals=batch * OUT_PAD,
        bytes_accessed=bytes_accessed,
    )

    img_flat = pl.pallas_call(
        generator_kernel,
        out_shape=jax.ShapeDtypeStruct((batch, OUT_PAD), jnp.float32),
        in_specs=in_specs,
        out_specs=pl.BlockSpec(memory_space=pltpu.MemorySpace.VMEM),
        scratch_shapes=[
            pltpu.VMEM((batch, LATENT_PAD), jnp.bfloat16),                 # padded z
            pltpu.VMEM((PADDED_DIMS[3], PADDED_DIMS[4]), jnp.bfloat16),    # w4 dest
            pltpu.VMEM((PADDED_DIMS[4], PADDED_DIMS[5]), jnp.bfloat16),    # w5 dest
            pltpu.SemaphoreType.DMA((2,)),
        ],
        compiler_params=pltpu.CompilerParams(vmem_limit_bytes=32 << 20),
        cost_estimate=cost,
    )(
        z,
        w1, b1,
        w2, g2, be2,
        w3, g3, be3,
        w4, g4, be4,
        w5, b5,
    )
    # Slice off the lane padding (896 -> 784) and reshape to NCHW like PyTorch.
    return img_flat[:, :OUT_DIM].reshape(batch, *IMAGE_SHAPE)


def reference_forward(z, params, bn_params):
    """Pure-JAX reference using the same bf16 weights (unpadded slices).
    BN-layer Linear biases are omitted here as well: training-mode BatchNorm
    subtracts the batch mean, which cancels a per-feature bias exactly, so the
    computed function is identical to the PyTorch module's forward."""
    (w1, b1), (w2, _b2), (w3, _b3), (w4, _b4), (w5, b5) = params
    (g2, be2), (g3, be3), (g4, be4) = bn_params

    def mm(x, w):
        return jnp.dot(
            x.astype(jnp.bfloat16), w, preferred_element_type=jnp.float32
        )

    h = _leaky_relu(mm(z, w1[:LATENT_DIM, :]) + b1)
    h = _leaky_relu(_batchnorm(mm(h, w2), g2, be2))
    h = _leaky_relu(_batchnorm(mm(h, w3), g3, be3))
    h = _leaky_relu(_batchnorm(mm(h, w4), g4, be4))
    img = jnp.tanh(mm(h, w5[:, :OUT_DIM]) + b5[:, :OUT_DIM])
    return img.reshape(z.shape[0], *IMAGE_SHAPE)


if __name__ == "__main__":
    key = jax.random.PRNGKey(0)
    k_param, k_z = jax.random.split(key)

    params, bn_params = init_params(k_param)

    # Small demo batch (multiple of 8). For real deployments batch >=128-256
    # latents per call — below that the call is weight-DMA / launch bound.
    batch = 16
    z = jax.random.normal(k_z, (batch, LATENT_DIM), jnp.float32)

    img = generator_forward(z, params, bn_params)
    img = jax.block_until_ready(img)

    assert img.shape == (batch, 1, 28, 28), img.shape

    ref = reference_forward(z, params, bn_params)
    max_err = float(jnp.max(jnp.abs(img - ref)))
    assert jnp.allclose(img, ref, atol=1e-3, rtol=1e-3), max_err

    print("KERNEL_OK")
</pallas_src>

<mosaic_0001>
module attributes {stable_mosaic.version = 11 : i64} {
  func.func @generator_kernel(%arg0: memref<16x100xf32, #tpu.memory_space<vmem>>, %arg1: memref<128x128xbf16, #tpu.memory_space<vmem>>, %arg2: memref<1x128xf32, #tpu.memory_space<vmem>>, %arg3: memref<128x256xbf16, #tpu.memory_space<vmem>>, %arg4: memref<1x256xf32, #tpu.memory_space<vmem>>, %arg5: memref<1x256xf32, #tpu.memory_space<vmem>>, %arg6: memref<256x512xbf16, #tpu.memory_space<vmem>>, %arg7: memref<1x512xf32, #tpu.memory_space<vmem>>, %arg8: memref<1x512xf32, #tpu.memory_space<vmem>>, %arg9: memref<512x1024xbf16, #tpu.memory_space<any>>, %arg10: memref<1x1024xf32, #tpu.memory_space<vmem>>, %arg11: memref<1x1024xf32, #tpu.memory_space<vmem>>, %arg12: memref<1024x896xbf16, #tpu.memory_space<any>>, %arg13: memref<1x896xf32, #tpu.memory_space<vmem>>, %arg14: memref<16x896xf32, #tpu.memory_space<vmem>>, %arg15: memref<16x128xbf16, #tpu.memory_space<vmem>>, %arg16: memref<512x1024xbf16, #tpu.memory_space<vmem>>, %arg17: memref<1024x896xbf16, #tpu.memory_space<vmem>>, %arg18: memref<2x!tpu.dma_semaphore, #tpu.memory_space<semaphore_mem>>) attributes {dimension_semantics = [], scalar_prefetch = 0 : i64, scratch_operands = 4 : i64, tpu.core_type = #tpu.core_type<tc>} {
    %c0_i32 = arith.constant 0 : i32
    %0 = tpu.memref_slice %arg18[%c0_i32] : memref<2x!tpu.dma_semaphore, #tpu.memory_space<semaphore_mem>> -> memref<1x!tpu.dma_semaphore, #tpu.memory_space<semaphore_mem>>
    %1 = tpu.memref_squeeze %0 : memref<1x!tpu.dma_semaphore, #tpu.memory_space<semaphore_mem>> -> memref<!tpu.dma_semaphore, #tpu.memory_space<semaphore_mem>>
    tpu.enqueue_dma source(%arg9 : memref<512x1024xbf16, #tpu.memory_space<any>>) target(%arg16 : memref<512x1024xbf16, #tpu.memory_space<vmem>>) target_semaphore(%1 : memref<!tpu.dma_semaphore, #tpu.memory_space<semaphore_mem>>)
    %c1_i32 = arith.constant 1 : i32
    %2 = tpu.memref_slice %arg18[%c1_i32] : memref<2x!tpu.dma_semaphore, #tpu.memory_space<semaphore_mem>> -> memref<1x!tpu.dma_semaphore, #tpu.memory_space<semaphore_mem>>
    %3 = tpu.memref_squeeze %2 : memref<1x!tpu.dma_semaphore, #tpu.memory_space<semaphore_mem>> -> memref<!tpu.dma_semaphore, #tpu.memory_space<semaphore_mem>>
    tpu.enqueue_dma source(%arg12 : memref<1024x896xbf16, #tpu.memory_space<any>>) target(%arg17 : memref<1024x896xbf16, #tpu.memory_space<vmem>>) target_semaphore(%3 : memref<!tpu.dma_semaphore, #tpu.memory_space<semaphore_mem>>)
    %cst = arith.constant 0.000000e+00 : bf16
    %4 = vector.broadcast %cst : bf16 to vector<16x128xbf16>
    %c0 = arith.constant 0 : index
    %c0_0 = arith.constant 0 : index
    %5 = vector.load %arg15[%c0, %c0_0] : memref<16x128xbf16, #tpu.memory_space<vmem>>, vector<16x128xbf16>
    tpu.vector_store %arg15[%c0, %c0_0], %4 {strides = array<i32>} : memref<16x128xbf16, #tpu.memory_space<vmem>>, vector<16x128xbf16>,
    %c0_1 = arith.constant 0 : index
    %c0_2 = arith.constant 0 : index
    %6 = vector.load %arg0[%c0_1, %c0_2] : memref<16x100xf32, #tpu.memory_space<vmem>>, vector<16x100xf32>
    %7 = arith.truncf %6 : vector<16x100xf32> to vector<16x100xbf16>
    %c0_3 = arith.constant 0 : index
    %c0_4 = arith.constant 0 : index
    %8 = vector.load %arg15[%c0_3, %c0_4] : memref<16x128xbf16, #tpu.memory_space<vmem>>, vector<16x100xbf16>
    tpu.vector_store %arg15[%c0_3, %c0_4], %7 {strides = array<i32>} : memref<16x128xbf16, #tpu.memory_space<vmem>>, vector<16x100xbf16>,
    %c0_5 = arith.constant 0 : index
    %c0_6 = arith.constant 0 : index
    %9 = vector.load %arg15[%c0_5, %c0_6] : memref<16x128xbf16, #tpu.memory_space<vmem>>, vector<16x128xbf16>
    %c0_7 = arith.constant 0 : index
    %c0_8 = arith.constant 0 : index
    %10 = vector.load %arg1[%c0_7, %c0_8] : memref<128x128xbf16, #tpu.memory_space<vmem>>, vector<128x128xbf16>
    %cst_9 = arith.constant dense<0.000000e+00> : vector<16x128xf32>
    %11 = tpu.matmul %9, %10, %cst_9 {dimension_numbers = #tpu.dot_dimension_numbers<[1], [0], [0], [1], [0, 0, 1, 1], [], []>} : vector<16x128xbf16>, vector<128x128xbf16>, vector<16x128xf32> -> vector<16x128xf32>
    %c0_10 = arith.constant 0 : index
    %c0_11 = arith.constant 0 : index
    %12 = vector.load %arg2[%c0_10, %c0_11] : memref<1x128xf32, #tpu.memory_space<vmem>>, vector<1x128xf32>
    %13 = vector.broadcast %12 : vector<1x128xf32> to vector<16x128xf32>
    %14 = arith.addf %11, %13 : vector<16x128xf32>
    %cst_12 = arith.constant 0.000000e+00 : f32
    %15 = vector.broadcast %cst_12 : f32 to vector<16x128xf32>
    %16 = arith.cmpf oge, %14, %15 : vector<16x128xf32>
    %cst_13 = arith.constant 2.000000e-01 : f32
    %17 = vector.broadcast %cst_13 : f32 to vector<16x128xf32>
    %18 = arith.mulf %17, %14 : vector<16x128xf32>
    %19 = arith.select %16, %14, %18 : vector<16x128xi1>, vector<16x128xf32>
    %c0_14 = arith.constant 0 : index
    %c0_15 = arith.constant 0 : index
    %20 = vector.load %arg3[%c0_14, %c0_15] : memref<128x256xbf16, #tpu.memory_space<vmem>>, vector<128x256xbf16>
    %21 = arith.truncf %19 : vector<16x128xf32> to vector<16x128xbf16>
    %cst_16 = arith.constant dense<0.000000e+00> : vector<16x256xf32>
    %22 = tpu.matmul %21, %20, %cst_16 {dimension_numbers = #tpu.dot_dimension_numbers<[1], [0], [0], [1], [0, 0, 1, 1], [], []>} : vector<16x128xbf16>, vector<128x256xbf16>, vector<16x256xf32> -> vector<16x256xf32>
    %c0_17 = arith.constant 0 : index
    %c0_18 = arith.constant 0 : index
    %23 = vector.load %arg4[%c0_17, %c0_18] : memref<1x256xf32, #tpu.memory_space<vmem>>, vector<1x256xf32>
    %c0_19 = arith.constant 0 : index
    %c0_20 = arith.constant 0 : index
    %24 = vector.load %arg5[%c0_19, %c0_20] : memref<1x256xf32, #tpu.memory_space<vmem>>, vector<1x256xf32>
    %cst_21 = arith.constant dense<0.000000e+00> : vector<256xf32>
    %25 = vector.multi_reduction <add>, %22, %cst_21 [0] : vector<16x256xf32> to vector<256xf32>
    %26 = vector.shape_cast %25 : vector<256xf32> to vector<1x256xf32>
    %cst_22 = arith.constant 1.600000e+01 : f32
    %27 = vector.broadcast %cst_22 : f32 to vector<1x256xf32>
    %28 = arith.divf %26, %27 : vector<1x256xf32>
    %29 = arith.mulf %22, %22 : vector<16x256xf32>
    %cst_23 = arith.constant dense<0.000000e+00> : vector<256xf32>
    %30 = vector.multi_reduction <add>, %29, %cst_23 [0] : vector<16x256xf32> to vector<256xf32>
    %31 = vector.shape_cast %30 : vector<256xf32> to vector<1x256xf32>
    %cst_24 = arith.constant 1.600000e+01 : f32
    %32 = vector.broadcast %cst_24 : f32 to vector<1x256xf32>
    %33 = arith.divf %31, %32 : vector<1x256xf32>
    %34 = arith.mulf %28, %28 : vector<1x256xf32>
    %35 = arith.subf %33, %34 : vector<1x256xf32>
    %cst_25 = arith.constant 0.000000e+00 : f32
    %36 = vector.broadcast %cst_25 : f32 to vector<1x256xf32>
    %37 = arith.maximumf %35, %36 : vector<1x256xf32>
    %cst_26 = arith.constant 8.000000e-01 : f32
    %38 = vector.broadcast %cst_26 : f32 to vector<1x256xf32>
    %39 = arith.addf %37, %38 : vector<1x256xf32>
    %40 = math.rsqrt %39 : vector<1x256xf32>
    %41 = arith.mulf %23, %40 : vector<1x256xf32>
    %42 = arith.mulf %28, %41 : vector<1x256xf32>
    %43 = arith.subf %24, %42 : vector<1x256xf32>
    %44 = vector.broadcast %41 : vector<1x256xf32> to vector<16x256xf32>
    %45 = arith.mulf %22, %44 : vector<16x256xf32>
    %46 = vector.broadcast %43 : vector<1x256xf32> to vector<16x256xf32>
    %47 = arith.addf %45, %46 : vector<16x256xf32>
    %cst_27 = arith.constant 0.000000e+00 : f32
    %48 = vector.broadcast %cst_27 : f32 to vector<16x256xf32>
    %49 = arith.cmpf oge, %47, %48 : vector<16x256xf32>
    %cst_28 = arith.constant 2.000000e-01 : f32
    %50 = vector.broadcast %cst_28 : f32 to vector<16x256xf32>
    %51 = arith.mulf %50, %47 : vector<16x256xf32>
    %52 = arith.select %49, %47, %51 : vector<16x256xi1>, vector<16x256xf32>
    %c0_29 = arith.constant 0 : index
    %c0_30 = arith.constant 0 : index
    %53 = vector.load %arg6[%c0_29, %c0_30] : memref<256x512xbf16, #tpu.memory_space<vmem>>, vector<256x512xbf16>
    %54 = arith.truncf %52 : vector<16x256xf32> to vector<16x256xbf16>
    %cst_31 = arith.constant dense<0.000000e+00> : vector<16x512xf32>
    %55 = tpu.matmul %54, %53, %cst_31 {dimension_numbers = #tpu.dot_dimension_numbers<[1], [0], [0], [1], [0, 0, 1, 1], [], []>} : vector<16x256xbf16>, vector<256x512xbf16>, vector<16x512xf32> -> vector<16x512xf32>
    %c0_32 = arith.constant 0 : index
    %c0_33 = arith.constant 0 : index
    %56 = vector.load %arg7[%c0_32, %c0_33] : memref<1x512xf32, #tpu.memory_space<vmem>>, vector<1x512xf32>
    %c0_34 = arith.constant 0 : index
    %c0_35 = arith.constant 0 : index
    %57 = vector.load %arg8[%c0_34, %c0_35] : memref<1x512xf32, #tpu.memory_space<vmem>>, vector<1x512xf32>
    %cst_36 = arith.constant dense<0.000000e+00> : vector<512xf32>
    %58 = vector.multi_reduction <add>, %55, %cst_36 [0] : vector<16x512xf32> to vector<512xf32>
    %59 = vector.shape_cast %58 : vector<512xf32> to vector<1x512xf32>
    %cst_37 = arith.constant 1.600000e+01 : f32
    %60 = vector.broadcast %cst_37 : f32 to vector<1x512xf32>
    %61 = arith.divf %59, %60 : vector<1x512xf32>
    %62 = arith.mulf %55, %55 : vector<16x512xf32>
    %cst_38 = arith.constant dense<0.000000e+00> : vector<512xf32>
    %63 = vector.multi_reduction <add>, %62, %cst_38 [0] : vector<16x512xf32> to vector<512xf32>
    %64 = vector.shape_cast %63 : vector<512xf32> to vector<1x512xf32>
    %cst_39 = arith.constant 1.600000e+01 : f32
    %65 = vector.broadcast %cst_39 : f32 to vector<1x512xf32>
    %66 = arith.divf %64, %65 : vector<1x512xf32>
    %67 = arith.mulf %61, %61 : vector<1x512xf32>
    %68 = arith.subf %66, %67 : vector<1x512xf32>
    %cst_40 = arith.constant 0.000000e+00 : f32
    %69 = vector.broadcast %cst_40 : f32 to vector<1x512xf32>
    %70 = arith.maximumf %68, %69 : vector<1x512xf32>
    %cst_41 = arith.constant 8.000000e-01 : f32
    %71 = vector.broadcast %cst_41 : f32 to vector<1x512xf32>
    %72 = arith.addf %70, %71 : vector<1x512xf32>
    %73 = math.rsqrt %72 : vector<1x512xf32>
    %74 = arith.mulf %56, %73 : vector<1x512xf32>
    %75 = arith.mulf %61, %74 : vector<1x512xf32>
    %76 = arith.subf %57, %75 : vector<1x512xf32>
    %77 = vector.broadcast %74 : vector<1x512xf32> to vector<16x512xf32>
    %78 = arith.mulf %55, %77 : vector<16x512xf32>
    %79 = vector.broadcast %76 : vector<1x512xf32> to vector<16x512xf32>
    %80 = arith.addf %78, %79 : vector<16x512xf32>
    %cst_42 = arith.constant 0.000000e+00 : f32
    %81 = vector.broadcast %cst_42 : f32 to vector<16x512xf32>
    %82 = arith.cmpf oge, %80, %81 : vector<16x512xf32>
    %cst_43 = arith.constant 2.000000e-01 : f32
    %83 = vector.broadcast %cst_43 : f32 to vector<16x512xf32>
    %84 = arith.mulf %83, %80 : vector<16x512xf32>
    %85 = arith.select %82, %80, %84 : vector<16x512xi1>, vector<16x512xf32>
    %c0_i32_44 = arith.constant 0 : i32
    %86 = tpu.memref_slice %arg18[%c0_i32_44] : memref<2x!tpu.dma_semaphore, #tpu.memory_space<semaphore_mem>> -> memref<1x!tpu.dma_semaphore, #tpu.memory_space<semaphore_mem>>
    %87 = tpu.memref_squeeze %86 : memref<1x!tpu.dma_semaphore, #tpu.memory_space<semaphore_mem>> -> memref<!tpu.dma_semaphore, #tpu.memory_space<semaphore_mem>>
    tpu.wait_dma2 semaphore(%87 : memref<!tpu.dma_semaphore, #tpu.memory_space<semaphore_mem>>) src(%arg9 : memref<512x1024xbf16, #tpu.memory_space<any>>) dst(%arg16 : memref<512x1024xbf16, #tpu.memory_space<vmem>>)
    %c0_45 = arith.constant 0 : index
    %c0_46 = arith.constant 0 : index
    %88 = vector.load %arg16[%c0_45, %c0_46] : memref<512x1024xbf16, #tpu.memory_space<vmem>>, vector<512x1024xbf16>
    %89 = arith.truncf %85 : vector<16x512xf32> to vector<16x512xbf16>
    %cst_47 = arith.constant dense<0.000000e+00> : vector<16x1024xf32>
    %90 = tpu.matmul %89, %88, %cst_47 {dimension_numbers = #tpu.dot_dimension_numbers<[1], [0], [0], [1], [0, 0, 1, 1], [], []>} : vector<16x512xbf16>, vector<512x1024xbf16>, vector<16x1024xf32> -> vector<16x1024xf32>
    %c0_48 = arith.constant 0 : index
    %c0_49 = arith.constant 0 : index
    %91 = vector.load %arg10[%c0_48, %c0_49] : memref<1x1024xf32, #tpu.memory_space<vmem>>, vector<1x1024xf32>
    %c0_50 = arith.constant 0 : index
    %c0_51 = arith.constant 0 : index
    %92 = vector.load %arg11[%c0_50, %c0_51] : memref<1x1024xf32, #tpu.memory_space<vmem>>, vector<1x1024xf32>
    %cst_52 = arith.constant dense<0.000000e+00> : vector<1024xf32>
    %93 = vector.multi_reduction <add>, %90, %cst_52 [0] : vector<16x1024xf32> to vector<1024xf32>
    %94 = vector.shape_cast %93 : vector<1024xf32> to vector<1x1024xf32>
    %cst_53 = arith.constant 1.600000e+01 : f32
    %95 = vector.broadcast %cst_53 : f32 to vector<1x1024xf32>
    %96 = arith.divf %94, %95 : vector<1x1024xf32>
    %97 = arith.mulf %90, %90 : vector<16x1024xf32>
    %cst_54 = arith.constant dense<0.000000e+00> : vector<1024xf32>
    %98 = vector.multi_reduction <add>, %97, %cst_54 [0] : vector<16x1024xf32> to vector<1024xf32>
    %99 = vector.shape_cast %98 : vector<1024xf32> to vector<1x1024xf32>
    %cst_55 = arith.constant 1.600000e+01 : f32
    %100 = vector.broadcast %cst_55 : f32 to vector<1x1024xf32>
    %101 = arith.divf %99, %100 : vector<1x1024xf32>
    %102 = arith.mulf %96, %96 : vector<1x1024xf32>
    %103 = arith.subf %101, %102 : vector<1x1024xf32>
    %cst_56 = arith.constant 0.000000e+00 : f32
    %104 = vector.broadcast %cst_56 : f32 to vector<1x1024xf32>
    %105 = arith.maximumf %103, %104 : vector<1x1024xf32>
    %cst_57 = arith.constant 8.000000e-01 : f32
    %106 = vector.broadcast %cst_57 : f32 to vector<1x1024xf32>
    %107 = arith.addf %105, %106 : vector<1x1024xf32>
    %108 = math.rsqrt %107 : vector<1x1024xf32>
    %109 = arith.mulf %91, %108 : vector<1x1024xf32>
    %110 = arith.mulf %96, %109 : vector<1x1024xf32>
    %111 = arith.subf %92, %110 : vector<1x1024xf32>
    %112 = vector.broadcast %109 : vector<1x1024xf32> to vector<16x1024xf32>
    %113 = arith.mulf %90, %112 : vector<16x1024xf32>
    %114 = vector.broadcast %111 : vector<1x1024xf32> to vector<16x1024xf32>
    %115 = arith.addf %113, %114 : vector<16x1024xf32>
    %cst_58 = arith.constant 0.000000e+00 : f32
    %116 = vector.broadcast %cst_58 : f32 to vector<16x1024xf32>
    %117 = arith.cmpf oge, %115, %116 : vector<16x1024xf32>
    %cst_59 = arith.constant 2.000000e-01 : f32
    %118 = vector.broadcast %cst_59 : f32 to vector<16x1024xf32>
    %119 = arith.mulf %118, %115 : vector<16x1024xf32>
    %120 = arith.select %117, %115, %119 : vector<16x1024xi1>, vector<16x1024xf32>
    %c1_i32_60 = arith.constant 1 : i32
    %121 = tpu.memref_slice %arg18[%c1_i32_60] : memref<2x!tpu.dma_semaphore, #tpu.memory_space<semaphore_mem>> -> memref<1x!tpu.dma_semaphore, #tpu.memory_space<semaphore_mem>>
    %122 = tpu.memref_squeeze %121 : memref<1x!tpu.dma_semaphore, #tpu.memory_space<semaphore_mem>> -> memref<!tpu.dma_semaphore, #tpu.memory_space<semaphore_mem>>
    tpu.wait_dma2 semaphore(%122 : memref<!tpu.dma_semaphore, #tpu.memory_space<semaphore_mem>>) src(%arg12 : memref<1024x896xbf16, #tpu.memory_space<any>>) dst(%arg17 : memref<1024x896xbf16, #tpu.memory_space<vmem>>)
    %c0_61 = arith.constant 0 : index
    %c0_62 = arith.constant 0 : index
    %123 = vector.load %arg17[%c0_61, %c0_62] : memref<1024x896xbf16, #tpu.memory_space<vmem>>, vector<1024x896xbf16>
    %124 = arith.truncf %120 : vector<16x1024xf32> to vector<16x1024xbf16>
    %cst_63 = arith.constant dense<0.000000e+00> : vector<16x896xf32>
    %125 = tpu.matmul %124, %123, %cst_63 {dimension_numbers = #tpu.dot_dimension_numbers<[1], [0], [0], [1], [0, 0, 1, 1], [], []>} : vector<16x1024xbf16>, vector<1024x896xbf16>, vector<16x896xf32> -> vector<16x896xf32>
    %c0_64 = arith.constant 0 : index
    %c0_65 = arith.constant 0 : index
    %126 = vector.load %arg13[%c0_64, %c0_65] : memref<1x896xf32, #tpu.memory_space<vmem>>, vector<1x896xf32>
    %127 = vector.broadcast %126 : vector<1x896xf32> to vector<16x896xf32>
    %128 = arith.addf %125, %127 : vector<16x896xf32>
    %129 = math.tanh %128 : vector<16x896xf32>
    %c0_66 = arith.constant 0 : index
    %c0_67 = arith.constant 0 : index
    %130 = vector.load %arg14[%c0_66, %c0_67] : memref<16x896xf32, #tpu.memory_space<vmem>>, vector<16x896xf32>
    tpu.vector_store %arg14[%c0_66, %c0_67], %129 {strides = array<i32>} : memref<16x896xf32, #tpu.memory_space<vmem>>, vector<16x896xf32>,
    return
  }
}

</mosaic_0001>

<bundles_post_ra>
// kernel: generator_forward.1
= control target key start
LH: loop header
LB: loop body
LE: loop exit
PB: predicated region body
PF: predicated region fallthrough
CT: control target
= control target key end

     0   :  { %19 = vsyncpa [#allocation7], 0  ;;  %s5242_s0 = inlined_call_operand.hbm [shape: f32[16,100], index: 0, kind: input, shape index: {}]   ;;  %s5243_s1 = inlined_call_operand.hbm [shape: bf16[128,128], index: 1, kind: input, shape index: {}]   ;;  %s5244_s2 = inlined_call_operand.hbm [shape: f32[1,128], index: 2, kind: input, shape index: {}]   ;;  %s5245_s3 = inlined_call_operand.hbm [shape: bf16[128,256], index: 3, kind: input, shape index: {}]   ;;  %s5246_s4 = inlined_call_operand.hbm [shape: f32[1,256], index: 4, kind: input, shape index: {}]   ;;  %s5247_s5 = inlined_call_operand.hbm [shape: f32[1,256], index: 5, kind: input, shape index: {}]   ;;  %s5248_s6 = inlined_call_operand.hbm [shape: bf16[256,512], index: 6, kind: input, shape index: {}]   ;;  %s5249_s7 = inlined_call_operand.hbm [shape: f32[1,512], index: 7, kind: input, shape index: {}]   ;;  %s5250_s8 = inlined_call_operand.hbm [shape: f32[1,512], index: 8, kind: input, shape index: {}]   ;;  %s5251_s9 = inlined_call_operand.hbm [shape: bf16[512,1024], index: 9, kind: input, shape index: {}]   ;;  %s5252_s10 = inlined_call_operand.hbm [shape: f32[1,1024], index: 10, kind: input, shape index: {}]   ;;  %s5253_s11 = inlined_call_operand.hbm [shape: f32[1,1024], index: 11, kind: input, shape index: {}]   ;;  %s5254_s12 = inlined_call_operand.hbm [shape: bf16[1024,896], index: 12, kind: input, shape index: {}]   ;;  %s5255_s13 = inlined_call_operand.hbm [shape: f32[1,896], index: 13, kind: input, shape index: {}]   ;;  %s5256_s14 = inlined_call_operand.vmem [shape: f32[16,896], index: 14, kind: output, shape index: {}]  }
   0x1   :  { %20 = vsyncpa [#allocation9], 0 }
   0x2   :  { %21 = vsyncpa [#allocation12], 0 }
   0x3   :  { %22 = vsyncpa [#allocation15], 0 }
   0x4   :  { %23 = vsyncpa [#allocation18], 0 }
   0x5   :  { %24 = vsyncpa [#allocation21], 0 }
   0x6   :  { %25 = vsyncpa [#allocation24], 0  ;;  %s4456_s29 = smov [#allocation8]   ;;  %s4174_s17 = scalar_lea.hbm %s5243_s1, 1024 }
   0x7   :  { %s43_s30 = sshll.u32 %s4456_s29, 4  ;;  %p4175_p0 = scmp.ne.s32.totalorder %s5243_s1, %s4174_s17  ;;  %s44_s30 = int_to_ptr.vmem [resolvable:$true] %s43_s30 }
   0x8   :  { %p4178_p1 = scmp.lt.u32.totalorder %s4174_s17, %s5243_s1 }
   0xa   :  { %p4180_p2 = pnand %p4178_p1, %p4175_p0 }
   0xc   :  { %4183 = shalt.err (!%p4180_p2)
}
   0xd   :  { %s4184_s22 = scalar_lea.vmem %s44_s30, 1024  ;;  %p4189_p4 = scmp.lt.s32.totalorder %s44_s30, %s44_s30 }
   0xe   :  { %p4185_p3 = scmp.ne.s32.totalorder %s44_s30, %s4184_s22  ;;  %p4190_p5 = scmp.lt.s32.totalorder %s4184_s22, %s4184_s22 }
  0x10   :  { %p4191_p6 = por %p4190_p5, %p4189_p4 }
  0x12   :  { %p4192_p7 = pnand %p4191_p6, %p4185_p3 }
  0x14   :  { %4195 = shalt.err (!%p4192_p7)
}
  0x15   :  { %s4457_s23 = smov 64   ;;  %s4458_s24 = smov 4  }
  0x16   :  { %49 = dma.hbm_to_vmem [thread:$0]  %s5243_s1, 1024, %s44_s30, [#allocation9], %s4457_s23, %s4457_s23, %s4458_s24  }
  0x17   :  { %s4459_s27 = smov [#allocation11]   ;;  %s4460_s29 = smov [#allocation14]  }
  0x18   :  { %s65_s28 = sshll.u32 %s4459_s27, 4  ;;  %s88_s15 = sshll.u32 %s4460_s29, 4  ;;  %s66_s28 = int_to_ptr.vmem [resolvable:$true] %s65_s28  ;;  %s89_s15 = int_to_ptr.vmem [resolvable:$true] %s88_s15 }
  0x19   :  { %s4196_s18 = scalar_lea.hbm %s5245_s3, 2048 }
  0x1a   :  { %p4197_p8 = scmp.ne.s32.totalorder %s5245_s3, %s4196_s18  ;;  %p4200_p9 = scmp.lt.u32.totalorder %s4196_s18, %s5245_s3 }
  0x1c   :  { %p4202_p10 = pnand %p4200_p9, %p4197_p8 }
  0x1e   :  { %4205 = shalt.err (!%p4202_p10)
}
  0x1f   :  { %s4206_s1 = scalar_lea.vmem %s66_s28, 2048  ;;  %p4211_p12 = scmp.lt.s32.totalorder %s66_s28, %s66_s28 }
  0x20   :  { %p4207_p11 = scmp.ne.s32.totalorder %s66_s28, %s4206_s1  ;;  %p4212_p13 = scmp.lt.s32.totalorder %s4206_s1, %s4206_s1 }
  0x22   :  { %p4213_p0 = por %p4212_p13, %p4211_p12 }
  0x24   :  { %p4214_p1 = pnand %p4213_p0, %p4207_p11 }
  0x26   :  { %4217 = shalt.err (!%p4214_p1)
}
  0x27   :  { %s4461_s30 = smov 128   ;;  %s4462_s25 = smov 8  }
  0x28   :  { %71 = dma.hbm_to_vmem [thread:$0]  %s5245_s3, 2048, %s66_s28, [#allocation12], %s4461_s30, %s4461_s30, %s4462_s25  }
  0x29   :  { %s4218_s17 = scalar_lea.hbm %s5247_s5, 32 }
  0x2a   :  { %p4219_p2 = scmp.ne.s32.totalorder %s5247_s5, %s4218_s17  ;;  %p4222_p3 = scmp.lt.u32.totalorder %s4218_s17, %s5247_s5 }
  0x2c   :  { %p4224_p4 = pnand %p4222_p3, %p4219_p2 }
  0x2e   :  { %4227 = shalt.err (!%p4224_p4)
}
  0x2f   :  { %s4228_s22 = scalar_lea.vmem %s89_s15, 32  ;;  %p4233_p6 = scmp.lt.s32.totalorder %s89_s15, %s89_s15 }
  0x30   :  { %p4229_p5 = scmp.ne.s32.totalorder %s89_s15, %s4228_s22  ;;  %p4234_p7 = scmp.lt.s32.totalorder %s4228_s22, %s4228_s22 }
  0x32   :  { %p4235_p8 = por %p4234_p7, %p4233_p6 }
  0x34   :  { %p4236_p9 = pnand %p4235_p8, %p4229_p5 }
  0x36   :  { %4239 = shalt.err (!%p4236_p9)
}
  0x37   :  { %91 = dma.hbm_to_vmem [thread:$0]  %s5247_s5, 32, %s89_s15, [#allocation15]  }
  0x38   :  { %s4463_s1 = smov [#allocation17]   ;;  %s4464_s27 = smov [#allocation20]  }
  0x39   :  { %s110_s26 = sshll.u32 %s4463_s1, 4  ;;  %s130_s29 = sshll.u32 %s4464_s27, 4  ;;  %s111_s26 = int_to_ptr.vmem [resolvable:$true] %s110_s26  ;;  %s131_s29 = int_to_ptr.vmem [resolvable:$true] %s130_s29 }
  0x3a   :  { %s4240_s18 = scalar_lea.hbm %s5249_s7, 64 }
  0x3b   :  { %p4241_p10 = scmp.ne.s32.totalorder %s5249_s7, %s4240_s18  ;;  %p4244_p11 = scmp.lt.u32.totalorder %s4240_s18, %s5249_s7 }
  0x3d   :  { %p4246_p12 = pnand %p4244_p11, %p4241_p10 }
  0x3f   :  { %4249 = shalt.err (!%p4246_p12)
}
  0x40   :  { %s4250_s5 = scalar_lea.vmem %s111_s26, 64  ;;  %p4255_p0 = scmp.lt.s32.totalorder %s111_s26, %s111_s26 }
  0x41   :  { %p4251_p13 = scmp.ne.s32.totalorder %s111_s26, %s4250_s5  ;;  %p4256_p1 = scmp.lt.s32.totalorder %s4250_s5, %s4250_s5 }
  0x43   :  { %p4257_p2 = por %p4256_p1, %p4255_p0 }
  0x45   :  { %p4258_p3 = pnand %p4257_p2, %p4251_p13 }
  0x47   :  { %4261 = shalt.err (!%p4258_p3)
}
  0x48   :  { %113 = dma.hbm_to_vmem [thread:$0]  %s5249_s7, 64, %s111_s26, [#allocation18]  }
  0x49   :  { %s4262_s27 = scalar_lea.hbm %s5252_s10, 128 }
  0x4a   :  { %p4263_p4 = scmp.ne.s32.totalorder %s5252_s10, %s4262_s27  ;;  %p4266_p5 = scmp.lt.u32.totalorder %s4262_s27, %s5252_s10 }
  0x4c   :  { %p4268_p6 = pnand %p4266_p5, %p4263_p4 }
  0x4e   :  { %4271 = shalt.err (!%p4268_p6)
}
  0x4f   :  { %s4272_s20 = scalar_lea.vmem %s131_s29, 128  ;;  %p4277_p8 = scmp.lt.s32.totalorder %s131_s29, %s131_s29 }
  0x50   :  { %p4273_p7 = scmp.ne.s32.totalorder %s131_s29, %s4272_s20  ;;  %p4278_p9 = scmp.lt.s32.totalorder %s4272_s20, %s4272_s20 }
  0x52   :  { %p4279_p10 = por %p4278_p9, %p4277_p8 }
  0x54   :  { %p4280_p11 = pnand %p4279_p10, %p4273_p7 }
  0x56   :  { %4283 = shalt.err (!%p4280_p11)
}
  0x57   :  { %133 = dma.hbm_to_vmem [thread:$0]  %s5252_s10, 128, %s131_s29, [#allocation21]  }
  0x58   :  { %s4465_s21 = smov [#allocation6]   ;;  %s4466_s5 = smov [#allocation10]  }
  0x59   :  { %s31_s22 = sshll.u32 %s4465_s21, 4  ;;  %s56_s15 = sshll.u32 %s4466_s5, 4  ;;  %s32_s22 = int_to_ptr.vmem [resolvable:$true] %s31_s22  ;;  %s57_s15 = int_to_ptr.vmem [resolvable:$true] %s56_s15 }
  0x5a   :  { %s4284_s1 = scalar_lea.hbm %s5242_s0, 256 }
  0x5b   :  { %p4285_p12 = scmp.ne.s32.totalorder %s5242_s0, %s4284_s1  ;;  %p4288_p13 = scmp.lt.u32.totalorder %s4284_s1, %s5242_s0 }
  0x5d   :  { %p4290_p0 = pnand %p4288_p13, %p4285_p12 }
  0x5f   :  { %4293 = shalt.err (!%p4290_p0)
}
  0x60   :  { %s4294_s10 = scalar_lea.vmem %s32_s22, 256  ;;  %p4299_p2 = scmp.lt.s32.totalorder %s32_s22, %s32_s22 }
  0x61   :  { %p4295_p1 = scmp.ne.s32.totalorder %s32_s22, %s4294_s10  ;;  %p4300_p3 = scmp.lt.s32.totalorder %s4294_s10, %s4294_s10 }
  0x63   :  { %p4301_p4 = por %p4300_p3, %p4299_p2 }
  0x65   :  { %p4302_p5 = pnand %p4301_p4, %p4295_p1 }
  0x67   :  { %4305 = shalt.err (!%p4302_p5)
}
  0x68   :  { %37 = dma.hbm_to_vmem [thread:$0]  %s5242_s0, 256, %s32_s22, [#allocation7], %s4461_s30, %s4461_s30, %s4462_s25  }
  0x69   :  { %s4306_s26 = scalar_lea.hbm %s5244_s2, 16 }
  0x6a   :  { %p4307_p6 = scmp.ne.s32.totalorder %s5244_s2, %s4306_s26  ;;  %p4310_p7 = scmp.lt.u32.totalorder %s4306_s26, %s5244_s2 }
  0x6c   :  { %p4312_p8 = pnand %p4310_p7, %p4307_p6 }
  0x6e   :  { %4315 = shalt.err (!%p4312_p8)
}
  0x6f   :  { %s4316_s1 = scalar_lea.vmem %s57_s15, 16  ;;  %s4320_s27 = scalar_lea.vmem %s57_s15, 32 }
  0x70   :  { %p4317_p9 = scmp.ne.s32.totalorder %s57_s15, %s4316_s1  ;;  %p4321_p10 = scmp.lt.s32.totalorder %s57_s15, %s57_s15 }
  0x71   :  { %p4322_p11 = scmp.lt.s32.totalorder %s4320_s27, %s4316_s1 }
  0x73   :  { %p4323_p12 = por %p4322_p11, %p4321_p10 }
  0x75   :  { %p4324_p13 = pnand %p4323_p12, %p4317_p9 }
  0x77   :  { %4327 = shalt.err (!%p4324_p13)
}
  0x78   :  { %59 = dma.hbm_to_vmem [thread:$0]  %s5244_s2, 16, %s57_s15, [#allocation9]  }
  0x79   :  { %s4467_s16 = smov [#allocation13]   ;;  %s4468_s18 = smov [#allocation16]  }
  0x7a   :  { %s78_s17 = sshll.u32 %s4467_s16, 4  ;;  %s97_s10 = sshll.u32 %s4468_s18, 4  ;;  %s79_s17 = int_to_ptr.vmem [resolvable:$true] %s78_s17  ;;  %s98_s10 = int_to_ptr.vmem [resolvable:$true] %s97_s10 }
  0x7b   :  { %s4328_s20 = scalar_lea.hbm %s5246_s4, 32 }
  0x7c   :  { %p4329_p0 = scmp.ne.s32.totalorder %s5246_s4, %s4328_s20  ;;  %p4332_p1 = scmp.lt.u32.totalorder %s4328_s20, %s5246_s4 }
  0x7e   :  { %p4334_p2 = pnand %p4332_p1, %p4329_p0 }
  0x80   :  { %4337 = shalt.err (!%p4334_p2)
}
  0x81   :  { %s4338_s2 = scalar_lea.vmem %s79_s17, 32  ;;  %p4343_p4 = scmp.lt.s32.totalorder %s79_s17, %s79_s17 }
  0x82   :  { %p4339_p3 = scmp.ne.s32.totalorder %s79_s17, %s4338_s2  ;;  %p4344_p5 = scmp.lt.s32.totalorder %s4338_s2, %s4338_s2 }
  0x84   :  { %p4345_p6 = por %p4344_p5, %p4343_p4 }
  0x86   :  { %p4346_p7 = pnand %p4345_p6, %p4339_p3 }
  0x88   :  { %4349 = shalt.err (!%p4346_p7)
}
  0x89   :  { %81 = dma.hbm_to_vmem [thread:$0]  %s5246_s4, 32, %s79_s17, [#allocation12]  }
  0x8a   :  { %s4350_s27 = scalar_lea.hbm %s5248_s6, 8192 }
  0x8b   :  { %p4351_p8 = scmp.ne.s32.totalorder %s5248_s6, %s4350_s27  ;;  %p4354_p9 = scmp.lt.u32.totalorder %s4350_s27, %s5248_s6 }
  0x8d   :  { %p4356_p10 = pnand %p4354_p9, %p4351_p8 }
  0x8f   :  { %4359 = shalt.err (!%p4356_p10)
}
  0x90   :  { %s4360_s29 = scalar_lea.vmem %s98_s10, 8192  ;;  %p4365_p12 = scmp.lt.s32.totalorder %s98_s10, %s98_s10 }
  0x91   :  { %p4361_p11 = scmp.ne.s32.totalorder %s98_s10, %s4360_s29  ;;  %p4366_p13 = scmp.lt.s32.totalorder %s4360_s29, %s4360_s29 }
  0x93   :  { %p4367_p0 = por %p4366_p13, %p4365_p12 }
  0x95   :  { %p4368_p1 = pnand %p4367_p0, %p4361_p11 }
  0x97   :  { %4371 = shalt.err (!%p4368_p1)
}
  0x98   :  { %s4469_s4 = smov 256   ;;  %s4470_s17 = smov 16  }
  0x99   :  { %103 = dma.hbm_to_vmem [thread:$0]  %s5248_s6, 8192, %s98_s10, [#allocation15], %s4469_s4, %s4469_s4, %s4470_s17  }
  0x9a   :  { %s4471_s7 = smov [#allocation19]   ;;  %s4472_s21 = smov [#allocation22]  }
  0x9b   :  { %s120_s26 = sshll.u32 %s4471_s7, 4  ;;  %s140_s5 = sshll.u32 %s4472_s21, 4  ;;  %s121_s26 = int_to_ptr.vmem [resolvable:$true] %s120_s26  ;;  %s141_s5 = int_to_ptr.vmem [resolvable:$true] %s140_s5 }
  0x9c   :  { %s4372_s3 = scalar_lea.hbm %s5250_s8, 64 }
  0x9d   :  { %p4373_p2 = scmp.ne.s32.totalorder %s5250_s8, %s4372_s3  ;;  %p4376_p3 = scmp.lt.u32.totalorder %s4372_s3, %s5250_s8 }
  0x9f   :  { %p4378_p4 = pnand %p4376_p3, %p4373_p2 }
  0xa1   :  { %4381 = shalt.err (!%p4378_p4)
}
  0xa2   :  { %s4382_s6 = scalar_lea.vmem %s121_s26, 64  ;;  %p4387_p6 = scmp.lt.s32.totalorder %s121_s26, %s121_s26 }
  0xa3   :  { %p4383_p5 = scmp.ne.s32.totalorder %s121_s26, %s4382_s6  ;;  %p4388_p7 = scmp.lt.s32.totalorder %s4382_s6, %s4382_s6 }
  0xa5   :  { %p4389_p8 = por %p4388_p7, %p4387_p6 }
  0xa7   :  { %p4390_p9 = pnand %p4389_p8, %p4383_p5 }
  0xa9   :  { %4393 = shalt.err (!%p4390_p9)
}
  0xaa   :  { %123 = dma.hbm_to_vmem [thread:$0]  %s5250_s8, 64, %s121_s26, [#allocation18]  }
  0xab   :  { %s4394_s29 = scalar_lea.hbm %s5253_s11, 128 }
  0xac   :  { %p4395_p10 = scmp.ne.s32.totalorder %s5253_s11, %s4394_s29  ;;  %p4398_p11 = scmp.lt.u32.totalorder %s4394_s29, %s5253_s11 }
  0xae   :  { %p4400_p12 = pnand %p4398_p11, %p4395_p10 }
  0xb0   :  { %4403 = shalt.err (!%p4400_p12)
}
  0xb1   :  { %s4404_s7 = scalar_lea.vmem %s141_s5, 128  ;;  %p4409_p0 = scmp.lt.s32.totalorder %s141_s5, %s141_s5 }
  0xb2   :  { %p4405_p13 = scmp.ne.s32.totalorder %s141_s5, %s4404_s7  ;;  %p4410_p1 = scmp.lt.s32.totalorder %s4404_s7, %s4404_s7 }
  0xb4   :  { %p4411_p2 = por %p4410_p1, %p4409_p0 }
  0xb6   :  { %p4412_p3 = pnand %p4411_p2, %p4405_p13 }
  0xb8   :  { %4415 = shalt.err (!%p4412_p3)
}
  0xb9   :  { %143 = dma.hbm_to_vmem [thread:$0]  %s5253_s11, 128, %s141_s5, [#allocation21]  }
  0xba   :  { %s4473_s21 = smov [#allocation23]   ;;  %s4416_s28 = scalar_lea.hbm %s5255_s13, 112 }
  0xbb   :  { %s150_s2 = sshll.u32 %s4473_s21, 4  ;;  %p4417_p4 = scmp.ne.s32.totalorder %s5255_s13, %s4416_s28  ;;  %s151_s2 = int_to_ptr.vmem [resolvable:$true] %s150_s2 }
  0xbc   :  { %p4420_p5 = scmp.lt.u32.totalorder %s4416_s28, %s5255_s13 }
  0xbe   :  { %p4422_p6 = pnand %p4420_p5, %p4417_p4 }
  0xc0   :  { %4425 = shalt.err (!%p4422_p6)
}
  0xc1   :  { %s4426_s10 = scalar_lea.vmem %s151_s2, 112  ;;  %s4430_s11 = scalar_lea.vmem %s151_s2, 128 }
  0xc2   :  { %p4427_p7 = scmp.ne.s32.totalorder %s151_s2, %s4426_s10  ;;  %p4431_p8 = scmp.lt.s32.totalorder %s151_s2, %s151_s2 }
  0xc3   :  { %p4432_p9 = scmp.lt.s32.totalorder %s4430_s11, %s4426_s10 }
  0xc5   :  { %p4433_p10 = por %p4432_p9, %p4431_p8 }
  0xc7   :  { %p4434_p11 = pnand %p4433_p10, %p4427_p7 }
  0xc9   :  { %4437 = shalt.err (!%p4434_p11)
}
  0xca   :  { %153 = dma.hbm_to_vmem [thread:$0]  %s5255_s13, 112, %s151_s2, [#allocation24]  }
  0xcb   :  { %4438 = dma.done.wait [#allocation7], 256  }
  0xcc   :  { %4439 = vsyncadd [#allocation7], 4294967040 }
  0xcd   :  { %4440 = dma.done.wait [#allocation9], 1040  }
  0xce   :  { %4441 = vsyncadd [#allocation9], 4294966256 }
  0xcf   :  { %4442 = dma.done.wait [#allocation12], 2080  }
  0xd0   :  { %4443 = vsyncadd [#allocation12], 4294965216 }
  0xd1   :  { %4444 = dma.done.wait [#allocation15], 8224  }
  0xd2   :  { %4445 = vsyncadd [#allocation15], 4294959072 }
  0xd3   :  { %4446 = dma.done.wait [#allocation18], 128  }
  0xd4   :  { %4447 = vsyncadd [#allocation18], 4294967168 }
  0xd5   :  { %4448 = dma.done.wait [#allocation21], 256  }
  0xd6   :  { %4449 = vsyncadd [#allocation21], 4294967040 }
  0xd7   :  { %4450 = dma.done.wait [#allocation24], 112  }
  0xd8   :  { %4451 = vsyncadd [#allocation24], 4294967184  ;;  %s195_s16 = sld [smem:[#allocation0]]   ;;  %s4474_s18 = smov 1024   ;;  %v4475_v0 = vmov 0.0   ;;  %vm4476_vm0 = vmmov 0  }
  0xd9   :  { %207 = sst [smem:[#allocation26]] %s4474_s18  ;;  %3872 = vmatprep.subr.bf16.mxu0 %v4475_v0  ;;  %3888 = vmatprep.mubr.msk.bf16.mxu0 %vm4476_vm0, %v4475_v0  ;;  %v4477_v1 = vmov 0   ;;  %s4478_s13 = smov [#allocation3]   ;;  %vm265_vm1 = vcmask 818176  }
  0xda   :  { %209 = sst [smem:[#allocation26 + $0x1]] %s4474_s18  ;;  %515 = vmatprep.mubr.bf16.mxu1 %v4477_v1  ;;  %s203_s29 = sshll.u32 %s4478_s13, 4  ;;  %s204_s29 = int_to_ptr.vmem [resolvable:$true] %s203_s29 }
  0xdb   :  { %211 = sst [smem:[#allocation26 + $0x2]] %s4462_s25  ;;  %s4479_s4 = smov 512  }
  0xdc   :  { %213 = sst [smem:[#allocation26 + $0x3]] %s4457_s23  ;;  %s4480_s20 = smov 2  }
  0xdd   :  { %215 = sst [smem:[#allocation26 + $0x4]] %s4461_s30  ;;  %s4481_s7 = smov [#allocation5]  }
  0xde   :  { %219 = sst [smem:[#allocation26 + $0x6]] %s4479_s4  ;;  %s3680_s17 = sshll.u32 %s195_s16, 26 }
  0xdf   :  { %221 = sst [smem:[#allocation26 + $0x7]] %s4457_s23  ;;  %s3681_s19 = sadd.s32 134217728, %s3680_s17 }
  0xe0   :  { %223 = sst [smem:[#allocation26 + $0x8]] %s4458_s24  ;;  %s4482_s8 = smov [#allocation25]  }
  0xe1   :  { %217 = sst [smem:[#allocation26 + $0x5]] %s4480_s20  ;;  %s4483_s21 = smov 896  }
  0xe2   :  { %225 = dma.general %s5251_s9, 32768, %s204_s29, %s4481_s7, %s4482_s8, [#allocation26], %s3681_s19, 0  }
  0xe3   :  { %242 = sst [smem:[#allocation28]] %s4483_s21  ;;  %s4484_s2 = smov 7  }
  0xe4   :  { %244 = sst [smem:[#allocation28 + $0x1]] %s4483_s21  ;;  %s4485_s15 = smov [#allocation4]  }
  0xe5   :  { %246 = sst [smem:[#allocation28 + $0x2]] %s4484_s2  ;;  %s238_s3 = sshll.u32 %s4485_s15, 4  ;;  %s239_s3 = int_to_ptr.vmem [resolvable:$true] %s238_s3 }
  0xe6   :  { %248 = sst [smem:[#allocation28 + $0x3]] %s4457_s23  ;;  %s4486_s28 = smov 448  }
  0xe7   :  { %250 = sst [smem:[#allocation28 + $0x4]] %s4461_s30  ;;  %s4487_s9 = smov [#allocation5 + $0x1]  }
  0xe8   :  { %252 = sst [smem:[#allocation28 + $0x5]] %s4480_s20  ;;  %s4488_s1 = smov [#allocation27]  }
  0xe9   :  { %254 = sst [smem:[#allocation28 + $0x6]] %s4486_s28 }
  0xea   :  { %256 = sst [smem:[#allocation28 + $0x7]] %s4457_s23 }
  0xeb   :  { %258 = sst [smem:[#allocation28 + $0x8]] %s4458_s24 }
  0xec   :  { %260 = dma.general %s5254_s12, 57344, %s239_s3, %s4487_s9, %s4488_s1, [#allocation28], %s3681_s19, 0  }
  0xed   :  { %261 = vst [vmem:[#allocation2] sm:$0xff] %v4477_v1  ;;  %v3990_v2 = vld [vmem:[#allocation8] sm:$0xff]   ;;  %v3991_v3 = vld [vmem:[#allocation8 + $0x8] sm:$0xff]   ;;  %v3992_v4 = vld [vmem:[#allocation8 + $0x10] sm:$0xff]  }
  0xee   :  { %3873 = vmatpush3.bf16.msra.mxu0 %v3990_v2  ;;  %v3993_v5 = vld [vmem:[#allocation8 + $0x18] sm:$0xff]   ;;  %v262_v6 = vld [vmem:[#allocation6] sm:$0xff]  ;;  %v4000_v10 = vld [vmem:[#allocation11] ss:$8 sps:$4 sm:$0xff]  }
  0xef   :  { %3874 = vmatprep.subr.bf16.mxu0 %v4475_v0  ;;  %v263_v7 = vld [vmem:[#allocation6 + $0x8] sm:$0xff]  ;;  %v3998_v9 = vld [vmem:[#allocation11 + $0x4] ss:$8 sps:$4 sm:$0xff]   ;;  %v4006_v16 = vld [vmem:[#allocation11 + $0x20] ss:$8 sps:$4 sm:$0xff]  }
  0xf0   :  { %v264_v8 = vpack.c.bf16 %v263_v7, %v262_v6  ;;  %v4001_v11 = vld [vmem:[#allocation11 + $0x14] ss:$8 sps:$4 sm:$0xff]   ;;  %483 = vmatprep.subr.bf16.mxu1 %v3998_v9  ;;  %v4003_v12 = vld [vmem:[#allocation11 + $0x10] ss:$8 sps:$4 sm:$0xff]   ;;  %v4004_v13 = vld [vmem:[#allocation11 + $0x24] ss:$8 sps:$4 sm:$0xff]  }
  0xf1   :  { %484 = vmatpush1.bf16.msra.mxu1 %v4000_v10  ;;  %v3994_v14 = vld [vmem:[#allocation8 + $0x20] sm:$0xff]   ;;  %v3995_v15 = vld [vmem:[#allocation8 + $0x28] sm:$0xff]   ;;  %v4009_v18 = vld [vmem:[#allocation11 + $0x30] ss:$8 sps:$4 sm:$0xff]  }
  0xf2   :  { %3875 = vmatpush3.bf16.msra.mxu0 %v3991_v3  ;;  %266 = vst.msk [vmem:[#allocation2] sm:$0xff] %vm265_vm1, %v264_v8  ;;  %485 = vmatprep.subr.bf16.mxu1 %v4001_v11  ;;  %v4007_v17 = vld [vmem:[#allocation11 + $0x34] ss:$8 sps:$4 sm:$0xff]   ;;  %v4010_v19 = vld [vmem:[#allocation11 + $0x44] ss:$8 sps:$4 sm:$0xff]  }
  0xf3   :  { %3876 = vmatprep.subr.bf16.mxu0 %v4475_v0  ;;  %v3996_v20 = vld [vmem:[#allocation8 + $0x30] sm:$0xff]   ;;  %v4012_v21 = vld [vmem:[#allocation11 + $0x40] ss:$8 sps:$4 sm:$0xff]   ;;  %v3997_v23 = vld [vmem:[#allocation8 + $0x38] sm:$0xff]  }
  0xf4   :  { %v4013_v22 = vld [vmem:[#allocation11 + $0x54] ss:$8 sps:$4 sm:$0xff]   ;;  %v4015_v24 = vld [vmem:[#allocation11 + $0x50] ss:$8 sps:$4 sm:$0xff]   ;;  %v4016_v26 = vld [vmem:[#allocation11 + $0x64] ss:$8 sps:$4 sm:$0xff]  }
  0xf5   :  { %486 = vmatpush1.bf16.msra.mxu1 %v4003_v12  ;;  %v4018_v27 = vld [vmem:[#allocation11 + $0x60] ss:$8 sps:$4 sm:$0xff]   ;;  %v4019_v28 = vld [vmem:[#allocation11 + $0x74] ss:$8 sps:$4 sm:$0xff]   ;;  %v4021_v29 = vld [vmem:[#allocation11 + $0x70] ss:$8 sps:$4 sm:$0xff]  }
  0xf6   :  { %3877 = vmatpush3.bf16.msra.mxu0 %v3992_v4  ;;  %487 = vmatprep.subr.bf16.mxu1 %v4004_v13  ;;  %v3684_v30 = vld [vmem:[#allocation10] ss:$0 sm:$0xff]  ;;  %v4024_v42 = vld [vmem:[#allocation16 + $0x4] ss:$16 sps:$4 sm:$0xff]   ;;  %v4022_v43 = vld [vmem:[#allocation16] ss:$16 sps:$4 sm:$0xff]  }
  0xf7   :  { %3878 = vmatprep.subr.bf16.mxu0 %v4475_v0  ;;  %v4027_v44 = vld [vmem:[#allocation16 + $0x24] ss:$16 sps:$4 sm:$0xff]   ;;  %v4025_v45 = vld [vmem:[#allocation16 + $0x20] ss:$16 sps:$4 sm:$0xff]   ;;  %v4072_v10 = vld [vmem:[#allocation16 + $0xc] ss:$16 sps:$4 sm:$0xff]  }
  0xf8   :  { %v4030_v46 = vld [vmem:[#allocation16 + $0x44] ss:$16 sps:$4 sm:$0xff]   ;;  %v4028_v47 = vld [vmem:[#allocation16 + $0x40] ss:$16 sps:$4 sm:$0xff]  }
  0xf9   :  { %488 = vmatpush1.bf16.msra.mxu1 %v4006_v16  ;;  %v267_v25 = vld [vmem:[#allocation2] sm:$0xff] }
  0xfa   :  { %3879 = vmatpush3.bf16.msra.mxu0 %v3993_v5  ;;  %489 = vmatprep.subr.bf16.mxu1 %v4007_v17  ;;  %v4033_v48 = vld [vmem:[#allocation16 + $0x64] ss:$16 sps:$4 sm:$0xff]   ;;  %v4031_v49 = vld [vmem:[#allocation16 + $0x60] ss:$16 sps:$4 sm:$0xff]  }
  0xfb   :  { %3880 = vmatprep.subr.bf16.mxu0 %v4475_v0  ;;  %v4036_v50 = vld [vmem:[#allocation16 + $0x84] ss:$16 sps:$4 sm:$0xff]   ;;  %v4034_v51 = vld [vmem:[#allocation16 + $0x80] ss:$16 sps:$4 sm:$0xff]  }
  0xfc   :  { %v4039_v52 = vld [vmem:[#allocation16 + $0xa4] ss:$16 sps:$4 sm:$0xff]   ;;  %v4037_v53 = vld [vmem:[#allocation16 + $0xa0] ss:$16 sps:$4 sm:$0xff]  }
  0xfd   :  { %490 = vmatpush1.bf16.msra.mxu1 %v4009_v18  ;;  %v4042_v54 = vld [vmem:[#allocation16 + $0xc4] ss:$16 sps:$4 sm:$0xff]   ;;  %v4040_v55 = vld [vmem:[#allocation16 + $0xc0] ss:$16 sps:$4 sm:$0xff]  }
  0xfe   :  { %3881 = vmatpush3.bf16.msra.mxu0 %v3994_v14  ;;  %491 = vmatprep.subr.bf16.mxu1 %v4010_v19  ;;  %v4045_v56 = vld [vmem:[#allocation16 + $0xe4] ss:$16 sps:$4 sm:$0xff]   ;;  %v4043_v57 = vld [vmem:[#allocation16 + $0xe0] ss:$16 sps:$4 sm:$0xff]  }
  0xff   :  { %3882 = vmatprep.subr.bf16.mxu0 %v4475_v0  ;;  %v4048_v58 = vld [vmem:[#allocation16 + $0x104] ss:$16 sps:$4 sm:$0xff]   ;;  %v4046_v59 = vld [vmem:[#allocation16 + $0x100] ss:$16 sps:$4 sm:$0xff]  }
 0x100   :  { %v4051_v60 = vld [vmem:[#allocation16 + $0x124] ss:$16 sps:$4 sm:$0xff]   ;;  %v4049_v61 = vld [vmem:[#allocation16 + $0x120] ss:$16 sps:$4 sm:$0xff]  }
 0x101   :  { %492 = vmatpush1.bf16.msra.mxu1 %v4012_v21  ;;  %v4054_v62 = vld [vmem:[#allocation16 + $0x144] ss:$16 sps:$4 sm:$0xff]   ;;  %v4052_v63 = vld [vmem:[#allocation16 + $0x140] ss:$16 sps:$4 sm:$0xff]  }
 0x102   :  { %3883 = vmatpush3.bf16.msra.mxu0 %v3995_v15  ;;  %493 = vmatprep.subr.bf16.mxu1 %v4013_v22  ;;  %v4055_v1 = vld [vmem:[#allocation16 + $0x160] ss:$16 sps:$4 sm:$0xff]   ;;  %v4060_v2 = vld [vmem:[#allocation16 + $0x184] ss:$16 sps:$4 sm:$0xff]  }
 0x103   :  { %3884 = vmatprep.subr.bf16.mxu0 %v4475_v0  ;;  %v4058_v3 = vld [vmem:[#allocation16 + $0x180] ss:$16 sps:$4 sm:$0xff]   ;;  %v4063_v4 = vld [vmem:[#allocation16 + $0x1a4] ss:$16 sps:$4 sm:$0xff]  }
 0x104   :  { %v4061_v5 = vld [vmem:[#allocation16 + $0x1a0] ss:$16 sps:$4 sm:$0xff]   ;;  %v4066_v6 = vld [vmem:[#allocation16 + $0x1c4] ss:$16 sps:$4 sm:$0xff]  }
 0x105   :  { %494 = vmatpush1.bf16.msra.mxu1 %v4015_v24  ;;  %v4064_v7 = vld [vmem:[#allocation16 + $0x1c0] ss:$16 sps:$4 sm:$0xff]   ;;  %v4069_v9 = vld [vmem:[#allocation16 + $0x1e4] ss:$16 sps:$4 sm:$0xff]  }
 0x106   :  { %3885 = vmatpush3.bf16.msra.mxu0 %v3996_v20  ;;  %495 = vmatprep.subr.bf16.mxu1 %v4016_v26  ;;  %v4067_v8 = vld [vmem:[#allocation16 + $0x1e0] ss:$16 sps:$4 sm:$0xff]  }
 0x107   :  { %3886 = vmatprep.subr.bf16.mxu0 %v4475_v0  ;;  %v4057_v0 = vld [vmem:[#allocation16 + $0x164] ss:$16 sps:$4 sm:$0xff]  }
 0x109   :  { %496 = vmatpush1.bf16.msra.mxu1 %v4018_v27 }
 0x10a   :  { %3887 = vmatpush3.bf16.msra.mxu0 %v3997_v23  ;;  %497 = vmatprep.subr.bf16.mxu1 %v4019_v28 }
 0x10d   :  { %3889 = vmatmul.mubr.bf16.vlgmr.msra.gmra.mrb[0].mxu0 %v267_v25  ;;  %498 = vmatpush1.bf16.msra.mxu1 %v4021_v29 }
 0x10e   :  { %1043 = vmatprep.subr.bf16.mxu1 %v4024_v42 }
 0x1e0   :  { %v373_v31 = vpop.f32.mrb[0].mxu0 }
 0x1e1   :  { %v374_v32 = vadd.f32 %v3684_v30, %v373_v31  ;;  %v3890_v33 = vpop.f32.mrb[1].mxu0 }
 0x1e2   :  { %v376_v34 = vpop.f32.mrb[2].mxu0 }
 0x1e3   :  { %v382_v35 = vmul.f32 0.2, %v374_v32  ;;  %v377_v36 = vadd.f32 %v3684_v30, %v376_v34  ;;  %v3891_v37 = vpop.f32.mrb[3].mxu0  ;;  %vm380_vm2 = vcmp.ge.f32.partialorder %v374_v32, 0.0 }
 0x1e5   :  { %vm381_vm3 = vcmp.ge.f32.partialorder %v377_v36, 0.0  ;;  %v383_v38 = vmul.f32 0.2, %v377_v36  ;;  %v384_v39 = vsel %vm380_vm2, %v374_v32, %v382_v35 }
 0x1e7   :  { %v385_v40 = vsel %vm381_vm3, %v377_v36, %v383_v38 }
 0x1e8   :  { %v402_v41 = vpack.c.bf16 %v385_v40, %v384_v39 }
 0x1ea   :  { %516 = vmatmul.mubr.bf16.vlgmr.msra.gmra.mrb[0].mxu1 %v402_v41 }
 0x1eb   :  { %1044 = vmatpush1.bf16.msra.mxu1 %v4022_v43 }
 0x1ec   :  { %1045 = vmatprep.subr.bf16.mxu1 %v4027_v44 }
 0x1ef   :  { %1046 = vmatpush1.bf16.msra.mxu1 %v4025_v45 }
 0x1f0   :  { %1047 = vmatprep.subr.bf16.mxu1 %v4030_v46 }
 0x1f3   :  { %1048 = vmatpush1.bf16.msra.mxu1 %v4028_v47 }
 0x1f4   :  { %1049 = vmatprep.subr.bf16.mxu1 %v4033_v48 }
 0x1f7   :  { %1050 = vmatpush1.bf16.msra.mxu1 %v4031_v49 }
 0x1f8   :  { %1051 = vmatprep.subr.bf16.mxu1 %v4036_v50 }
 0x1fb   :  { %1052 = vmatpush1.bf16.msra.mxu1 %v4034_v51 }
 0x1fc   :  { %1053 = vmatprep.subr.bf16.mxu1 %v4039_v52 }
 0x1ff   :  { %1054 = vmatpush1.bf16.msra.mxu1 %v4037_v53 }
 0x200   :  { %1055 = vmatprep.subr.bf16.mxu1 %v4042_v54 }
 0x203   :  { %1056 = vmatpush1.bf16.msra.mxu1 %v4040_v55 }
 0x204   :  { %1057 = vmatprep.subr.bf16.mxu1 %v4045_v56 }
 0x207   :  { %1058 = vmatpush1.bf16.msra.mxu1 %v4043_v57 }
 0x208   :  { %1059 = vmatprep.subr.bf16.mxu1 %v4048_v58 }
 0x20b   :  { %1060 = vmatpush1.bf16.msra.mxu1 %v4046_v59  ;;  %v4489_v59 = vmov 1966171168  }
 0x20c   :  { %1061 = vmatprep.subr.bf16.mxu1 %v4051_v60  ;;  %v579_v60 = vunpack.c.l.s4 %v4489_v59  ;;  %v4100_v59 = vld [vmem:[#allocation16 + $0x148] ss:$16 sps:$4 sm:$0xff]  }
 0x20f   :  { %1062 = vmatpush1.bf16.msra.mxu1 %v4049_v61  ;;  %v581_v61 = vlaneseq }
 0x210   :  { %1063 = vmatprep.subr.bf16.mxu1 %v4054_v62  ;;  %v580_v62 = vunpack.c.0.s8 %v579_v60  ;;  %v4105_v60 = vld [vmem:[#allocation16 + $0x16c] ss:$16 sps:$4 sm:$0xff]  }
 0x213   :  { %1064 = vmatpush1.bf16.msra.mxu1 %v4052_v63  ;;  %v4762_v63 = vshrl.u32 %v581_v61, 7  ;;  %v4103_v61 = vld [vmem:[#allocation16 + $0x168] ss:$16 sps:$4 sm:$0xff]  }
 0x214   :  { %1065 = vmatprep.subr.bf16.mxu1 %v4057_v0 }
 0x217   :  { %1066 = vmatpush1.bf16.msra.mxu1 %v4055_v1  ;;  %v4765_v1 = vsub.s32 %v580_v62, %v4762_v63  ;;  %v4108_v62 = vld [vmem:[#allocation16 + $0x18c] ss:$16 sps:$4 sm:$0xff]  }
 0x218   :  { %1067 = vmatprep.subr.bf16.mxu1 %v4060_v2 }
 0x21b   :  { %1068 = vmatpush1.bf16.msra.mxu1 %v4058_v3 }
 0x21c   :  { %1069 = vmatprep.subr.bf16.mxu1 %v4063_v4 }
 0x21f   :  { %1070 = vmatpush1.bf16.msra.mxu1 %v4061_v5  ;;  %v526_v5 = vld [vmem:[#allocation13] sm:$0x3] }
 0x220   :  { %1071 = vmatprep.subr.bf16.mxu1 %v4066_v6 }
 0x223   :  { %1072 = vmatpush1.bf16.msra.mxu1 %v4064_v7  ;;  %v4770_v7 = vsub.s32 0, %v4762_v63 }
 0x224   :  { %1073 = vmatprep.subr.bf16.mxu1 %v4069_v9 }
 0x227   :  { %1074 = vmatpush1.bf16.msra.mxu1 %v4067_v8  ;;  %v4773_v8 = vsub.s32 1, %v4762_v63 }
 0x228   :  { %1086 = vmatprep.subr.bf16.mxu1 %v4072_v10 }
 0x2bd   :  { %v4742_v11 = vpop.f32.mrb[0].mxu1 }
 0x2be   :  { %v4744_v12 = vpop.f32.mrb[1].mxu1  ;;  %v545_v14 = vmul.f32 %v4742_v11, %v4742_v11 }
 0x2bf   :  { %v4746_v13 = vpop.f32.mrb[2].mxu1  ;;  %v546_v18 = vmul.f32 %v4744_v12, %v4744_v12 }
 0x2c0   :  { %v528_v15 = vadd.f32 %v4746_v13, %v4742_v11  ;;  %v547_v16 = vmul.f32 %v4746_v13, %v4746_v13  ;;  %v4754_v17 = vpop.f32.mrb[3].mxu1 }
 0x2c1   :  { %v535_v19 = vadd.f32 %v4754_v17, %v4744_v12  ;;  %v548_v20 = vmul.f32 %v4754_v17, %v4754_v17 }
 0x2c2   :  { %v529_v21 = vrot.slane %v528_v15, 4  ;;  %v549_v22 = vadd.f32 %v547_v16, %v545_v14 }
 0x2c3   :  { %v536_v23 = vrot.slane %v535_v19, 4  ;;  %v556_v24 = vadd.f32 %v548_v20, %v546_v18 }
 0x2c4   :  { %v530_v25 = vadd.f32 %v529_v21, %v528_v15  ;;  %v550_v26 = vrot.slane %v549_v22, 4 }
 0x2c5   :  { %v537_v27 = vadd.f32 %v536_v23, %v535_v19  ;;  %v557_v28 = vrot.slane %v556_v24, 4 }
 0x2c6   :  { %v531_v29 = vrot.slane %v530_v25, 2  ;;  %v551_v30 = vadd.f32 %v550_v26, %v549_v22 }
 0x2c7   :  { %v538_v31 = vrot.slane %v537_v27, 2  ;;  %v558_v32 = vadd.f32 %v557_v28, %v556_v24  ;;  %v527_v24 = vld [vmem:[#allocation14] sm:$0x3] }
 0x2c8   :  { %v532_v33 = vadd.f32 %v531_v29, %v530_v25  ;;  %v552_v34 = vrot.slane %v551_v30, 2 }
 0x2c9   :  { %v539_v35 = vadd.f32 %v538_v31, %v537_v27  ;;  %v559_v36 = vrot.slane %v558_v32, 2 }
 0x2ca   :  { %v533_v37 = vrot.slane %v532_v33, 1  ;;  %v553_v38 = vadd.f32 %v552_v34, %v551_v30 }
 0x2cb   :  { %v540_v39 = vrot.slane %v539_v35, 1  ;;  %v560_v40 = vadd.f32 %v559_v36, %v558_v32  ;;  %v4070_v36 = vld [vmem:[#allocation16 + $0x8] ss:$16 sps:$4 sm:$0xff]  }
 0x2cc   :  { %v534_v41 = vadd.f32 %v533_v37, %v532_v33  ;;  %v554_v42 = vrot.slane %v553_v38, 1 }
 0x2cd   :  { %v541_v43 = vadd.f32 %v540_v39, %v539_v35  ;;  %v561_v44 = vrot.slane %v560_v40, 1 }
 0x2ce   :  { %v543_v45 = vmul.f32 0.0625, %v534_v41  ;;  %v555_v46 = vadd.f32 %v554_v42, %v553_v38  ;;  %v4073_v41 = vld [vmem:[#allocation16 + $0x28] ss:$16 sps:$4 sm:$0xff]   ;;  %v4078_v42 = vld [vmem:[#allocation16 + $0x4c] ss:$16 sps:$4 sm:$0xff]  }
 0x2cf   :  { %v544_v47 = vmul.f32 0.0625, %v541_v43  ;;  %v562_v48 = vadd.f32 %v561_v44, %v560_v40  ;;  %v4075_v40 = vld [vmem:[#allocation16 + $0x2c] ss:$16 sps:$4 sm:$0xff]   ;;  %v4076_v43 = vld [vmem:[#allocation16 + $0x48] ss:$16 sps:$4 sm:$0xff]  }
 0x2d0   :  { %v563_v49 = vmul.f32 0.0625, %v555_v46  ;;  %v565_v50 = vmul.f32 %v543_v45, %v543_v45  ;;  %v4081_v44 = vld [vmem:[#allocation16 + $0x6c] ss:$16 sps:$4 sm:$0xff]  }
 0x2d1   :  { %v564_v51 = vmul.f32 0.0625, %v562_v48  ;;  %v566_v52 = vmul.f32 %v544_v47, %v544_v47  ;;  %v4084_v46 = vld [vmem:[#allocation16 + $0x8c] ss:$16 sps:$4 sm:$0xff]  }
 0x2d2   :  { %v567_v53 = vsub.f32 %v563_v49, %v565_v50  ;;  %v4087_v48 = vld [vmem:[#allocation16 + $0xac] ss:$16 sps:$4 sm:$0xff]   ;;  %v4085_v49 = vld [vmem:[#allocation16 + $0xa8] ss:$16 sps:$4 sm:$0xff]  }
 0x2d3   :  { %v568_v54 = vsub.f32 %v564_v51, %v566_v52  ;;  %v4090_v50 = vld [vmem:[#allocation16 + $0xcc] ss:$16 sps:$4 sm:$0xff]   ;;  %v4088_v51 = vld [vmem:[#allocation16 + $0xc8] ss:$16 sps:$4 sm:$0xff]  }
 0x2d4   :  { %v569_v55 = vmax.f32 %v567_v53, 0.0  ;;  %v4093_v52 = vld [vmem:[#allocation16 + $0xec] ss:$16 sps:$4 sm:$0xff]   ;;  %v4091_v53 = vld [vmem:[#allocation16 + $0xe8] ss:$16 sps:$4 sm:$0xff]  }
 0x2d5   :  { %v570_v56 = vmax.f32 %v568_v54, 0.0  ;;  %v4096_v54 = vld [vmem:[#allocation16 + $0x10c] ss:$16 sps:$4 sm:$0xff]  }
 0x2d6   :  { %v571_v57 = vadd.f32 0.8, %v569_v55  ;;  %v4094_v55 = vld [vmem:[#allocation16 + $0x108] ss:$16 sps:$4 sm:$0xff]  }
 0x2d7   :  { %v572_v58 = vadd.f32 0.8, %v570_v56  ;;  %v4099_v56 = vld [vmem:[#allocation16 + $0x12c] ss:$16 sps:$4 sm:$0xff]  }
 0x2d8   :  { %4118 = vrsqrt.f32 %v571_v57  ;;  %v4097_v57 = vld [vmem:[#allocation16 + $0x128] ss:$16 sps:$4 sm:$0xff]  }
 0x2d9   :  { %4120 = vrsqrt.f32 %v572_v58  ;;  %v4102_v58 = vld [vmem:[#allocation16 + $0x14c] ss:$16 sps:$4 sm:$0xff]  }
 0x2e2   :  { %v4119_v0 = vpop.eup %4118 }
 0x2e3   :  { %v4121_v2 = vpop.eup %4120 }
 0x2e4   :  { %v577_v3 = vcombine.low %v4119_v0, %v4121_v2  ;;  %v4106_v0 = vld [vmem:[#allocation16 + $0x188] ss:$16 sps:$4 sm:$0xff]   ;;  %v4111_v2 = vld [vmem:[#allocation16 + $0x1ac] ss:$16 sps:$4 sm:$0xff]  }
 0x2e6   :  { %v584_v4 = vrot.slane %v577_v3, %v4765_v1  ;;  %v4109_v3 = vld [vmem:[#allocation16 + $0x1a8] ss:$16 sps:$4 sm:$0xff]  }
 0x2e8   :  { %v591_v6 = vrot.slane %v584_v4, %v4765_v1  ;;  %v4114_v4 = vld [vmem:[#allocation16 + $0x1cc] ss:$16 sps:$4 sm:$0xff]  }
 0x2ea   :  { %v593_v9 = vmul.f32 %v591_v6, %v526_v5  ;;  %v4112_v5 = vld [vmem:[#allocation16 + $0x1c8] ss:$16 sps:$4 sm:$0xff]   ;;  %v4117_v6 = vld [vmem:[#allocation16 + $0x1ec] ss:$16 sps:$4 sm:$0xff]  }
 0x2ec   :  { %v598_v10 = vrot.slane %v593_v9, %v4770_v7  ;;  %v602_v14 = vrot.slane %v593_v9, %v4773_v8  ;;  %v4115_v9 = vld [vmem:[#allocation16 + $0x1e8] ss:$16 sps:$4 sm:$0xff]  }
 0x2ee   :  { %v605_v15 = vmul.f32 %v598_v10, %v543_v45  ;;  %v606_v16 = vmul.f32 %v602_v14, %v544_v47  ;;  %v629_v18 = vmul.f32 %v602_v14, %v4754_v17  ;;  %v627_v19 = vmul.f32 %v602_v14, %v4744_v12  ;;  %v4079_v45 = vld [vmem:[#allocation16 + $0x68] ss:$16 sps:$4 sm:$0xff]  }
 0x2ef   :  { %v626_v20 = vmul.f32 %v598_v10, %v4742_v11  ;;  %v628_v21 = vmul.f32 %v598_v10, %v4746_v13  ;;  %v4082_v47 = vld [vmem:[#allocation16 + $0x88] ss:$16 sps:$4 sm:$0xff]  }
 0x2f0   :  { %v609_v22 = vcombine.low %v605_v15, %v606_v16 }
 0x2f2   :  { %v616_v23 = vrot.slane %v609_v22, %v4765_v1 }
 0x2f4   :  { %v623_v25 = vrot.slane %v616_v23, %v4765_v1 }
 0x2f6   :  { %v625_v26 = vsub.f32 %v527_v24, %v623_v25 }
 0x2f8   :  { %v634_v27 = vrot.slane %v625_v26, %v4770_v7  ;;  %v638_v28 = vrot.slane %v625_v26, %v4773_v8 }
 0x2fa   :  { %v644_v29 = vadd.f32 %v638_v28, %v629_v18  ;;  %v642_v30 = vadd.f32 %v638_v28, %v627_v19  ;;  %v641_v17 = vadd.f32 %v634_v27, %v626_v20  ;;  %v643_v31 = vadd.f32 %v634_v27, %v628_v21 }
 0x2fc   :  { %vm646_vm4 = vcmp.ge.f32.partialorder %v642_v30, 0.0  ;;  %vm648_vm5 = vcmp.ge.f32.partialorder %v644_v29, 0.0  ;;  %v650_v11 = vmul.f32 0.2, %v642_v30  ;;  %v652_v12 = vmul.f32 0.2, %v644_v29 }
 0x2fd   :  { %vm645_vm6 = vcmp.ge.f32.partialorder %v641_v17, 0.0  ;;  %vm647_vm7 = vcmp.ge.f32.partialorder %v643_v31, 0.0  ;;  %v649_v13 = vmul.f32 0.2, %v641_v17  ;;  %v651_v32 = vmul.f32 0.2, %v643_v31 }
 0x2fe   :  { %v654_v33 = vsel %vm646_vm4, %v642_v30, %v650_v11  ;;  %v656_v34 = vsel %vm648_vm5, %v644_v29, %v652_v12 }
 0x2ff   :  { %v722_v35 = vpack.c.bf16 %v656_v34, %v654_v33  ;;  %v653_v37 = vsel %vm645_vm6, %v641_v17, %v649_v13  ;;  %v655_v38 = vsel %vm647_vm7, %v643_v31, %v651_v32 }
 0x300   :  { %v4785_v39 = vpack.c.bf16 %v655_v38, %v653_v37 }
 0x301   :  { %1075 = vmatprep.mubr.bf16.mxu1 %v722_v35 }
 0x302   :  { %1076 = vmatmul.mubr.bf16.vlgmr.msra.gmra.mrb[4].mxu1 %v4785_v39 }
 0x303   :  { %1087 = vmatpush1.bf16.msra.mxu1 %v4070_v36  ;;  %1118 = vmatprep.mubr.bf16.mxu1 %v722_v35 }
 0x304   :  { %1088 = vmatprep.subr.bf16.mxu1 %v4075_v40 }
 0x307   :  { %1089 = vmatpush1.bf16.msra.mxu1 %v4073_v41 }
 0x308   :  { %1090 = vmatprep.subr.bf16.mxu1 %v4078_v42 }
 0x30b   :  { %1091 = vmatpush1.bf16.msra.mxu1 %v4076_v43 }
 0x30c   :  { %1092 = vmatprep.subr.bf16.mxu1 %v4081_v44 }
 0x30f   :  { %1093 = vmatpush1.bf16.msra.mxu1 %v4079_v45 }
 0x310   :  { %1094 = vmatprep.subr.bf16.mxu1 %v4084_v46 }
 0x313   :  { %1095 = vmatpush1.bf16.msra.mxu1 %v4082_v47 }
 0x314   :  { %1096 = vmatprep.subr.bf16.mxu1 %v4087_v48 }
 0x317   :  { %1097 = vmatpush1.bf16.msra.mxu1 %v4085_v49 }
 0x318   :  { %1098 = vmatprep.subr.bf16.mxu1 %v4090_v50 }
 0x31b   :  { %1099 = vmatpush1.bf16.msra.mxu1 %v4088_v51 }
 0x31c   :  { %1100 = vmatprep.subr.bf16.mxu1 %v4093_v52 }
 0x31f   :  { %1101 = vmatpush1.bf16.msra.mxu1 %v4091_v53 }
 0x320   :  { %1102 = vmatprep.subr.bf16.mxu1 %v4096_v54 }
 0x323   :  { %1103 = vmatpush1.bf16.msra.mxu1 %v4094_v55 }
 0x324   :  { %1104 = vmatprep.subr.bf16.mxu1 %v4099_v56 }
 0x327   :  { %1105 = vmatpush1.bf16.msra.mxu1 %v4097_v57 }
 0x328   :  { %1106 = vmatprep.subr.bf16.mxu1 %v4102_v58 }
 0x32b   :  { %1107 = vmatpush1.bf16.msra.mxu1 %v4100_v59 }
 0x32c   :  { %1108 = vmatprep.subr.bf16.mxu1 %v4105_v60 }
 0x32f   :  { %1109 = vmatpush1.bf16.msra.mxu1 %v4103_v61 }
 0x330   :  { %1110 = vmatprep.subr.bf16.mxu1 %v4108_v62 }
 0x333   :  { %1111 = vmatpush1.bf16.msra.mxu1 %v4106_v0 }
 0x334   :  { %1112 = vmatprep.subr.bf16.mxu1 %v4111_v2 }
 0x337   :  { %1113 = vmatpush1.bf16.msra.mxu1 %v4109_v3 }
 0x338   :  { %1114 = vmatprep.subr.bf16.mxu1 %v4114_v4 }
 0x33b   :  { %1115 = vmatpush1.bf16.msra.mxu1 %v4112_v5 }
 0x33c   :  { %1116 = vmatprep.subr.bf16.mxu1 %v4117_v6 }
 0x33f   :  { %1117 = vmatpush1.bf16.msra.mxu1 %v4115_v9 }
 0x342   :  { %1119 = vmatmul.mubr.bf16.vlgmr.msra.gmra.mrb[8].mxu1 %v4785_v39 }
 0x3d5   :  { %v4789_v10 = vpop.f32.mrb[4].mxu1 }
 0x3d6   :  { %v4791_v14 = vpop.f32.mrb[5].mxu1  ;;  %v1163_v16 = vmul.f32 %v4789_v10, %v4789_v10 }
 0x3d7   :  { %v4793_v15 = vpop.f32.mrb[6].mxu1  ;;  %v1164_v21 = vmul.f32 %v4791_v14, %v4791_v14 }
 0x3d8   :  { %v1131_v18 = vadd.f32 %v4793_v15, %v4789_v10  ;;  %v1167_v19 = vmul.f32 %v4793_v15, %v4793_v15  ;;  %v4801_v20 = vpop.f32.mrb[7].mxu1 }
 0x3d9   :  { %v1138_v22 = vadd.f32 %v4801_v20, %v4791_v14  ;;  %v1168_v23 = vmul.f32 %v4801_v20, %v4801_v20 }
 0x3da   :  { %v1132_v24 = vrot.slane %v1131_v18, 4  ;;  %v1171_v25 = vadd.f32 %v1167_v19, %v1163_v16 }
 0x3db   :  { %v1139_v26 = vrot.slane %v1138_v22, 4  ;;  %v1178_v27 = vadd.f32 %v1168_v23, %v1164_v21 }
 0x3dc   :  { %v1133_v28 = vadd.f32 %v1132_v24, %v1131_v18  ;;  %v1172_v29 = vrot.slane %v1171_v25, 4 }
 0x3dd   :  { %v1140_v30 = vadd.f32 %v1139_v26, %v1138_v22  ;;  %v1179_v17 = vrot.slane %v1178_v27, 4 }
 0x3de   :  { %v1134_v31 = vrot.slane %v1133_v28, 2  ;;  %v1173_v11 = vadd.f32 %v1172_v29, %v1171_v25 }
 0x3df   :  { %v1141_v12 = vrot.slane %v1140_v30, 2  ;;  %v1180_v13 = vadd.f32 %v1179_v17, %v1178_v27 }
 0x3e0   :  { %v1135_v32 = vadd.f32 %v1134_v31, %v1133_v28  ;;  %v1174_v33 = vrot.slane %v1173_v11, 2 }
 0x3e1   :  { %v1142_v34 = vadd.f32 %v1141_v12, %v1140_v30  ;;  %v1181_v35 = vrot.slane %v1180_v13, 2 }
 0x3e2   :  { %v1136_v36 = vrot.slane %v1135_v32, 1  ;;  %v1175_v37 = vadd.f32 %v1174_v33, %v1173_v11 }
 0x3e3   :  { %v1143_v38 = vrot.slane %v1142_v34, 1  ;;  %v1182_v39 = vadd.f32 %v1181_v35, %v1180_v13 }
 0x3e4   :  { %v1137_v40 = vadd.f32 %v1136_v36, %v1135_v32  ;;  %v1176_v41 = vrot.slane %v1175_v37, 1 }
 0x3e5   :  { %v1144_v42 = vadd.f32 %v1143_v38, %v1142_v34  ;;  %v1183_v43 = vrot.slane %v1182_v39, 1 }
 0x3e6   :  { %v4809_v44 = vmul.f32 0.0625, %v1137_v40  ;;  %v1177_v45 = vadd.f32 %v1176_v41, %v1175_v37 }
 0x3e7   :  { %v4811_v46 = vmul.f32 0.0625, %v1144_v42  ;;  %v1184_v47 = vadd.f32 %v1183_v43, %v1182_v39 }
 0x3e8   :  { %v1199_v48 = vmul.f32 0.0625, %v1177_v45  ;;  %v1203_v49 = vmul.f32 %v4809_v44, %v4809_v44 }
 0x3e9   :  { %v1200_v50 = vmul.f32 0.0625, %v1184_v47  ;;  %v1204_v51 = vmul.f32 %v4811_v46, %v4811_v46 }
 0x3ea   :  { %v1207_v52 = vsub.f32 %v1199_v48, %v1203_v49 }
 0x3eb   :  { %v1208_v53 = vsub.f32 %v1200_v50, %v1204_v51 }
 0x3ec   :  { %v1211_v54 = vmax.f32 %v1207_v52, 0.0 }
 0x3ed   :  { %v1212_v55 = vmax.f32 %v1208_v53, 0.0 }
 0x3ee   :  { %v1215_v56 = vadd.f32 0.8, %v1211_v54 }
 0x3ef   :  { %v1216_v57 = vadd.f32 0.8, %v1212_v55 }
 0x3f0   :  { %4122 = vrsqrt.f32 %v1215_v56 }
 0x3f1   :  { %4124 = vrsqrt.f32 %v1216_v57 }
 0x3fa   :  { %v4123_v58 = vpop.eup %4122 }
 0x3fb   :  { %v4125_v59 = vpop.eup %4124 }
 0x3fc   :  { %v1227_v60 = vcombine.low %v4123_v58, %v4125_v59 }
 0x3fe   :  { %v1235_v58 = vrot.slane %v1227_v60, %v4765_v1 }
 0x415   :  { %v4817_v61 = vpop.f32.mrb[8].mxu1 }
 0x416   :  { %v4819_v62 = vpop.f32.mrb[9].mxu1  ;;  %v1165_v2 = vmul.f32 %v4817_v61, %v4817_v61 }
 0x417   :  { %v4821_v0 = vpop.f32.mrb[10].mxu1  ;;  %v1166_v6 = vmul.f32 %v4819_v62, %v4819_v62 }
 0x418   :  { %v1145_v3 = vadd.f32 %v4821_v0, %v4817_v61  ;;  %v1169_v4 = vmul.f32 %v4821_v0, %v4821_v0  ;;  %v4829_v5 = vpop.f32.mrb[11].mxu1 }
 0x419   :  { %v1152_v9 = vadd.f32 %v4829_v5, %v4819_v62  ;;  %v1170_v16 = vmul.f32 %v4829_v5, %v4829_v5 }
 0x41a   :  { %v1146_v18 = vrot.slane %v1145_v3, 4  ;;  %v1185_v19 = vadd.f32 %v1169_v4, %v1165_v2 }
 0x41b   :  { %v1153_v21 = vrot.slane %v1152_v9, 4  ;;  %v1192_v22 = vadd.f32 %v1170_v16, %v1166_v6  ;;  %v4841_v6 = vsub.s32 2, %v4762_v63 }
 0x41c   :  { %v1147_v23 = vadd.f32 %v1146_v18, %v1145_v3  ;;  %v1186_v24 = vrot.slane %v1185_v19, 4  ;;  %v1129_v3 = vld [vmem:[#allocation17] sm:$0xf] }
 0x41d   :  { %v1154_v25 = vadd.f32 %v1153_v21, %v1152_v9  ;;  %v1193_v26 = vrot.slane %v1192_v22, 4  ;;  %v4844_v9 = vsub.s32 3, %v4762_v63 }
 0x41e   :  { %v1148_v27 = vrot.slane %v1147_v23, 2  ;;  %v1187_v28 = vadd.f32 %v1186_v24, %v1185_v19 }
 0x41f   :  { %v1155_v29 = vrot.slane %v1154_v25, 2  ;;  %v1194_v30 = vadd.f32 %v1193_v26, %v1192_v22 }
 0x420   :  { %v1149_v17 = vadd.f32 %v1148_v27, %v1147_v23  ;;  %v1188_v31 = vrot.slane %v1187_v28, 2 }
 0x421   :  { %v1156_v11 = vadd.f32 %v1155_v29, %v1154_v25  ;;  %v1195_v12 = vrot.slane %v1194_v30, 2 }
 0x422   :  { %v1150_v13 = vrot.slane %v1149_v17, 1  ;;  %v1189_v32 = vadd.f32 %v1188_v31, %v1187_v28 }
 0x423   :  { %v1157_v33 = vrot.slane %v1156_v11, 1  ;;  %v1196_v34 = vadd.f32 %v1195_v12, %v1194_v30 }
 0x424   :  { %v1151_v35 = vadd.f32 %v1150_v13, %v1149_v17  ;;  %v1190_v36 = vrot.slane %v1189_v32, 1 }
 0x425   :  { %v1158_v37 = vadd.f32 %v1157_v33, %v1156_v11  ;;  %v1197_v38 = vrot.slane %v1196_v34, 1 }
 0x426   :  { %v1161_v39 = vmul.f32 0.0625, %v1151_v35  ;;  %v1191_v40 = vadd.f32 %v1190_v36, %v1189_v32 }
 0x427   :  { %v1162_v41 = vmul.f32 0.0625, %v1158_v37  ;;  %v1198_v42 = vadd.f32 %v1197_v38, %v1196_v34 }
 0x428   :  { %v1201_v43 = vmul.f32 0.0625, %v1191_v40  ;;  %v1205_v45 = vmul.f32 %v1161_v39, %v1161_v39 }
 0x429   :  { %v1202_v47 = vmul.f32 0.0625, %v1198_v42  ;;  %v1206_v48 = vmul.f32 %v1162_v41, %v1162_v41 }
 0x42a   :  { %v1209_v49 = vsub.f32 %v1201_v43, %v1205_v45 }
 0x42b   :  { %v1210_v50 = vsub.f32 %v1202_v47, %v1206_v48 }
 0x42c   :  { %v1213_v51 = vmax.f32 %v1209_v49, 0.0 }
 0x42d   :  { %v1214_v52 = vmax.f32 %v1210_v50, 0.0 }
 0x42e   :  { %v1217_v53 = vadd.f32 0.8, %v1213_v51 }
 0x42f   :  { %v1218_v54 = vadd.f32 0.8, %v1214_v52 }
 0x430   :  { %4126 = vrsqrt.f32 %v1217_v53 }
 0x431   :  { %4128 = vrsqrt.f32 %v1218_v54 }
 0x43a   :  { %v4127_v55 = vpop.eup %4126 }
 0x43b   :  { %v4129_v56 = vpop.eup %4128 }
 0x43c   :  { %v1228_v57 = vcombine.low %v4127_v55, %v4129_v56 }
 0x43e   :  { %v1242_v59 = vrot.slane %v1228_v57, %v4765_v1 }
 0x440   :  { %v1243_v2 = vcombine.low %v1235_v58, %v1242_v59 }
 0x442   :  { %v1250_v4 = vrot.slane %v1243_v2, %v4765_v1 }
 0x444   :  { %v1252_v16 = vmul.f32 %v1250_v4, %v1129_v3 }
 0x446   :  { %v1257_v18 = vrot.slane %v1252_v16, %v4770_v7  ;;  %v1261_v19 = vrot.slane %v1252_v16, %v4773_v8  ;;  %v1265_v21 = vrot.slane %v1252_v16, %v4841_v6  ;;  %v1269_v60 = vrot.slane %v1252_v16, %v4844_v9 }
 0x448   :  { %v1274_v22 = vmul.f32 %v1257_v18, %v4809_v44  ;;  %v1275_v23 = vmul.f32 %v1261_v19, %v4811_v46  ;;  %v1276_v24 = vmul.f32 %v1265_v21, %v1161_v39  ;;  %v1277_v25 = vmul.f32 %v1269_v60, %v1162_v41 }
 0x449   :  { %v1308_v26 = vmul.f32 %v1257_v18, %v4789_v10  ;;  %v1309_v27 = vmul.f32 %v1261_v19, %v4791_v14  ;;  %v1310_v28 = vmul.f32 %v1265_v21, %v4817_v61  ;;  %v1311_v29 = vmul.f32 %v1269_v60, %v4819_v62  ;;  %v1130_v14 = vld [vmem:[#allocation19] sm:$0xf] }
 0x44a   :  { %v1282_v30 = vcombine.low %v1274_v22, %v1275_v23  ;;  %v1283_v17 = vcombine.low %v1276_v24, %v1277_v25  ;;  %v1312_v31 = vmul.f32 %v1257_v18, %v4793_v15  ;;  %v1313_v11 = vmul.f32 %v1261_v19, %v4801_v20 }
 0x44b   :  { %v1314_v44 = vmul.f32 %v1265_v21, %v4821_v0  ;;  %v1315_v46 = vmul.f32 %v1269_v60, %v4829_v5 }
 0x44c   :  { %v1290_v12 = vrot.slane %v1282_v30, %v4765_v1  ;;  %v1297_v10 = vrot.slane %v1283_v17, %v4765_v1 }
 0x44e   :  { %v1298_v13 = vcombine.low %v1290_v12, %v1297_v10 }
 0x450   :  { %v1305_v61 = vrot.slane %v1298_v13, %v4765_v1 }
 0x452   :  { %v1307_v32 = vsub.f32 %v1130_v14, %v1305_v61 }
 0x454   :  { %v1320_v62 = vrot.slane %v1307_v32, %v4770_v7  ;;  %v1324_v33 = vrot.slane %v1307_v32, %v4773_v8  ;;  %v1328_v15 = vrot.slane %v1307_v32, %v4841_v6  ;;  %v1332_v20 = vrot.slane %v1307_v32, %v4844_v9 }
 0x456   :  { %v1337_v0 = vadd.f32 %v1320_v62, %v1308_v26  ;;  %v1338_v34 = vadd.f32 %v1324_v33, %v1309_v27  ;;  %v1339_v5 = vadd.f32 %v1328_v15, %v1310_v28  ;;  %v1340_v35 = vadd.f32 %v1332_v20, %v1311_v29 }
 0x457   :  { %v1341_v36 = vadd.f32 %v1320_v62, %v1312_v31  ;;  %v1342_v37 = vadd.f32 %v1324_v33, %v1313_v11  ;;  %v1343_v38 = vadd.f32 %v1328_v15, %v1314_v44  ;;  %v1344_v39 = vadd.f32 %v1332_v20, %v1315_v46 }
 0x458   :  { %vm1345_vm8 = vcmp.ge.f32.partialorder %v1337_v0, 0.0  ;;  %vm1346_vm9 = vcmp.ge.f32.partialorder %v1338_v34, 0.0  ;;  %vm1347_vm10 = vcmp.ge.f32.partialorder %v1339_v5, 0.0  ;;  %vm1348_vm11 = vcmp.ge.f32.partialorder %v1340_v35, 0.0 }
 0x459   :  { %vm1349_vm12 = vcmp.ge.f32.partialorder %v1341_v36, 0.0  ;;  %vm1350_vm13 = vcmp.ge.f32.partialorder %v1342_v37, 0.0  ;;  %vm1351_vm14 = vcmp.ge.f32.partialorder %v1343_v38, 0.0  ;;  %vm1352_vm15 = vcmp.ge.f32.partialorder %v1344_v39, 0.0 }
 0x45a   :  { %v1353_v40 = vmul.f32 0.2, %v1337_v0  ;;  %v1354_v41 = vmul.f32 0.2, %v1338_v34  ;;  %v1355_v42 = vmul.f32 0.2, %v1339_v5 }
 0x45b   :  { %v1356_v43 = vmul.f32 0.2, %v1340_v35  ;;  %v1357_v45 = vmul.f32 0.2, %v1341_v36  ;;  %v1358_v47 = vmul.f32 0.2, %v1342_v37 }
 0x45c   :  { %v1359_v48 = vmul.f32 0.2, %v1343_v38  ;;  %v1360_v49 = vmul.f32 0.2, %v1344_v39  ;;  %v4868_v50 = vsel %vm1345_vm8, %v1337_v0, %v1353_v40  ;;  %v1362_v51 = vsel %vm1346_vm9, %v1338_v34, %v1354_v41 }
 0x45d   :  { %v4872_v52 = vsel %vm1347_vm10, %v1339_v5, %v1355_v42  ;;  %v4875_v53 = vsel %vm1348_vm11, %v1340_v35, %v1356_v43  ;;  %v4878_v54 = vsel %vm1349_vm12, %v1341_v36, %v1357_v45  ;;  %v1366_v55 = vsel %vm1350_vm13, %v1342_v37, %v1358_v47 }
 0x45e   :  { %v4882_v56 = vsel %vm1351_vm14, %v1343_v38, %v1359_v48  ;;  %v4885_v57 = vsel %vm1352_vm15, %v1344_v39, %v1360_v49 }
 0x45f   :  { %4452 = dma.done.wait [#allocation5], 32768 }
 0x460   :  { %4453 = vsyncadd [#allocation5], 4294934528  ;;  %v4887_v58 = vpack.c.bf16 %v1366_v55, %v1362_v51  ;;  %v1374_v59 = vld [vmem:[#allocation3 + $0x8] sm:$0xff]  ;;  %v1376_v2 = vld [vmem:[#allocation3 + $0x18] sm:$0xff] }
 0x461   :  { %v1373_v3 = vld [vmem:[#allocation3] sm:$0xff]  ;;  %1633 = vmatprep.subr.bf16.mxu0 %v1374_v59  ;;  %1719 = vmatprep.subr.bf16.mxu1 %v1376_v2  ;;  %v1375_v4 = vld [vmem:[#allocation3 + $0x10] sm:$0xff]  ;;  %v1382_v16 = vld [vmem:[#allocation3 + $0x48] sm:$0xff] }
 0x462   :  { %1665 = vmatprep.mubr.bf16.mxu0 %v4887_v58  ;;  %1751 = vmatprep.mubr.bf16.mxu1 %v4887_v58  ;;  %v1384_v18 = vld [vmem:[#allocation3 + $0x58] sm:$0xff]  ;;  %v1381_v19 = vld [vmem:[#allocation3 + $0x40] sm:$0xff]  ;;  %v1383_v21 = vld [vmem:[#allocation3 + $0x50] sm:$0xff] }
 0x463   :  { %1634 = vmatpush1.bf16.msra.mxu0 %v1373_v3  ;;  %1720 = vmatpush1.bf16.msra.mxu1 %v1375_v4  ;;  %v1390_v60 = vld [vmem:[#allocation3 + $0x88] sm:$0xff]  ;;  %v1392_v22 = vld [vmem:[#allocation3 + $0x98] sm:$0xff]  ;;  %v1389_v23 = vld [vmem:[#allocation3 + $0x80] sm:$0xff] }
 0x464   :  { %1635 = vmatprep.subr.bf16.mxu0 %v1382_v16  ;;  %1721 = vmatprep.subr.bf16.mxu1 %v1384_v18  ;;  %v1391_v24 = vld [vmem:[#allocation3 + $0x90] sm:$0xff]  ;;  %v1398_v25 = vld [vmem:[#allocation3 + $0xc8] sm:$0xff]  ;;  %v1400_v26 = vld [vmem:[#allocation3 + $0xd8] sm:$0xff] }
 0x465   :  { %v1397_v27 = vld [vmem:[#allocation3 + $0xc0] sm:$0xff]  ;;  %v1399_v28 = vld [vmem:[#allocation3 + $0xd0] sm:$0xff]  ;;  %v1406_v29 = vld [vmem:[#allocation3 + $0x108] sm:$0xff] }
 0x466   :  { %v1408_v30 = vld [vmem:[#allocation3 + $0x118] sm:$0xff]  ;;  %v1405_v17 = vld [vmem:[#allocation3 + $0x100] sm:$0xff]  ;;  %v1407_v31 = vld [vmem:[#allocation3 + $0x110] sm:$0xff] }
 0x467   :  { %1636 = vmatpush1.bf16.msra.mxu0 %v1381_v19  ;;  %1722 = vmatpush1.bf16.msra.mxu1 %v1383_v21  ;;  %v1414_v11 = vld [vmem:[#allocation3 + $0x148] sm:$0xff]  ;;  %v1416_v44 = vld [vmem:[#allocation3 + $0x158] sm:$0xff]  ;;  %v1413_v46 = vld [vmem:[#allocation3 + $0x140] sm:$0xff] }
 0x468   :  { %1637 = vmatprep.subr.bf16.mxu0 %v1390_v60  ;;  %1723 = vmatprep.subr.bf16.mxu1 %v1392_v22  ;;  %v1415_v12 = vld [vmem:[#allocation3 + $0x150] sm:$0xff]  ;;  %v1422_v10 = vld [vmem:[#allocation3 + $0x188] sm:$0xff]  ;;  %v1424_v13 = vld [vmem:[#allocation3 + $0x198] sm:$0xff] }
 0x469   :  { %v1421_v14 = vld [vmem:[#allocation3 + $0x180] sm:$0xff]  ;;  %v1423_v61 = vld [vmem:[#allocation3 + $0x190] sm:$0xff]  ;;  %v1430_v32 = vld [vmem:[#allocation3 + $0x1c8] sm:$0xff] }
 0x46a   :  { %v1432_v62 = vld [vmem:[#allocation3 + $0x1d8] sm:$0xff]  ;;  %v1429_v33 = vld [vmem:[#allocation3 + $0x1c0] sm:$0xff]  ;;  %v1431_v15 = vld [vmem:[#allocation3 + $0x1d0] sm:$0xff] }
 0x46b   :  { %1638 = vmatpush1.bf16.msra.mxu0 %v1389_v23  ;;  %1724 = vmatpush1.bf16.msra.mxu1 %v1391_v24  ;;  %v1438_v20 = vld [vmem:[#allocation3 + $0x208] sm:$0xff]  ;;  %v1440_v0 = vld [vmem:[#allocation3 + $0x218] sm:$0xff]  ;;  %v1437_v34 = vld [vmem:[#allocation3 + $0x200] sm:$0xff] }
 0x46c   :  { %1639 = vmatprep.subr.bf16.mxu0 %v1398_v25  ;;  %1725 = vmatprep.subr.bf16.mxu1 %v1400_v26  ;;  %v1439_v5 = vld [vmem:[#allocation3 + $0x210] sm:$0xff]  ;;  %v1446_v35 = vld [vmem:[#allocation3 + $0x248] sm:$0xff]  ;;  %v1448_v36 = vld [vmem:[#allocation3 + $0x258] sm:$0xff] }
 0x46d   :  { %v1445_v37 = vld [vmem:[#allocation3 + $0x240] sm:$0xff]  ;;  %v1447_v38 = vld [vmem:[#allocation3 + $0x250] sm:$0xff]  ;;  %v1454_v39 = vld [vmem:[#allocation3 + $0x288] sm:$0xff] }
 0x46e   :  { %v1456_v40 = vld [vmem:[#allocation3 + $0x298] sm:$0xff]  ;;  %v1453_v41 = vld [vmem:[#allocation3 + $0x280] sm:$0xff]  ;;  %v1455_v42 = vld [vmem:[#allocation3 + $0x290] sm:$0xff] }
 0x46f   :  { %1640 = vmatpush1.bf16.msra.mxu0 %v1397_v27  ;;  %1726 = vmatpush1.bf16.msra.mxu1 %v1399_v28  ;;  %v1462_v43 = vld [vmem:[#allocation3 + $0x2c8] sm:$0xff]  ;;  %v1464_v45 = vld [vmem:[#allocation3 + $0x2d8] sm:$0xff]  ;;  %v1461_v47 = vld [vmem:[#allocation3 + $0x2c0] sm:$0xff]  ;;  %v4893_v28 = vpack.c.bf16 %v4878_v54, %v4868_v50 }
 0x470   :  { %1641 = vmatprep.subr.bf16.mxu0 %v1406_v29  ;;  %1727 = vmatprep.subr.bf16.mxu1 %v1408_v30  ;;  %v1463_v48 = vld [vmem:[#allocation3 + $0x2d0] sm:$0xff]  ;;  %v1470_v49 = vld [vmem:[#allocation3 + $0x308] sm:$0xff]  ;;  %v1472_v51 = vld [vmem:[#allocation3 + $0x318] sm:$0xff] }
 0x471   :  { %v1469_v55 = vld [vmem:[#allocation3 + $0x300] sm:$0xff]  ;;  %v1471_v59 = vld [vmem:[#allocation3 + $0x310] sm:$0xff]  ;;  %v1478_v2 = vld [vmem:[#allocation3 + $0x348] sm:$0xff] }
 0x472   :  { %v1480_v3 = vld [vmem:[#allocation3 + $0x358] sm:$0xff]  ;;  %v1477_v4 = vld [vmem:[#allocation3 + $0x340] sm:$0xff]  ;;  %v1479_v16 = vld [vmem:[#allocation3 + $0x350] sm:$0xff] }
 0x473   :  { %1642 = vmatpush1.bf16.msra.mxu0 %v1405_v17  ;;  %1728 = vmatpush1.bf16.msra.mxu1 %v1407_v31  ;;  %v1486_v18 = vld [vmem:[#allocation3 + $0x388] sm:$0xff]  ;;  %v1488_v19 = vld [vmem:[#allocation3 + $0x398] sm:$0xff]  ;;  %v1485_v21 = vld [vmem:[#allocation3 + $0x380] sm:$0xff] }
 0x474   :  { %1643 = vmatprep.subr.bf16.mxu0 %v1414_v11  ;;  %1729 = vmatprep.subr.bf16.mxu1 %v1416_v44  ;;  %v1487_v60 = vld [vmem:[#allocation3 + $0x390] sm:$0xff]  ;;  %v1494_v22 = vld [vmem:[#allocation3 + $0x3c8] sm:$0xff]  ;;  %v1496_v23 = vld [vmem:[#allocation3 + $0x3d8] sm:$0xff]  ;;  %v4897_v11 = vpack.c.bf16 %v4885_v57, %v4875_v53 }
 0x475   :  { %v1493_v24 = vld [vmem:[#allocation3 + $0x3c0] sm:$0xff]  ;;  %v1495_v25 = vld [vmem:[#allocation3 + $0x3d0] sm:$0xff]  ;;  %v1502_v26 = vld [vmem:[#allocation3 + $0x408] sm:$0xff] }
 0x476   :  { %v1504_v27 = vld [vmem:[#allocation3 + $0x418] sm:$0xff]  ;;  %v1501_v29 = vld [vmem:[#allocation3 + $0x400] sm:$0xff]  ;;  %v1503_v30 = vld [vmem:[#allocation3 + $0x410] sm:$0xff] }
 0x477   :  { %1644 = vmatpush1.bf16.msra.mxu0 %v1413_v46  ;;  %1730 = vmatpush1.bf16.msra.mxu1 %v1415_v12  ;;  %v1510_v17 = vld [vmem:[#allocation3 + $0x448] sm:$0xff]  ;;  %v1512_v31 = vld [vmem:[#allocation3 + $0x458] sm:$0xff]  ;;  %v1509_v50 = vld [vmem:[#allocation3 + $0x440] sm:$0xff] }
 0x478   :  { %1645 = vmatprep.subr.bf16.mxu0 %v1422_v10  ;;  %1731 = vmatprep.subr.bf16.mxu1 %v1424_v13  ;;  %v1511_v54 = vld [vmem:[#allocation3 + $0x450] sm:$0xff]  ;;  %v1518_v44 = vld [vmem:[#allocation3 + $0x488] sm:$0xff]  ;;  %v1520_v46 = vld [vmem:[#allocation3 + $0x498] sm:$0xff] }
 0x479   :  { %v1517_v53 = vld [vmem:[#allocation3 + $0x480] sm:$0xff]  ;;  %v1519_v57 = vld [vmem:[#allocation3 + $0x490] sm:$0xff]  ;;  %v1526_v12 = vld [vmem:[#allocation3 + $0x4c8] sm:$0xff] }
 0x47a   :  { %v1528_v10 = vld [vmem:[#allocation3 + $0x4d8] sm:$0xff]  ;;  %v1525_v13 = vld [vmem:[#allocation3 + $0x4c0] sm:$0xff] }
 0x47b   :  { %1646 = vmatpush1.bf16.msra.mxu0 %v1421_v14  ;;  %1732 = vmatpush1.bf16.msra.mxu1 %v1423_v61  ;;  %v1527_v14 = vld [vmem:[#allocation3 + $0x4d0] sm:$0xff]  ;;  %v1534_v61 = vld [vmem:[#allocation3 + $0x508] sm:$0xff] }
 0x47c   :  { %1647 = vmatprep.subr.bf16.mxu0 %v1430_v32  ;;  %1733 = vmatprep.subr.bf16.mxu1 %v1432_v62  ;;  %v1536_v32 = vld [vmem:[#allocation3 + $0x518] sm:$0xff]  ;;  %v1533_v62 = vld [vmem:[#allocation3 + $0x500] sm:$0xff] }
 0x47f   :  { %1648 = vmatpush1.bf16.msra.mxu0 %v1429_v33  ;;  %1734 = vmatpush1.bf16.msra.mxu1 %v1431_v15  ;;  %v1535_v33 = vld [vmem:[#allocation3 + $0x510] sm:$0xff]  ;;  %v1542_v15 = vld [vmem:[#allocation3 + $0x548] sm:$0xff] }
 0x480   :  { %1649 = vmatprep.subr.bf16.mxu0 %v1438_v20  ;;  %1735 = vmatprep.subr.bf16.mxu1 %v1440_v0  ;;  %v1544_v20 = vld [vmem:[#allocation3 + $0x558] sm:$0xff]  ;;  %v1541_v0 = vld [vmem:[#allocation3 + $0x540] sm:$0xff] }
 0x483   :  { %1650 = vmatpush1.bf16.msra.mxu0 %v1437_v34  ;;  %1736 = vmatpush1.bf16.msra.mxu1 %v1439_v5  ;;  %v1543_v34 = vld [vmem:[#allocation3 + $0x550] sm:$0xff]  ;;  %v1550_v5 = vld [vmem:[#allocation3 + $0x588] sm:$0xff] }
 0x484   :  { %1651 = vmatprep.subr.bf16.mxu0 %v1446_v35  ;;  %1737 = vmatprep.subr.bf16.mxu1 %v1448_v36  ;;  %v1552_v35 = vld [vmem:[#allocation3 + $0x598] sm:$0xff]  ;;  %v1549_v36 = vld [vmem:[#allocation3 + $0x580] sm:$0xff] }
 0x487   :  { %1652 = vmatpush1.bf16.msra.mxu0 %v1445_v37  ;;  %1738 = vmatpush1.bf16.msra.mxu1 %v1447_v38  ;;  %v1551_v37 = vld [vmem:[#allocation3 + $0x590] sm:$0xff]  ;;  %v1558_v38 = vld [vmem:[#allocation3 + $0x5c8] sm:$0xff] }
 0x488   :  { %1653 = vmatprep.subr.bf16.mxu0 %v1454_v39  ;;  %1739 = vmatprep.subr.bf16.mxu1 %v1456_v40  ;;  %v1560_v39 = vld [vmem:[#allocation3 + $0x5d8] sm:$0xff]  ;;  %v1557_v40 = vld [vmem:[#allocation3 + $0x5c0] sm:$0xff] }
 0x48b   :  { %1654 = vmatpush1.bf16.msra.mxu0 %v1453_v41  ;;  %1740 = vmatpush1.bf16.msra.mxu1 %v1455_v42  ;;  %v1559_v41 = vld [vmem:[#allocation3 + $0x5d0] sm:$0xff]  ;;  %v1566_v42 = vld [vmem:[#allocation3 + $0x608] sm:$0xff] }
 0x48c   :  { %1655 = vmatprep.subr.bf16.mxu0 %v1462_v43  ;;  %1741 = vmatprep.subr.bf16.mxu1 %v1464_v45  ;;  %v1568_v43 = vld [vmem:[#allocation3 + $0x618] sm:$0xff]  ;;  %v1565_v45 = vld [vmem:[#allocation3 + $0x600] sm:$0xff] }
 0x48f   :  { %1656 = vmatpush1.bf16.msra.mxu0 %v1461_v47  ;;  %1742 = vmatpush1.bf16.msra.mxu1 %v1463_v48  ;;  %v1567_v47 = vld [vmem:[#allocation3 + $0x610] sm:$0xff]  ;;  %v1574_v48 = vld [vmem:[#allocation3 + $0x648] sm:$0xff] }
 0x490   :  { %1657 = vmatprep.subr.bf16.mxu0 %v1470_v49  ;;  %1743 = vmatprep.subr.bf16.mxu1 %v1472_v51  ;;  %v1576_v49 = vld [vmem:[#allocation3 + $0x658] sm:$0xff]  ;;  %v1573_v51 = vld [vmem:[#allocation3 + $0x640] sm:$0xff] }
 0x493   :  { %1658 = vmatpush1.bf16.msra.mxu0 %v1469_v55  ;;  %1744 = vmatpush1.bf16.msra.mxu1 %v1471_v59  ;;  %v1575_v55 = vld [vmem:[#allocation3 + $0x650] sm:$0xff]  ;;  %v1582_v59 = vld [vmem:[#allocation3 + $0x688] sm:$0xff] }
 0x494   :  { %1659 = vmatprep.subr.bf16.mxu0 %v1478_v2  ;;  %1745 = vmatprep.subr.bf16.mxu1 %v1480_v3  ;;  %v1584_v2 = vld [vmem:[#allocation3 + $0x698] sm:$0xff]  ;;  %v1581_v3 = vld [vmem:[#allocation3 + $0x680] sm:$0xff] }
 0x497   :  { %1660 = vmatpush1.bf16.msra.mxu0 %v1477_v4  ;;  %1746 = vmatpush1.bf16.msra.mxu1 %v1479_v16  ;;  %v1583_v4 = vld [vmem:[#allocation3 + $0x690] sm:$0xff]  ;;  %v1590_v16 = vld [vmem:[#allocation3 + $0x6c8] sm:$0xff] }
 0x498   :  { %1661 = vmatprep.subr.bf16.mxu0 %v1486_v18  ;;  %1747 = vmatprep.subr.bf16.mxu1 %v1488_v19  ;;  %v1592_v18 = vld [vmem:[#allocation3 + $0x6d8] sm:$0xff]  ;;  %v1589_v19 = vld [vmem:[#allocation3 + $0x6c0] sm:$0xff] }
 0x49b   :  { %1662 = vmatpush1.bf16.msra.mxu0 %v1485_v21  ;;  %1748 = vmatpush1.bf16.msra.mxu1 %v1487_v60  ;;  %v1591_v21 = vld [vmem:[#allocation3 + $0x6d0] sm:$0xff]  ;;  %v1598_v60 = vld [vmem:[#allocation3 + $0x708] sm:$0xff] }
 0x49c   :  { %1663 = vmatprep.subr.bf16.mxu0 %v1494_v22  ;;  %1749 = vmatprep.subr.bf16.mxu1 %v1496_v23  ;;  %v1600_v22 = vld [vmem:[#allocation3 + $0x718] sm:$0xff]  ;;  %v1597_v23 = vld [vmem:[#allocation3 + $0x700] sm:$0xff] }
 0x49f   :  { %1664 = vmatpush1.bf16.msra.mxu0 %v1493_v24  ;;  %1750 = vmatpush1.bf16.msra.mxu1 %v1495_v25  ;;  %v1599_v24 = vld [vmem:[#allocation3 + $0x710] sm:$0xff]  ;;  %v1606_v25 = vld [vmem:[#allocation3 + $0x748] sm:$0xff] }
 0x4a0   :  { %1676 = vmatprep.subr.bf16.mxu0 %v1502_v26  ;;  %1762 = vmatprep.subr.bf16.mxu1 %v1504_v27  ;;  %v1608_v26 = vld [vmem:[#allocation3 + $0x758] sm:$0xff]  ;;  %v1605_v27 = vld [vmem:[#allocation3 + $0x740] sm:$0xff] }
 0x4a2   :  { %1666 = vmatmul.mubr.bf16.vlgmr.msra.gmra.mrb[4].mxu0 %v4893_v28  ;;  %1752 = vmatmul.mubr.bf16.vlgmr.msra.gmra.mrb[12].mxu1 %v4893_v28 }
 0x4a3   :  { %1677 = vmatpush1.bf16.msra.mxu0 %v1501_v29  ;;  %1763 = vmatpush1.bf16.msra.mxu1 %v1503_v30  ;;  %v1607_v29 = vld [vmem:[#allocation3 + $0x750] sm:$0xff]  ;;  %v1614_v30 = vld [vmem:[#allocation3 + $0x788] sm:$0xff] }
 0x4a4   :  { %1678 = vmatprep.subr.bf16.mxu0 %v1510_v17  ;;  %1764 = vmatprep.subr.bf16.mxu1 %v1512_v31  ;;  %v1616_v17 = vld [vmem:[#allocation3 + $0x798] sm:$0xff]  ;;  %v1613_v31 = vld [vmem:[#allocation3 + $0x780] sm:$0xff] }
 0x4a5   :  { %1708 = vmatprep.mubr.bf16.mxu0 %v4897_v11  ;;  %1794 = vmatprep.mubr.bf16.mxu1 %v4897_v11 }
 0x4a7   :  { %1679 = vmatpush1.bf16.msra.mxu0 %v1509_v50  ;;  %1765 = vmatpush1.bf16.msra.mxu1 %v1511_v54  ;;  %v1615_v50 = vld [vmem:[#allocation3 + $0x790] sm:$0xff]  ;;  %v1622_v54 = vld [vmem:[#allocation3 + $0x7c8] sm:$0xff] }
 0x4a8   :  { %1680 = vmatprep.subr.bf16.mxu0 %v1518_v44  ;;  %1766 = vmatprep.subr.bf16.mxu1 %v1520_v46  ;;  %v1624_v44 = vld [vmem:[#allocation3 + $0x7d8] sm:$0xff]  ;;  %v1621_v46 = vld [vmem:[#allocation3 + $0x7c0] sm:$0xff] }
 0x4ab   :  { %1681 = vmatpush1.bf16.msra.mxu0 %v1517_v53  ;;  %1767 = vmatpush1.bf16.msra.mxu1 %v1519_v57  ;;  %v1623_v53 = vld [vmem:[#allocation3 + $0x7d0] sm:$0xff]  ;;  %v1378_v57 = vld [vmem:[#allocation3 + $0x28] sm:$0xff] }
 0x4ac   :  { %1682 = vmatprep.subr.bf16.mxu0 %v1526_v12  ;;  %1768 = vmatprep.subr.bf16.mxu1 %v1528_v10  ;;  %v1380_v12 = vld [vmem:[#allocation3 + $0x38] sm:$0xff]  ;;  %v4905_v10 = vpack.c.bf16 %v4882_v56, %v4872_v52  ;;  %v1394_v52 = vld [vmem:[#allocation3 + $0xa8] sm:$0xff] }
 0x4ad   :  { %v1396_v56 = vld [vmem:[#allocation3 + $0xb8] sm:$0xff] }
 0x4af   :  { %1683 = vmatpush1.bf16.msra.mxu0 %v1525_v13  ;;  %1769 = vmatpush1.bf16.msra.mxu1 %v1527_v14  ;;  %v1377_v13 = vld [vmem:[#allocation3 + $0x20] sm:$0xff]  ;;  %v1379_v14 = vld [vmem:[#allocation3 + $0x30] sm:$0xff] }
 0x4b0   :  { %1684 = vmatprep.subr.bf16.mxu0 %v1534_v61  ;;  %1770 = vmatprep.subr.bf16.mxu1 %v1536_v32  ;;  %v1386_v61 = vld [vmem:[#allocation3 + $0x68] sm:$0xff]  ;;  %v1388_v32 = vld [vmem:[#allocation3 + $0x78] sm:$0xff] }
 0x4b3   :  { %1685 = vmatpush1.bf16.msra.mxu0 %v1533_v62  ;;  %1771 = vmatpush1.bf16.msra.mxu1 %v1535_v33  ;;  %v1385_v62 = vld [vmem:[#allocation3 + $0x60] sm:$0xff]  ;;  %v1387_v33 = vld [vmem:[#allocation3 + $0x70] sm:$0xff] }
 0x4b4   :  { %1686 = vmatprep.subr.bf16.mxu0 %v1542_v15  ;;  %1772 = vmatprep.subr.bf16.mxu1 %v1544_v20  ;;  %v1393_v15 = vld [vmem:[#allocation3 + $0xa0] sm:$0xff]  ;;  %v1395_v20 = vld [vmem:[#allocation3 + $0xb0] sm:$0xff] }
 0x4b7   :  { %1687 = vmatpush1.bf16.msra.mxu0 %v1541_v0  ;;  %1773 = vmatpush1.bf16.msra.mxu1 %v1543_v34  ;;  %v1402_v0 = vld [vmem:[#allocation3 + $0xe8] sm:$0xff]  ;;  %v1404_v34 = vld [vmem:[#allocation3 + $0xf8] sm:$0xff] }
 0x4b8   :  { %1688 = vmatprep.subr.bf16.mxu0 %v1550_v5  ;;  %1774 = vmatprep.subr.bf16.mxu1 %v1552_v35  ;;  %v1401_v5 = vld [vmem:[#allocation3 + $0xe0] sm:$0xff]  ;;  %v1403_v35 = vld [vmem:[#allocation3 + $0xf0] sm:$0xff] }
 0x4bb   :  { %1689 = vmatpush1.bf16.msra.mxu0 %v1549_v36  ;;  %1775 = vmatpush1.bf16.msra.mxu1 %v1551_v37  ;;  %v1410_v36 = vld [vmem:[#allocation3 + $0x128] sm:$0xff]  ;;  %v1412_v37 = vld [vmem:[#allocation3 + $0x138] sm:$0xff] }
 0x4bc   :  { %1690 = vmatprep.subr.bf16.mxu0 %v1558_v38  ;;  %1776 = vmatprep.subr.bf16.mxu1 %v1560_v39  ;;  %v1411_v38 = vld [vmem:[#allocation3 + $0x130] sm:$0xff]  ;;  %v1418_v39 = vld [vmem:[#allocation3 + $0x168] sm:$0xff] }
 0x4bf   :  { %1691 = vmatpush1.bf16.msra.mxu0 %v1557_v40  ;;  %1777 = vmatpush1.bf16.msra.mxu1 %v1559_v41  ;;  %v1420_v40 = vld [vmem:[#allocation3 + $0x178] sm:$0xff]  ;;  %v1417_v41 = vld [vmem:[#allocation3 + $0x160] sm:$0xff] }
 0x4c0   :  { %1692 = vmatprep.subr.bf16.mxu0 %v1566_v42  ;;  %1778 = vmatprep.subr.bf16.mxu1 %v1568_v43  ;;  %v1419_v42 = vld [vmem:[#allocation3 + $0x170] sm:$0xff]  ;;  %v1426_v43 = vld [vmem:[#allocation3 + $0x1a8] sm:$0xff] }
 0x4c3   :  { %1693 = vmatpush1.bf16.msra.mxu0 %v1565_v45  ;;  %1779 = vmatpush1.bf16.msra.mxu1 %v1567_v47  ;;  %v1428_v45 = vld [vmem:[#allocation3 + $0x1b8] sm:$0xff]  ;;  %v1425_v47 = vld [vmem:[#allocation3 + $0x1a0] sm:$0xff] }
 0x4c4   :  { %1694 = vmatprep.subr.bf16.mxu0 %v1574_v48  ;;  %1780 = vmatprep.subr.bf16.mxu1 %v1576_v49  ;;  %v1427_v48 = vld [vmem:[#allocation3 + $0x1b0] sm:$0xff]  ;;  %v1434_v49 = vld [vmem:[#allocation3 + $0x1e8] sm:$0xff] }
 0x4c7   :  { %1695 = vmatpush1.bf16.msra.mxu0 %v1573_v51  ;;  %1781 = vmatpush1.bf16.msra.mxu1 %v1575_v55  ;;  %v1436_v51 = vld [vmem:[#allocation3 + $0x1f8] sm:$0xff]  ;;  %v1433_v55 = vld [vmem:[#allocation3 + $0x1e0] sm:$0xff] }
 0x4c8   :  { %1696 = vmatprep.subr.bf16.mxu0 %v1582_v59  ;;  %1782 = vmatprep.subr.bf16.mxu1 %v1584_v2  ;;  %v1435_v59 = vld [vmem:[#allocation3 + $0x1f0] sm:$0xff]  ;;  %v1442_v2 = vld [vmem:[#allocation3 + $0x228] sm:$0xff] }
 0x4cb   :  { %1697 = vmatpush1.bf16.msra.mxu0 %v1581_v3  ;;  %1783 = vmatpush1.bf16.msra.mxu1 %v1583_v4  ;;  %v1444_v3 = vld [vmem:[#allocation3 + $0x238] sm:$0xff]  ;;  %v1441_v4 = vld [vmem:[#allocation3 + $0x220] sm:$0xff] }
 0x4cc   :  { %1698 = vmatprep.subr.bf16.mxu0 %v1590_v16  ;;  %1784 = vmatprep.subr.bf16.mxu1 %v1592_v18  ;;  %v1443_v16 = vld [vmem:[#allocation3 + $0x230] sm:$0xff]  ;;  %v1450_v18 = vld [vmem:[#allocation3 + $0x268] sm:$0xff] }
 0x4cf   :  { %1699 = vmatpush1.bf16.msra.mxu0 %v1589_v19  ;;  %1785 = vmatpush1.bf16.msra.mxu1 %v1591_v21  ;;  %v1452_v19 = vld [vmem:[#allocation3 + $0x278] sm:$0xff]  ;;  %v1449_v21 = vld [vmem:[#allocation3 + $0x260] sm:$0xff] }
 0x4d0   :  { %1700 = vmatprep.subr.bf16.mxu0 %v1598_v60  ;;  %1786 = vmatprep.subr.bf16.mxu1 %v1600_v22  ;;  %v1451_v60 = vld [vmem:[#allocation3 + $0x270] sm:$0xff]  ;;  %v1458_v22 = vld [vmem:[#allocation3 + $0x2a8] sm:$0xff] }
 0x4d3   :  { %1701 = vmatpush1.bf16.msra.mxu0 %v1597_v23  ;;  %1787 = vmatpush1.bf16.msra.mxu1 %v1599_v24  ;;  %v1460_v23 = vld [vmem:[#allocation3 + $0x2b8] sm:$0xff]  ;;  %v1457_v24 = vld [vmem:[#allocation3 + $0x2a0] sm:$0xff] }
 0x4d4   :  { %1702 = vmatprep.subr.bf16.mxu0 %v1606_v25  ;;  %1788 = vmatprep.subr.bf16.mxu1 %v1608_v26  ;;  %v1459_v25 = vld [vmem:[#allocation3 + $0x2b0] sm:$0xff]  ;;  %v1466_v26 = vld [vmem:[#allocation3 + $0x2e8] sm:$0xff] }
 0x4d7   :  { %1703 = vmatpush1.bf16.msra.mxu0 %v1605_v27  ;;  %1789 = vmatpush1.bf16.msra.mxu1 %v1607_v29  ;;  %v1468_v27 = vld [vmem:[#allocation3 + $0x2f8] sm:$0xff]  ;;  %v1465_v29 = vld [vmem:[#allocation3 + $0x2e0] sm:$0xff] }
 0x4d8   :  { %1704 = vmatprep.subr.bf16.mxu0 %v1614_v30  ;;  %1790 = vmatprep.subr.bf16.mxu1 %v1616_v17  ;;  %v1467_v30 = vld [vmem:[#allocation3 + $0x2f0] sm:$0xff]  ;;  %v1474_v17 = vld [vmem:[#allocation3 + $0x328] sm:$0xff] }
 0x4db   :  { %1705 = vmatpush1.bf16.msra.mxu0 %v1613_v31  ;;  %1791 = vmatpush1.bf16.msra.mxu1 %v1615_v50  ;;  %v1476_v31 = vld [vmem:[#allocation3 + $0x338] sm:$0xff]  ;;  %v1473_v50 = vld [vmem:[#allocation3 + $0x320] sm:$0xff] }
 0x4dc   :  { %1706 = vmatprep.subr.bf16.mxu0 %v1622_v54  ;;  %1792 = vmatprep.subr.bf16.mxu1 %v1624_v44  ;;  %v1475_v54 = vld [vmem:[#allocation3 + $0x330] sm:$0xff]  ;;  %v1482_v44 = vld [vmem:[#allocation3 + $0x368] sm:$0xff] }
 0x4df   :  { %1707 = vmatpush1.bf16.msra.mxu0 %v1621_v46  ;;  %1793 = vmatpush1.bf16.msra.mxu1 %v1623_v53  ;;  %v1484_v46 = vld [vmem:[#allocation3 + $0x378] sm:$0xff]  ;;  %v1481_v53 = vld [vmem:[#allocation3 + $0x360] sm:$0xff] }
 0x4e0   :  { %1805 = vmatprep.subr.bf16.mxu0 %v1378_v57  ;;  %1891 = vmatprep.subr.bf16.mxu1 %v1380_v12  ;;  %v1483_v57 = vld [vmem:[#allocation3 + $0x370] sm:$0xff]  ;;  %v1490_v12 = vld [vmem:[#allocation3 + $0x3a8] sm:$0xff] }
 0x4e2   :  { %1709 = vmatmul.mubr.bf16.vlgmr.msra.gmra.mrb[4].mxu0 %v4905_v10  ;;  %1795 = vmatmul.mubr.bf16.vlgmr.msra.gmra.mrb[12].mxu1 %v4905_v10 }
 0x4e3   :  { %1806 = vmatpush1.bf16.msra.mxu0 %v1377_v13  ;;  %1892 = vmatpush1.bf16.msra.mxu1 %v1379_v14  ;;  %v1492_v13 = vld [vmem:[#allocation3 + $0x3b8] sm:$0xff]  ;;  %v1489_v14 = vld [vmem:[#allocation3 + $0x3a0] sm:$0xff] }
 0x4e4   :  { %1807 = vmatprep.subr.bf16.mxu0 %v1386_v61  ;;  %1893 = vmatprep.subr.bf16.mxu1 %v1388_v32  ;;  %v1491_v61 = vld [vmem:[#allocation3 + $0x3b0] sm:$0xff]  ;;  %v1498_v32 = vld [vmem:[#allocation3 + $0x3e8] sm:$0xff] }
 0x4e5   :  { %1837 = vmatprep.mubr.bf16.mxu0 %v4887_v58  ;;  %1923 = vmatprep.mubr.bf16.mxu1 %v4887_v58  ;;  %v1409_v58 = vld [vmem:[#allocation3 + $0x120] sm:$0xff] }
 0x4e7   :  { %1808 = vmatpush1.bf16.msra.mxu0 %v1385_v62  ;;  %1894 = vmatpush1.bf16.msra.mxu1 %v1387_v33  ;;  %v1500_v62 = vld [vmem:[#allocation3 + $0x3f8] sm:$0xff]  ;;  %v1497_v33 = vld [vmem:[#allocation3 + $0x3e0] sm:$0xff] }
 0x4e8   :  { %1809 = vmatprep.subr.bf16.mxu0 %v1394_v52  ;;  %1895 = vmatprep.subr.bf16.mxu1 %v1396_v56  ;;  %v1499_v52 = vld [vmem:[#allocation3 + $0x3f0] sm:$0xff]  ;;  %v1506_v56 = vld [vmem:[#allocation3 + $0x428] sm:$0xff] }
 0x4eb   :  { %1810 = vmatpush1.bf16.msra.mxu0 %v1393_v15  ;;  %1896 = vmatpush1.bf16.msra.mxu1 %v1395_v20  ;;  %v1508_v15 = vld [vmem:[#allocation3 + $0x438] sm:$0xff]  ;;  %v1505_v20 = vld [vmem:[#allocation3 + $0x420] sm:$0xff] }
 0x4ec   :  { %1811 = vmatprep.subr.bf16.mxu0 %v1402_v0  ;;  %1897 = vmatprep.subr.bf16.mxu1 %v1404_v34  ;;  %v1507_v0 = vld [vmem:[#allocation3 + $0x430] sm:$0xff]  ;;  %v1514_v34 = vld [vmem:[#allocation3 + $0x468] sm:$0xff] }
 0x4ef   :  { %1812 = vmatpush1.bf16.msra.mxu0 %v1401_v5  ;;  %1898 = vmatpush1.bf16.msra.mxu1 %v1403_v35  ;;  %v1516_v5 = vld [vmem:[#allocation3 + $0x478] sm:$0xff]  ;;  %v1513_v35 = vld [vmem:[#allocation3 + $0x460] sm:$0xff] }
 0x4f0   :  { %1813 = vmatprep.subr.bf16.mxu0 %v1410_v36  ;;  %1899 = vmatprep.subr.bf16.mxu1 %v1412_v37  ;;  %v1515_v36 = vld [vmem:[#allocation3 + $0x470] sm:$0xff]  ;;  %v1522_v37 = vld [vmem:[#allocation3 + $0x4a8] sm:$0xff] }
 0x4f3   :  { %1814 = vmatpush1.bf16.msra.mxu0 %v1409_v58  ;;  %1900 = vmatpush1.bf16.msra.mxu1 %v1411_v38  ;;  %v1524_v58 = vld [vmem:[#allocation3 + $0x4b8] sm:$0xff]  ;;  %v1521_v38 = vld [vmem:[#allocation3 + $0x4a0] sm:$0xff] }
 0x4f4   :  { %1815 = vmatprep.subr.bf16.mxu0 %v1418_v39  ;;  %1901 = vmatprep.subr.bf16.mxu1 %v1420_v40  ;;  %v1523_v39 = vld [vmem:[#allocation3 + $0x4b0] sm:$0xff]  ;;  %v1530_v40 = vld [vmem:[#allocation3 + $0x4e8] sm:$0xff] }
 0x4f7   :  { %1816 = vmatpush1.bf16.msra.mxu0 %v1417_v41  ;;  %1902 = vmatpush1.bf16.msra.mxu1 %v1419_v42  ;;  %v1529_v41 = vld [vmem:[#allocation3 + $0x4e0] sm:$0xff]  ;;  %v1531_v42 = vld [vmem:[#allocation3 + $0x4f0] sm:$0xff] }
 0x4f8   :  { %1817 = vmatprep.subr.bf16.mxu0 %v1426_v43  ;;  %1903 = vmatprep.subr.bf16.mxu1 %v1428_v45  ;;  %v1538_v43 = vld [vmem:[#allocation3 + $0x528] sm:$0xff]  ;;  %v1540_v45 = vld [vmem:[#allocation3 + $0x538] sm:$0xff] }
 0x4fb   :  { %1818 = vmatpush1.bf16.msra.mxu0 %v1425_v47  ;;  %1904 = vmatpush1.bf16.msra.mxu1 %v1427_v48  ;;  %v1539_v47 = vld [vmem:[#allocation3 + $0x530] sm:$0xff]  ;;  %v1546_v48 = vld [vmem:[#allocation3 + $0x568] sm:$0xff] }
 0x4fc   :  { %1819 = vmatprep.subr.bf16.mxu0 %v1434_v49  ;;  %1905 = vmatprep.subr.bf16.mxu1 %v1436_v51  ;;  %v1548_v49 = vld [vmem:[#allocation3 + $0x578] sm:$0xff]  ;;  %v1545_v51 = vld [vmem:[#allocation3 + $0x560] sm:$0xff] }
 0x4ff   :  { %1820 = vmatpush1.bf16.msra.mxu0 %v1433_v55  ;;  %1906 = vmatpush1.bf16.msra.mxu1 %v1435_v59  ;;  %v1547_v55 = vld [vmem:[#allocation3 + $0x570] sm:$0xff]  ;;  %v1554_v59 = vld [vmem:[#allocation3 + $0x5a8] sm:$0xff] }
 0x500   :  { %1821 = vmatprep.subr.bf16.mxu0 %v1442_v2  ;;  %1907 = vmatprep.subr.bf16.mxu1 %v1444_v3  ;;  %v1556_v2 = vld [vmem:[#allocation3 + $0x5b8] sm:$0xff]  ;;  %v1553_v3 = vld [vmem:[#allocation3 + $0x5a0] sm:$0xff] }
 0x503   :  { %1822 = vmatpush1.bf16.msra.mxu0 %v1441_v4  ;;  %1908 = vmatpush1.bf16.msra.mxu1 %v1443_v16  ;;  %v1555_v4 = vld [vmem:[#allocation3 + $0x5b0] sm:$0xff]  ;;  %v1562_v16 = vld [vmem:[#allocation3 + $0x5e8] sm:$0xff] }
 0x504   :  { %1823 = vmatprep.subr.bf16.mxu0 %v1450_v18  ;;  %1909 = vmatprep.subr.bf16.mxu1 %v1452_v19  ;;  %v1564_v18 = vld [vmem:[#allocation3 + $0x5f8] sm:$0xff]  ;;  %v1561_v19 = vld [vmem:[#allocation3 + $0x5e0] sm:$0xff] }
 0x507   :  { %1824 = vmatpush1.bf16.msra.mxu0 %v1449_v21  ;;  %1910 = vmatpush1.bf16.msra.mxu1 %v1451_v60  ;;  %v1563_v21 = vld [vmem:[#allocation3 + $0x5f0] sm:$0xff]  ;;  %v1570_v60 = vld [vmem:[#allocation3 + $0x628] sm:$0xff] }
 0x508   :  { %1825 = vmatprep.subr.bf16.mxu0 %v1458_v22  ;;  %1911 = vmatprep.subr.bf16.mxu1 %v1460_v23  ;;  %v1572_v22 = vld [vmem:[#allocation3 + $0x638] sm:$0xff]  ;;  %v1569_v23 = vld [vmem:[#allocation3 + $0x620] sm:$0xff] }
 0x50b   :  { %1826 = vmatpush1.bf16.msra.mxu0 %v1457_v24  ;;  %1912 = vmatpush1.bf16.msra.mxu1 %v1459_v25  ;;  %v1571_v24 = vld [vmem:[#allocation3 + $0x630] sm:$0xff]  ;;  %v1578_v25 = vld [vmem:[#allocation3 + $0x668] sm:$0xff] }
 0x50c   :  { %1827 = vmatprep.subr.bf16.mxu0 %v1466_v26  ;;  %1913 = vmatprep.subr.bf16.mxu1 %v1468_v27  ;;  %v1580_v26 = vld [vmem:[#allocation3 + $0x678] sm:$0xff]  ;;  %v1577_v27 = vld [vmem:[#allocation3 + $0x660] sm:$0xff] }
 0x50f   :  { %1828 = vmatpush1.bf16.msra.mxu0 %v1465_v29  ;;  %1914 = vmatpush1.bf16.msra.mxu1 %v1467_v30  ;;  %v1579_v29 = vld [vmem:[#allocation3 + $0x670] sm:$0xff]  ;;  %v1586_v30 = vld [vmem:[#allocation3 + $0x6a8] sm:$0xff] }
 0x510   :  { %1829 = vmatprep.subr.bf16.mxu0 %v1474_v17  ;;  %1915 = vmatprep.subr.bf16.mxu1 %v1476_v31  ;;  %v1588_v17 = vld [vmem:[#allocation3 + $0x6b8] sm:$0xff]  ;;  %v1585_v31 = vld [vmem:[#allocation3 + $0x6a0] sm:$0xff] }
 0x513   :  { %1830 = vmatpush1.bf16.msra.mxu0 %v1473_v50  ;;  %1916 = vmatpush1.bf16.msra.mxu1 %v1475_v54  ;;  %v1587_v50 = vld [vmem:[#allocation3 + $0x6b0] sm:$0xff]  ;;  %v1594_v54 = vld [vmem:[#allocation3 + $0x6e8] sm:$0xff] }
 0x514   :  { %1831 = vmatprep.subr.bf16.mxu0 %v1482_v44  ;;  %1917 = vmatprep.subr.bf16.mxu1 %v1484_v46  ;;  %v1596_v44 = vld [vmem:[#allocation3 + $0x6f8] sm:$0xff]  ;;  %v1593_v46 = vld [vmem:[#allocation3 + $0x6e0] sm:$0xff] }
 0x517   :  { %1832 = vmatpush1.bf16.msra.mxu0 %v1481_v53  ;;  %1918 = vmatpush1.bf16.msra.mxu1 %v1483_v57  ;;  %v1595_v53 = vld [vmem:[#allocation3 + $0x6f0] sm:$0xff]  ;;  %v1602_v57 = vld [vmem:[#allocation3 + $0x728] sm:$0xff] }
 0x518   :  { %1833 = vmatprep.subr.bf16.mxu0 %v1490_v12  ;;  %1919 = vmatprep.subr.bf16.mxu1 %v1492_v13  ;;  %v1604_v12 = vld [vmem:[#allocation3 + $0x738] sm:$0xff]  ;;  %v1601_v13 = vld [vmem:[#allocation3 + $0x720] sm:$0xff] }
 0x51b   :  { %1834 = vmatpush1.bf16.msra.mxu0 %v1489_v14  ;;  %1920 = vmatpush1.bf16.msra.mxu1 %v1491_v61  ;;  %v1603_v14 = vld [vmem:[#allocation3 + $0x730] sm:$0xff]  ;;  %v1610_v61 = vld [vmem:[#allocation3 + $0x768] sm:$0xff] }
 0x51c   :  { %1835 = vmatprep.subr.bf16.mxu0 %v1498_v32  ;;  %1921 = vmatprep.subr.bf16.mxu1 %v1500_v62  ;;  %v1612_v32 = vld [vmem:[#allocation3 + $0x778] sm:$0xff]  ;;  %v1609_v62 = vld [vmem:[#allocation3 + $0x760] sm:$0xff] }
 0x51f   :  { %1836 = vmatpush1.bf16.msra.mxu0 %v1497_v33  ;;  %1922 = vmatpush1.bf16.msra.mxu1 %v1499_v52  ;;  %v1611_v33 = vld [vmem:[#allocation3 + $0x770] sm:$0xff]  ;;  %v1618_v52 = vld [vmem:[#allocation3 + $0x7a8] sm:$0xff] }
 0x520   :  { %1848 = vmatprep.subr.bf16.mxu0 %v1506_v56  ;;  %1934 = vmatprep.subr.bf16.mxu1 %v1508_v15  ;;  %v1620_v56 = vld [vmem:[#allocation3 + $0x7b8] sm:$0xff]  ;;  %v1617_v15 = vld [vmem:[#allocation3 + $0x7a0] sm:$0xff] }
 0x522   :  { %1838 = vmatmul.mubr.bf16.vlgmr.msra.gmra.mrb[8].mxu0 %v4893_v28  ;;  %1924 = vmatmul.mubr.bf16.vlgmr.msra.gmra.mrb[16].mxu1 %v4893_v28  ;;  %v1532_v28 = vld [vmem:[#allocation3 + $0x4f8] sm:$0xff] }
 0x523   :  { %1849 = vmatpush1.bf16.msra.mxu0 %v1505_v20  ;;  %1935 = vmatpush1.bf16.msra.mxu1 %v1507_v0  ;;  %v1619_v20 = vld [vmem:[#allocation3 + $0x7b0] sm:$0xff]  ;;  %v1626_v0 = vld [vmem:[#allocation3 + $0x7e8] sm:$0xff] }
 0x524   :  { %1850 = vmatprep.subr.bf16.mxu0 %v1514_v34  ;;  %1936 = vmatprep.subr.bf16.mxu1 %v1516_v5  ;;  %v1628_v34 = vld [vmem:[#allocation3 + $0x7f8] sm:$0xff]  ;;  %v1625_v5 = vld [vmem:[#allocation3 + $0x7e0] sm:$0xff] }
 0x525   :  { %1880 = vmatprep.mubr.bf16.mxu0 %v4897_v11  ;;  %1966 = vmatprep.mubr.bf16.mxu1 %v4897_v11  ;;  %v1537_v11 = vld [vmem:[#allocation3 + $0x520] sm:$0xff] }
 0x527   :  { %1851 = vmatpush1.bf16.msra.mxu0 %v1513_v35  ;;  %1937 = vmatpush1.bf16.msra.mxu1 %v1515_v36  ;;  %v1627_v35 = vld [vmem:[#allocation3 + $0x7f0] sm:$0xff] }
 0x528   :  { %1852 = vmatprep.subr.bf16.mxu0 %v1522_v37  ;;  %1938 = vmatprep.subr.bf16.mxu1 %v1524_v58 }
 0x52b   :  { %1853 = vmatpush1.bf16.msra.mxu0 %v1521_v38  ;;  %1939 = vmatpush1.bf16.msra.mxu1 %v1523_v39 }
 0x52c   :  { %1854 = vmatprep.subr.bf16.mxu0 %v1530_v40  ;;  %1940 = vmatprep.subr.bf16.mxu1 %v1532_v28 }
 0x52f   :  { %1855 = vmatpush1.bf16.msra.mxu0 %v1529_v41  ;;  %1941 = vmatpush1.bf16.msra.mxu1 %v1531_v42 }
 0x530   :  { %1856 = vmatprep.subr.bf16.mxu0 %v1538_v43  ;;  %1942 = vmatprep.subr.bf16.mxu1 %v1540_v45 }
 0x533   :  { %1857 = vmatpush1.bf16.msra.mxu0 %v1537_v11  ;;  %1943 = vmatpush1.bf16.msra.mxu1 %v1539_v47 }
 0x534   :  { %1858 = vmatprep.subr.bf16.mxu0 %v1546_v48  ;;  %1944 = vmatprep.subr.bf16.mxu1 %v1548_v49 }
 0x537   :  { %1859 = vmatpush1.bf16.msra.mxu0 %v1545_v51  ;;  %1945 = vmatpush1.bf16.msra.mxu1 %v1547_v55 }
 0x538   :  { %1860 = vmatprep.subr.bf16.mxu0 %v1554_v59  ;;  %1946 = vmatprep.subr.bf16.mxu1 %v1556_v2 }
 0x53b   :  { %1861 = vmatpush1.bf16.msra.mxu0 %v1553_v3  ;;  %1947 = vmatpush1.bf16.msra.mxu1 %v1555_v4 }
 0x53c   :  { %1862 = vmatprep.subr.bf16.mxu0 %v1562_v16  ;;  %1948 = vmatprep.subr.bf16.mxu1 %v1564_v18 }
 0x53f   :  { %1863 = vmatpush1.bf16.msra.mxu0 %v1561_v19  ;;  %1949 = vmatpush1.bf16.msra.mxu1 %v1563_v21 }
 0x540   :  { %1864 = vmatprep.subr.bf16.mxu0 %v1570_v60  ;;  %1950 = vmatprep.subr.bf16.mxu1 %v1572_v22 }
 0x543   :  { %1865 = vmatpush1.bf16.msra.mxu0 %v1569_v23  ;;  %1951 = vmatpush1.bf16.msra.mxu1 %v1571_v24 }
 0x544   :  { %1866 = vmatprep.subr.bf16.mxu0 %v1578_v25  ;;  %1952 = vmatprep.subr.bf16.mxu1 %v1580_v26 }
 0x547   :  { %1867 = vmatpush1.bf16.msra.mxu0 %v1577_v27  ;;  %1953 = vmatpush1.bf16.msra.mxu1 %v1579_v29 }
 0x548   :  { %1868 = vmatprep.subr.bf16.mxu0 %v1586_v30  ;;  %1954 = vmatprep.subr.bf16.mxu1 %v1588_v17 }
 0x54b   :  { %1869 = vmatpush1.bf16.msra.mxu0 %v1585_v31  ;;  %1955 = vmatpush1.bf16.msra.mxu1 %v1587_v50 }
 0x54c   :  { %1870 = vmatprep.subr.bf16.mxu0 %v1594_v54  ;;  %1956 = vmatprep.subr.bf16.mxu1 %v1596_v44 }
 0x54f   :  { %1871 = vmatpush1.bf16.msra.mxu0 %v1593_v46  ;;  %1957 = vmatpush1.bf16.msra.mxu1 %v1595_v53 }
 0x550   :  { %1872 = vmatprep.subr.bf16.mxu0 %v1602_v57  ;;  %1958 = vmatprep.subr.bf16.mxu1 %v1604_v12 }
 0x553   :  { %1873 = vmatpush1.bf16.msra.mxu0 %v1601_v13  ;;  %1959 = vmatpush1.bf16.msra.mxu1 %v1603_v14 }
 0x554   :  { %1874 = vmatprep.subr.bf16.mxu0 %v1610_v61  ;;  %1960 = vmatprep.subr.bf16.mxu1 %v1612_v32 }
 0x557   :  { %1875 = vmatpush1.bf16.msra.mxu0 %v1609_v62  ;;  %1961 = vmatpush1.bf16.msra.mxu1 %v1611_v33 }
 0x558   :  { %1876 = vmatprep.subr.bf16.mxu0 %v1618_v52  ;;  %1962 = vmatprep.subr.bf16.mxu1 %v1620_v56 }
 0x55b   :  { %1877 = vmatpush1.bf16.msra.mxu0 %v1617_v15  ;;  %1963 = vmatpush1.bf16.msra.mxu1 %v1619_v20 }
 0x55c   :  { %1878 = vmatprep.subr.bf16.mxu0 %v1626_v0  ;;  %1964 = vmatprep.subr.bf16.mxu1 %v1628_v34 }
 0x55f   :  { %1879 = vmatpush1.bf16.msra.mxu0 %v1625_v5  ;;  %1965 = vmatpush1.bf16.msra.mxu1 %v1627_v35 }
 0x562   :  { %1881 = vmatmul.mubr.bf16.vlgmr.msra.gmra.mrb[8].mxu0 %v4905_v10  ;;  %1967 = vmatmul.mubr.bf16.vlgmr.msra.gmra.mrb[16].mxu1 %v4905_v10 }
 0x5b5   :  { %v4917_v36 = vpop.f32.mrb[4].mxu0  ;;  %v4919_v37 = vpop.f32.mrb[12].mxu1 }
 0x5b6   :  { %v4921_v58 = vpop.f32.mrb[5].mxu0  ;;  %v4923_v38 = vpop.f32.mrb[13].mxu1  ;;  %v2043_v39 = vmul.f32 %v4917_v36, %v4917_v36  ;;  %v2045_v40 = vmul.f32 %v4919_v37, %v4919_v37 }
 0x5b7   :  { %v2044_v28 = vmul.f32 %v4921_v58, %v4921_v58  ;;  %v2046_v10 = vmul.f32 %v4923_v38, %v4923_v38  ;;  %v4933_v41 = vpop.f32.mrb[6].mxu0  ;;  %v4935_v42 = vpop.f32.mrb[14].mxu1 }
 0x5b8   :  { %v1979_v43 = vadd.f32 %v4933_v41, %v4917_v36  ;;  %v2051_v45 = vmul.f32 %v4933_v41, %v4933_v41  ;;  %v1993_v11 = vadd.f32 %v4935_v42, %v4919_v37  ;;  %v2053_v47 = vmul.f32 %v4935_v42, %v4935_v42  ;;  %v4945_v48 = vpop.f32.mrb[7].mxu0  ;;  %v4947_v49 = vpop.f32.mrb[15].mxu1 }
 0x5b9   :  { %v1986_v51 = vadd.f32 %v4945_v48, %v4921_v58  ;;  %v2052_v55 = vmul.f32 %v4945_v48, %v4945_v48  ;;  %v2000_v59 = vadd.f32 %v4947_v49, %v4923_v38  ;;  %v2054_v2 = vmul.f32 %v4947_v49, %v4947_v49 }
 0x5ba   :  { %v1980_v3 = vrot.slane %v1979_v43, 4  ;;  %v2059_v4 = vadd.f32 %v2051_v45, %v2043_v39  ;;  %v1994_v16 = vrot.slane %v1993_v11, 4  ;;  %v2073_v18 = vadd.f32 %v2053_v47, %v2045_v40 }
 0x5bb   :  { %v1987_v19 = vrot.slane %v1986_v51, 4  ;;  %v2066_v21 = vadd.f32 %v2052_v55, %v2044_v28  ;;  %v2001_v60 = vrot.slane %v2000_v59, 4  ;;  %v2080_v22 = vadd.f32 %v2054_v2, %v2046_v10 }
 0x5bc   :  { %v1981_v23 = vadd.f32 %v1980_v3, %v1979_v43  ;;  %v2060_v24 = vrot.slane %v2059_v4, 4  ;;  %v1995_v25 = vadd.f32 %v1994_v16, %v1993_v11  ;;  %v2074_v26 = vrot.slane %v2073_v18, 4 }
 0x5bd   :  { %v1988_v27 = vadd.f32 %v1987_v19, %v1986_v51  ;;  %v2067_v29 = vrot.slane %v2066_v21, 4  ;;  %v2002_v30 = vadd.f32 %v2001_v60, %v2000_v59  ;;  %v2081_v17 = vrot.slane %v2080_v22, 4 }
 0x5be   :  { %v1982_v31 = vrot.slane %v1981_v23, 2  ;;  %v2061_v50 = vadd.f32 %v2060_v24, %v2059_v4  ;;  %v1996_v54 = vrot.slane %v1995_v25, 2  ;;  %v2075_v44 = vadd.f32 %v2074_v26, %v2073_v18 }
 0x5bf   :  { %v1989_v46 = vrot.slane %v1988_v27, 2  ;;  %v2068_v53 = vadd.f32 %v2067_v29, %v2066_v21  ;;  %v2003_v57 = vrot.slane %v2002_v30, 2  ;;  %v2082_v12 = vadd.f32 %v2081_v17, %v2080_v22 }
 0x5c0   :  { %v1983_v13 = vadd.f32 %v1982_v31, %v1981_v23  ;;  %v2062_v14 = vrot.slane %v2061_v50, 2  ;;  %v1997_v61 = vadd.f32 %v1996_v54, %v1995_v25  ;;  %v2076_v32 = vrot.slane %v2075_v44, 2 }
 0x5c1   :  { %v1990_v62 = vadd.f32 %v1989_v46, %v1988_v27  ;;  %v2069_v33 = vrot.slane %v2068_v53, 2  ;;  %v2004_v52 = vadd.f32 %v2003_v57, %v2002_v30  ;;  %v2083_v56 = vrot.slane %v2082_v12, 2 }
 0x5c2   :  { %v1984_v15 = vrot.slane %v1983_v13, 1  ;;  %v2063_v20 = vadd.f32 %v2062_v14, %v2061_v50  ;;  %v1998_v0 = vrot.slane %v1997_v61, 1  ;;  %v2077_v34 = vadd.f32 %v2076_v32, %v2075_v44 }
 0x5c3   :  { %v1991_v5 = vrot.slane %v1990_v62, 1  ;;  %v2070_v35 = vadd.f32 %v2069_v33, %v2068_v53  ;;  %v2005_v39 = vrot.slane %v2004_v52, 1  ;;  %v2084_v40 = vadd.f32 %v2083_v56, %v2082_v12 }
 0x5c4   :  { %v1985_v28 = vadd.f32 %v1984_v15, %v1983_v13  ;;  %v2064_v10 = vrot.slane %v2063_v20, 1  ;;  %v1999_v43 = vadd.f32 %v1998_v0, %v1997_v61  ;;  %v2078_v45 = vrot.slane %v2077_v34, 1 }
 0x5c5   :  { %v1992_v11 = vadd.f32 %v1991_v5, %v1990_v62  ;;  %v2071_v47 = vrot.slane %v2070_v35, 1  ;;  %v2006_v51 = vadd.f32 %v2005_v39, %v2004_v52  ;;  %v2085_v55 = vrot.slane %v2084_v40, 1 }
 0x5c6   :  { %v4957_v59 = vmul.f32 0.0625, %v1985_v28  ;;  %v2065_v2 = vadd.f32 %v2064_v10, %v2063_v20  ;;  %v4959_v3 = vmul.f32 0.0625, %v1999_v43  ;;  %v2079_v4 = vadd.f32 %v2078_v45, %v2077_v34 }
 0x5c7   :  { %v4961_v16 = vmul.f32 0.0625, %v1992_v11  ;;  %v2072_v18 = vadd.f32 %v2071_v47, %v2070_v35  ;;  %v4963_v19 = vmul.f32 0.0625, %v2006_v51  ;;  %v2086_v21 = vadd.f32 %v2085_v55, %v2084_v40 }
 0x5c8   :  { %v2115_v60 = vmul.f32 0.0625, %v2065_v2  ;;  %v2123_v22 = vmul.f32 %v4957_v59, %v4957_v59  ;;  %v2117_v23 = vmul.f32 0.0625, %v2079_v4  ;;  %v2125_v24 = vmul.f32 %v4959_v3, %v4959_v3 }
 0x5c9   :  { %v2116_v25 = vmul.f32 0.0625, %v2072_v18  ;;  %v2124_v26 = vmul.f32 %v4961_v16, %v4961_v16  ;;  %v2118_v27 = vmul.f32 0.0625, %v2086_v21  ;;  %v2126_v29 = vmul.f32 %v4963_v19, %v4963_v19 }
 0x5ca   :  { %v2131_v30 = vsub.f32 %v2115_v60, %v2123_v22  ;;  %v2133_v17 = vsub.f32 %v2117_v23, %v2125_v24 }
 0x5cb   :  { %v2132_v31 = vsub.f32 %v2116_v25, %v2124_v26  ;;  %v2134_v50 = vsub.f32 %v2118_v27, %v2126_v29 }
 0x5cc   :  { %v2139_v54 = vmax.f32 %v2131_v30, 0.0  ;;  %v2141_v44 = vmax.f32 %v2133_v17, 0.0 }
 0x5cd   :  { %v2140_v46 = vmax.f32 %v2132_v31, 0.0  ;;  %v2142_v53 = vmax.f32 %v2134_v50, 0.0 }
 0x5ce   :  { %v2147_v57 = vadd.f32 0.8, %v2139_v54  ;;  %v2149_v12 = vadd.f32 0.8, %v2141_v44 }
 0x5cf   :  { %v2148_v13 = vadd.f32 0.8, %v2140_v46  ;;  %v2150_v14 = vadd.f32 0.8, %v2142_v53 }
 0x5d0   :  { %4130 = vrsqrt.f32 %v2147_v57 }
 0x5d1   :  { %4132 = vrsqrt.f32 %v2149_v12 }
 0x5d2   :  { %4134 = vrsqrt.f32 %v2148_v13 }
 0x5d3   :  { %4136 = vrsqrt.f32 %v2150_v14 }
 0x5da   :  { %v4131_v61 = vpop.eup %4130 }
 0x5db   :  { %v4133_v32 = vpop.eup %4132 }
 0x5dc   :  { %v4135_v62 = vpop.eup %4134 }
 0x5dd   :  { %v4137_v33 = vpop.eup %4136  ;;  %v2171_v52 = vcombine.low %v4131_v61, %v4135_v62 }
 0x5de   :  { %v2172_v56 = vcombine.low %v4133_v32, %v4137_v33 }
 0x5df   :  { %v4974_v15 = vrot.slane %v2171_v52, %v4765_v1 }
 0x5e0   :  { %v4977_v20 = vrot.slane %v2172_v56, %v4765_v1 }
 0x5e2   :  { %v2203_v0 = vcombine.low %v4974_v15, %v4977_v20 }
 0x635   :  { %v4981_v34 = vpop.f32.mrb[8].mxu0  ;;  %v4983_v5 = vpop.f32.mrb[16].mxu1 }
 0x636   :  { %v4985_v35 = vpop.f32.mrb[9].mxu0  ;;  %v4987_v39 = vpop.f32.mrb[17].mxu1  ;;  %v2047_v40 = vmul.f32 %v4981_v34, %v4981_v34  ;;  %v2049_v28 = vmul.f32 %v4983_v5, %v4983_v5 }
 0x637   :  { %v2048_v10 = vmul.f32 %v4985_v35, %v4985_v35  ;;  %v2050_v43 = vmul.f32 %v4987_v39, %v4987_v39  ;;  %v4997_v45 = vpop.f32.mrb[10].mxu0  ;;  %v4999_v11 = vpop.f32.mrb[18].mxu1 }
 0x638   :  { %v2007_v47 = vadd.f32 %v4997_v45, %v4981_v34  ;;  %v2055_v51 = vmul.f32 %v4997_v45, %v4997_v45  ;;  %v2021_v55 = vadd.f32 %v4999_v11, %v4983_v5  ;;  %v2057_v2 = vmul.f32 %v4999_v11, %v4999_v11  ;;  %v5009_v4 = vpop.f32.mrb[11].mxu0  ;;  %v5011_v18 = vpop.f32.mrb[19].mxu1 }
 0x639   :  { %v2014_v21 = vadd.f32 %v5009_v4, %v4985_v35  ;;  %v2056_v60 = vmul.f32 %v5009_v4, %v5009_v4  ;;  %v2028_v22 = vadd.f32 %v5011_v18, %v4987_v39  ;;  %v2058_v23 = vmul.f32 %v5011_v18, %v5011_v18 }
 0x63a   :  { %v2008_v24 = vrot.slane %v2007_v47, 4  ;;  %v2087_v25 = vadd.f32 %v2055_v51, %v2047_v40  ;;  %v2022_v26 = vrot.slane %v2021_v55, 4  ;;  %v2101_v27 = vadd.f32 %v2057_v2, %v2049_v28 }
 0x63b   :  { %v2015_v29 = vrot.slane %v2014_v21, 4  ;;  %v2094_v30 = vadd.f32 %v2056_v60, %v2048_v10  ;;  %v2029_v17 = vrot.slane %v2028_v22, 4  ;;  %v2108_v31 = vadd.f32 %v2058_v23, %v2050_v43 }
 0x63c   :  { %v2009_v50 = vadd.f32 %v2008_v24, %v2007_v47  ;;  %v2088_v54 = vrot.slane %v2087_v25, 4  ;;  %v2023_v44 = vadd.f32 %v2022_v26, %v2021_v55  ;;  %v2102_v46 = vrot.slane %v2101_v27, 4 }
 0x63d   :  { %v2016_v53 = vadd.f32 %v2015_v29, %v2014_v21  ;;  %v2095_v57 = vrot.slane %v2094_v30, 4  ;;  %v2030_v12 = vadd.f32 %v2029_v17, %v2028_v22  ;;  %v2109_v13 = vrot.slane %v2108_v31, 4 }
 0x63e   :  { %v2010_v14 = vrot.slane %v2009_v50, 2  ;;  %v2089_v61 = vadd.f32 %v2088_v54, %v2087_v25  ;;  %v2024_v32 = vrot.slane %v2023_v44, 2  ;;  %v2103_v62 = vadd.f32 %v2102_v46, %v2101_v27 }
 0x63f   :  { %v2017_v33 = vrot.slane %v2016_v53, 2  ;;  %v2096_v52 = vadd.f32 %v2095_v57, %v2094_v30  ;;  %v2031_v56 = vrot.slane %v2030_v12, 2  ;;  %v2110_v40 = vadd.f32 %v2109_v13, %v2108_v31 }
 0x640   :  { %v2011_v28 = vadd.f32 %v2010_v14, %v2009_v50  ;;  %v2090_v10 = vrot.slane %v2089_v61, 2  ;;  %v2025_v51 = vadd.f32 %v2024_v32, %v2023_v44  ;;  %v2104_v43 = vrot.slane %v2103_v62, 2 }
 0x641   :  { %v2018_v47 = vadd.f32 %v2017_v33, %v2016_v53  ;;  %v2097_v2 = vrot.slane %v2096_v52, 2  ;;  %v2032_v55 = vadd.f32 %v2031_v56, %v2030_v12  ;;  %v2111_v60 = vrot.slane %v2110_v40, 2 }
 0x642   :  { %v2012_v21 = vrot.slane %v2011_v28, 1  ;;  %v2091_v23 = vadd.f32 %v2090_v10, %v2089_v61  ;;  %v2026_v22 = vrot.slane %v2025_v51, 1  ;;  %v2105_v24 = vadd.f32 %v2104_v43, %v2103_v62 }
 0x643   :  { %v2019_v26 = vrot.slane %v2018_v47, 1  ;;  %v2098_v25 = vadd.f32 %v2097_v2, %v2096_v52  ;;  %v2033_v29 = vrot.slane %v2032_v55, 1  ;;  %v2112_v27 = vadd.f32 %v2111_v60, %v2110_v40 }
 0x644   :  { %v2013_v17 = vadd.f32 %v2012_v21, %v2011_v28  ;;  %v2092_v30 = vrot.slane %v2091_v23, 1  ;;  %v2027_v54 = vadd.f32 %v2026_v22, %v2025_v51  ;;  %v2106_v31 = vrot.slane %v2105_v24, 1 }
 0x645   :  { %v2020_v50 = vadd.f32 %v2019_v26, %v2018_v47  ;;  %v2099_v46 = vrot.slane %v2098_v25, 1  ;;  %v2034_v44 = vadd.f32 %v2033_v29, %v2032_v55  ;;  %v2113_v57 = vrot.slane %v2112_v27, 1 }
 0x646   :  { %v2039_v53 = vmul.f32 0.0625, %v2013_v17  ;;  %v2093_v13 = vadd.f32 %v2092_v30, %v2091_v23  ;;  %v2041_v12 = vmul.f32 0.0625, %v2027_v54  ;;  %v2107_v14 = vadd.f32 %v2106_v31, %v2105_v24 }
 0x647   :  { %v2040_v32 = vmul.f32 0.0625, %v2020_v50  ;;  %v2100_v61 = vadd.f32 %v2099_v46, %v2098_v25  ;;  %v2042_v33 = vmul.f32 0.0625, %v2034_v44  ;;  %v2114_v62 = vadd.f32 %v2113_v57, %v2112_v27 }
 0x648   :  { %v2119_v56 = vmul.f32 0.0625, %v2093_v13  ;;  %v2127_v52 = vmul.f32 %v2039_v53, %v2039_v53  ;;  %v2121_v10 = vmul.f32 0.0625, %v2107_v14  ;;  %v2129_v40 = vmul.f32 %v2041_v12, %v2041_v12 }
 0x649   :  { %v2120_v28 = vmul.f32 0.0625, %v2100_v61  ;;  %v2128_v43 = vmul.f32 %v2040_v32, %v2040_v32  ;;  %v2122_v51 = vmul.f32 0.0625, %v2114_v62  ;;  %v2130_v2 = vmul.f32 %v2042_v33, %v2042_v33 }
 0x64a   :  { %v2135_v47 = vsub.f32 %v2119_v56, %v2127_v52  ;;  %v2137_v60 = vsub.f32 %v2121_v10, %v2129_v40  ;;  %v2211_v61 = vrot.slane %v2203_v0, %v4765_v1  ;;  %v1977_v56 = vld [vmem:[#allocation20] sm:$0xff]  ;;  %v5029_v10 = vsub.s32 4, %v4762_v63 }
 0x64b   :  { %v2136_v55 = vsub.f32 %v2120_v28, %v2128_v43  ;;  %v2138_v21 = vsub.f32 %v2122_v51, %v2130_v2  ;;  %v5032_v40 = vsub.s32 5, %v4762_v63  ;;  %v5035_v28 = vsub.s32 6, %v4762_v63 }
 0x64c   :  { %v2143_v22 = vmax.f32 %v2135_v47, 0.0  ;;  %v2145_v23 = vmax.f32 %v2137_v60, 0.0  ;;  %v2253_v43 = vsub.s32 7, %v4762_v63 }
 0x64d   :  { %v2144_v26 = vmax.f32 %v2136_v55, 0.0  ;;  %v2146_v24 = vmax.f32 %v2138_v21, 0.0 }
 0x64e   :  { %v2151_v29 = vadd.f32 0.8, %v2143_v22  ;;  %v2153_v25 = vadd.f32 0.8, %v2145_v23 }
 0x64f   :  { %v2152_v17 = vadd.f32 0.8, %v2144_v26  ;;  %v2154_v27 = vadd.f32 0.8, %v2146_v24 }
 0x650   :  { %4138 = vrsqrt.f32 %v2151_v29 }
 0x651   :  { %4140 = vrsqrt.f32 %v2153_v25 }
 0x652   :  { %4142 = vrsqrt.f32 %v2152_v17 }
 0x653   :  { %4144 = vrsqrt.f32 %v2154_v27 }
 0x65a   :  { %v4139_v30 = vpop.eup %4138 }
 0x65b   :  { %v4141_v54 = vpop.eup %4140 }
 0x65c   :  { %v4143_v31 = vpop.eup %4142 }
 0x65d   :  { %v4145_v50 = vpop.eup %4144  ;;  %v2173_v46 = vcombine.low %v4139_v30, %v4143_v31 }
 0x65e   :  { %v2174_v44 = vcombine.low %v4141_v54, %v4145_v50 }
 0x65f   :  { %v2195_v57 = vrot.slane %v2173_v46, %v4765_v1 }
 0x660   :  { %v2202_v13 = vrot.slane %v2174_v44, %v4765_v1 }
 0x662   :  { %v2204_v14 = vcombine.low %v2195_v57, %v2202_v13 }
 0x664   :  { %v2218_v62 = vrot.slane %v2204_v14, %v4765_v1 }
 0x666   :  { %v2219_v52 = vcombine.low %v2211_v61, %v2218_v62 }
 0x668   :  { %v2221_v51 = vmul.f32 %v2219_v52, %v1977_v56 }
 0x66a   :  { %v2226_v2 = vrot.slane %v2221_v51, %v4770_v7  ;;  %v2230_v15 = vrot.slane %v2221_v51, %v4773_v8  ;;  %v2234_v20 = vrot.slane %v2221_v51, %v4841_v6  ;;  %v2238_v0 = vrot.slane %v2221_v51, %v4844_v9 }
 0x66b   :  { %v2242_v47 = vrot.slane %v2221_v51, %v5029_v10  ;;  %v2246_v60 = vrot.slane %v2221_v51, %v5032_v40  ;;  %v2250_v55 = vrot.slane %v2221_v51, %v5035_v28  ;;  %v2254_v21 = vrot.slane %v2221_v51, %v2253_v43 }
 0x66c   :  { %v2263_v22 = vmul.f32 %v2226_v2, %v4957_v59  ;;  %v2264_v63 = vmul.f32 %v2230_v15, %v4961_v16  ;;  %v2265_v23 = vmul.f32 %v2234_v20, %v4959_v3  ;;  %v2266_v26 = vmul.f32 %v2238_v0, %v4963_v19 }
 0x66d   :  { %v2267_v24 = vmul.f32 %v2242_v47, %v2039_v53  ;;  %v2268_v29 = vmul.f32 %v2246_v60, %v2040_v32  ;;  %v2269_v25 = vmul.f32 %v2250_v55, %v2041_v12  ;;  %v2270_v17 = vmul.f32 %v2254_v21, %v2042_v33 }
 0x66e   :  { %v2279_v27 = vcombine.low %v2263_v22, %v2264_v63  ;;  %v2280_v30 = vcombine.low %v2265_v23, %v2266_v26  ;;  %v2330_v54 = vmul.f32 %v2226_v2, %v4917_v36  ;;  %v2331_v31 = vmul.f32 %v2230_v15, %v4921_v58 }
 0x66f   :  { %v2281_v50 = vcombine.low %v2267_v24, %v2268_v29  ;;  %v2282_v46 = vcombine.low %v2269_v25, %v2270_v17  ;;  %v2332_v59 = vmul.f32 %v2234_v20, %v4919_v37  ;;  %v2333_v16 = vmul.f32 %v2238_v0, %v4923_v38 }
 0x670   :  { %v2289_v3 = vrot.slane %v2279_v27, %v4765_v1  ;;  %v2296_v19 = vrot.slane %v2280_v30, %v4765_v1  ;;  %v2334_v53 = vmul.f32 %v2242_v47, %v4981_v34  ;;  %v2335_v12 = vmul.f32 %v2246_v60, %v4985_v35 }
 0x671   :  { %v2303_v32 = vrot.slane %v2281_v50, %v4765_v1  ;;  %v2310_v36 = vrot.slane %v2282_v46, %v4765_v1  ;;  %v2336_v58 = vmul.f32 %v2250_v55, %v4983_v5  ;;  %v2337_v33 = vmul.f32 %v2254_v21, %v4987_v39 }
 0x672   :  { %v2311_v44 = vcombine.low %v2289_v3, %v2296_v19  ;;  %v2338_v37 = vmul.f32 %v2226_v2, %v4933_v41  ;;  %v2339_v38 = vmul.f32 %v2230_v15, %v4945_v48  ;;  %v2340_v57 = vmul.f32 %v2234_v20, %v4935_v42  ;;  %v1978_v41 = vld [vmem:[#allocation22] sm:$0xff] }
 0x673   :  { %v2312_v13 = vcombine.low %v2303_v32, %v2310_v36  ;;  %v2341_v34 = vmul.f32 %v2238_v0, %v4947_v49  ;;  %v2342_v35 = vmul.f32 %v2242_v47, %v4997_v45  ;;  %v2343_v14 = vmul.f32 %v2246_v60, %v5009_v4 }
 0x674   :  { %v2319_v61 = vrot.slane %v2311_v44, %v4765_v1  ;;  %v2344_v5 = vmul.f32 %v2250_v55, %v4999_v11  ;;  %v2345_v39 = vmul.f32 %v2254_v21, %v5011_v18 }
 0x675   :  { %v2326_v62 = vrot.slane %v2312_v13, %v4765_v1 }
 0x677   :  { %v2327_v56 = vcombine.low %v2319_v61, %v2326_v62 }
 0x679   :  { %v2329_v48 = vsub.f32 %v1978_v41, %v2327_v56 }
 0x67b   :  { %v2350_v42 = vrot.slane %v2329_v48, %v4770_v7  ;;  %v2354_v52 = vrot.slane %v2329_v48, %v4773_v8  ;;  %v2358_v49 = vrot.slane %v2329_v48, %v4841_v6  ;;  %v2362_v45 = vrot.slane %v2329_v48, %v4844_v9 }
 0x67c   :  { %v2366_v4 = vrot.slane %v2329_v48, %v5029_v10  ;;  %v2370_v51 = vrot.slane %v2329_v48, %v5032_v40  ;;  %v2374_v11 = vrot.slane %v2329_v48, %v5035_v28  ;;  %v2378_v18 = vrot.slane %v2329_v48, %v2253_v43 }
 0x67d   :  { %v2387_v2 = vadd.f32 %v2350_v42, %v2330_v54  ;;  %v2388_v1 = vadd.f32 %v2354_v52, %v2331_v31  ;;  %v2389_v15 = vadd.f32 %v2358_v49, %v2332_v59  ;;  %v2390_v20 = vadd.f32 %v2362_v45, %v2333_v16 }
 0x67e   :  { %v2391_v0 = vadd.f32 %v2366_v4, %v2334_v53  ;;  %v2392_v47 = vadd.f32 %v2370_v51, %v2335_v12  ;;  %v2393_v60 = vadd.f32 %v2374_v11, %v2336_v58  ;;  %v2394_v55 = vadd.f32 %v2378_v18, %v2337_v33 }
 0x67f   :  { %v2395_v21 = vadd.f32 %v2350_v42, %v2338_v37  ;;  %v2396_v22 = vadd.f32 %v2354_v52, %v2339_v38  ;;  %v2397_v63 = vadd.f32 %v2358_v49, %v2340_v57  ;;  %v2398_v23 = vadd.f32 %v2362_v45, %v2341_v34 }
 0x680   :  { %v2399_v26 = vadd.f32 %v2366_v4, %v2342_v35  ;;  %v2400_v24 = vadd.f32 %v2370_v51, %v2343_v14  ;;  %v2401_v29 = vadd.f32 %v2374_v11, %v2344_v5  ;;  %v2402_v25 = vadd.f32 %v2378_v18, %v2345_v39 }
 0x681   :  { %vm2403_vm0 = vcmp.ge.f32.partialorder %v2387_v2, 0.0  ;;  %vm2404_vm1 = vcmp.ge.f32.partialorder %v2388_v1, 0.0  ;;  %vm2405_vm2 = vcmp.ge.f32.partialorder %v2389_v15, 0.0  ;;  %vm2406_vm3 = vcmp.ge.f32.partialorder %v2390_v20, 0.0 }
 0x682   :  { %vm2407_vm4 = vcmp.ge.f32.partialorder %v2391_v0, 0.0  ;;  %vm2408_vm5 = vcmp.ge.f32.partialorder %v2392_v47, 0.0  ;;  %vm2409_vm6 = vcmp.ge.f32.partialorder %v2393_v60, 0.0  ;;  %vm2410_vm7 = vcmp.ge.f32.partialorder %v2394_v55, 0.0 }
 0x683   :  { %vm2411_vm8 = vcmp.ge.f32.partialorder %v2395_v21, 0.0  ;;  %vm2412_vm9 = vcmp.ge.f32.partialorder %v2396_v22, 0.0  ;;  %vm2413_vm10 = vcmp.ge.f32.partialorder %v2397_v63, 0.0  ;;  %vm2414_vm11 = vcmp.ge.f32.partialorder %v2398_v23, 0.0 }
 0x684   :  { %vm2415_vm12 = vcmp.ge.f32.partialorder %v2399_v26, 0.0  ;;  %vm2416_vm13 = vcmp.ge.f32.partialorder %v2400_v24, 0.0  ;;  %vm2417_vm14 = vcmp.ge.f32.partialorder %v2401_v29, 0.0  ;;  %vm2418_vm15 = vcmp.ge.f32.partialorder %v2402_v25, 0.0 }
 0x685   :  { %v2419_v43 = vmul.f32 0.2, %v2387_v2  ;;  %v2420_v17 = vmul.f32 0.2, %v2388_v1  ;;  %v2421_v27 = vmul.f32 0.2, %v2389_v15 }
 0x686   :  { %v2422_v30 = vmul.f32 0.2, %v2390_v20  ;;  %v2423_v54 = vmul.f32 0.2, %v2391_v0  ;;  %v2424_v31 = vmul.f32 0.2, %v2392_v47 }
 0x687   :  { %v2425_v50 = vmul.f32 0.2, %v2393_v60  ;;  %v2426_v46 = vmul.f32 0.2, %v2394_v55  ;;  %v2427_v59 = vmul.f32 0.2, %v2395_v21  ;;  %v5079_v16 = vsel %vm2403_vm0, %v2387_v2, %v2419_v43 }
 0x688   :  { %v2428_v3 = vmul.f32 0.2, %v2396_v22  ;;  %v2429_v19 = vmul.f32 0.2, %v2397_v63  ;;  %v2430_v53 = vmul.f32 0.2, %v2398_v23  ;;  %v2436_v12 = vsel %vm2404_vm1, %v2388_v1, %v2420_v17 }
 0x689   :  { %v2431_v32 = vmul.f32 0.2, %v2399_v26  ;;  %v2432_v36 = vmul.f32 0.2, %v2400_v24  ;;  %v2433_v58 = vmul.f32 0.2, %v2401_v29  ;;  %v5083_v33 = vsel %vm2405_vm2, %v2389_v15, %v2421_v27 }
 0x68a   :  { %v2434_v44 = vmul.f32 0.2, %v2402_v25  ;;  %v5086_v37 = vsel %vm2406_vm3, %v2390_v20, %v2422_v30  ;;  %v5089_v38 = vsel %vm2407_vm4, %v2391_v0, %v2423_v54  ;;  %v5092_v57 = vsel %vm2408_vm5, %v2392_v47, %v2424_v31 }
 0x68b   :  { %v5095_v13 = vsel %vm2409_vm6, %v2393_v60, %v2425_v50  ;;  %v5098_v34 = vsel %vm2410_vm7, %v2394_v55, %v2426_v46  ;;  %v5101_v35 = vsel %vm2411_vm8, %v2395_v21, %v2427_v59  ;;  %v2444_v14 = vsel %vm2412_vm9, %v2396_v22, %v2428_v3 }
 0x68c   :  { %v5105_v61 = vsel %vm2413_vm10, %v2397_v63, %v2429_v19  ;;  %v5108_v5 = vsel %vm2414_vm11, %v2398_v23, %v2430_v53  ;;  %v5111_v39 = vsel %vm2415_vm12, %v2399_v26, %v2431_v32  ;;  %v5114_v62 = vsel %vm2416_vm13, %v2400_v24, %v2432_v36 }
 0x68d   :  { %v5117_v41 = vsel %vm2417_vm14, %v2401_v29, %v2433_v58  ;;  %v5120_v56 = vsel %vm2418_vm15, %v2402_v25, %v2434_v44 }
 0x68e   :  { %4454 = dma.done.wait [#allocation5 + $0x1], 57344 }
 0x68f   :  { %4455 = vsyncadd [#allocation5 + $0x1], 4294909952  ;;  %v5122_v48 = vpack.c.bf16 %v2444_v14, %v2436_v12  ;;  %v2456_v42 = vld [vmem:[#allocation4 + $0x8] sm:$0xff]  ;;  %v2458_v52 = vld [vmem:[#allocation4 + $0x18] sm:$0xff] }
 0x690   :  { %v2455_v49 = vld [vmem:[#allocation4] sm:$0xff]  ;;  %2948 = vmatprep.subr.bf16.mxu0 %v2456_v42  ;;  %3120 = vmatprep.subr.bf16.mxu1 %v2458_v52  ;;  %v2457_v45 = vld [vmem:[#allocation4 + $0x10] sm:$0xff]  ;;  %v2462_v11 = vld [vmem:[#allocation4 + $0x38] sm:$0xff] }
 0x691   :  { %2980 = vmatprep.mubr.bf16.mxu0 %v5122_v48  ;;  %3152 = vmatprep.mubr.bf16.mxu1 %v5122_v48  ;;  %v2463_v4 = vld [vmem:[#allocation4 + $0x40] sm:$0xff]  ;;  %v2465_v51 = vld [vmem:[#allocation4 + $0x50] sm:$0xff]  ;;  %v2464_v18 = vld [vmem:[#allocation4 + $0x48] sm:$0xff] }
 0x692   :  { %2949 = vmatpush1.bf16.msra.mxu0 %v2455_v49  ;;  %3121 = vmatpush1.bf16.msra.mxu1 %v2457_v45  ;;  %v2470_v2 = vld [vmem:[#allocation4 + $0x78] sm:$0xff]  ;;  %v2472_v1 = vld [vmem:[#allocation4 + $0x88] sm:$0xff]  ;;  %v2469_v15 = vld [vmem:[#allocation4 + $0x70] sm:$0xff] }
 0x693   :  { %2950 = vmatprep.subr.bf16.mxu0 %v2463_v4  ;;  %3122 = vmatprep.subr.bf16.mxu1 %v2465_v51  ;;  %v2471_v20 = vld [vmem:[#allocation4 + $0x80] sm:$0xff]  ;;  %v2477_v0 = vld [vmem:[#allocation4 + $0xb0] sm:$0xff]  ;;  %v2476_v60 = vld [vmem:[#allocation4 + $0xa8] sm:$0xff] }
 0x694   :  { %v2479_v47 = vld [vmem:[#allocation4 + $0xc0] sm:$0xff]  ;;  %v2478_v55 = vld [vmem:[#allocation4 + $0xb8] sm:$0xff]  ;;  %v2484_v21 = vld [vmem:[#allocation4 + $0xe8] sm:$0xff] }
 0x695   :  { %v2486_v22 = vld [vmem:[#allocation4 + $0xf8] sm:$0xff]  ;;  %v2483_v63 = vld [vmem:[#allocation4 + $0xe0] sm:$0xff]  ;;  %v2485_v23 = vld [vmem:[#allocation4 + $0xf0] sm:$0xff] }
 0x696   :  { %2951 = vmatpush1.bf16.msra.mxu0 %v2462_v11  ;;  %3123 = vmatpush1.bf16.msra.mxu1 %v2464_v18  ;;  %v2491_v26 = vld [vmem:[#allocation4 + $0x120] sm:$0xff]  ;;  %v2493_v24 = vld [vmem:[#allocation4 + $0x130] sm:$0xff]  ;;  %v2490_v29 = vld [vmem:[#allocation4 + $0x118] sm:$0xff] }
 0x697   :  { %2952 = vmatprep.subr.bf16.mxu0 %v2470_v2  ;;  %3124 = vmatprep.subr.bf16.mxu1 %v2472_v1  ;;  %v2492_v25 = vld [vmem:[#allocation4 + $0x128] sm:$0xff]  ;;  %v2498_v43 = vld [vmem:[#allocation4 + $0x158] sm:$0xff]  ;;  %v2497_v27 = vld [vmem:[#allocation4 + $0x150] sm:$0xff] }
 0x698   :  { %v2500_v17 = vld [vmem:[#allocation4 + $0x168] sm:$0xff]  ;;  %v2499_v30 = vld [vmem:[#allocation4 + $0x160] sm:$0xff]  ;;  %v2505_v54 = vld [vmem:[#allocation4 + $0x190] sm:$0xff] }
 0x699   :  { %v2507_v31 = vld [vmem:[#allocation4 + $0x1a0] sm:$0xff]  ;;  %v2504_v50 = vld [vmem:[#allocation4 + $0x188] sm:$0xff]  ;;  %v2506_v46 = vld [vmem:[#allocation4 + $0x198] sm:$0xff] }
 0x69a   :  { %2953 = vmatpush1.bf16.msra.mxu0 %v2469_v15  ;;  %3125 = vmatpush1.bf16.msra.mxu1 %v2471_v20  ;;  %v2512_v59 = vld [vmem:[#allocation4 + $0x1c8] sm:$0xff]  ;;  %v2514_v3 = vld [vmem:[#allocation4 + $0x1d8] sm:$0xff]  ;;  %v2511_v19 = vld [vmem:[#allocation4 + $0x1c0] sm:$0xff] }
 0x69b   :  { %2954 = vmatprep.subr.bf16.mxu0 %v2477_v0  ;;  %3126 = vmatprep.subr.bf16.mxu1 %v2479_v47  ;;  %v2513_v53 = vld [vmem:[#allocation4 + $0x1d0] sm:$0xff]  ;;  %v2519_v12 = vld [vmem:[#allocation4 + $0x200] sm:$0xff]  ;;  %v2518_v36 = vld [vmem:[#allocation4 + $0x1f8] sm:$0xff] }
 0x69c   :  { %v2521_v32 = vld [vmem:[#allocation4 + $0x210] sm:$0xff]  ;;  %v2520_v58 = vld [vmem:[#allocation4 + $0x208] sm:$0xff]  ;;  %v2526_v44 = vld [vmem:[#allocation4 + $0x238] sm:$0xff] }
 0x69d   :  { %v2528_v14 = vld [vmem:[#allocation4 + $0x248] sm:$0xff]  ;;  %v2525_v42 = vld [vmem:[#allocation4 + $0x230] sm:$0xff]  ;;  %v2527_v52 = vld [vmem:[#allocation4 + $0x240] sm:$0xff] }
 0x69e   :  { %2955 = vmatpush1.bf16.msra.mxu0 %v2476_v60  ;;  %3127 = vmatpush1.bf16.msra.mxu1 %v2478_v55  ;;  %v2533_v49 = vld [vmem:[#allocation4 + $0x270] sm:$0xff]  ;;  %v2535_v45 = vld [vmem:[#allocation4 + $0x280] sm:$0xff]  ;;  %v2532_v4 = vld [vmem:[#allocation4 + $0x268] sm:$0xff] }
 0x69f   :  { %2956 = vmatprep.subr.bf16.mxu0 %v2484_v21  ;;  %3128 = vmatprep.subr.bf16.mxu1 %v2486_v22  ;;  %v2534_v51 = vld [vmem:[#allocation4 + $0x278] sm:$0xff]  ;;  %v2540_v11 = vld [vmem:[#allocation4 + $0x2a8] sm:$0xff]  ;;  %v2539_v2 = vld [vmem:[#allocation4 + $0x2a0] sm:$0xff] }
 0x6a0   :  { %v2542_v18 = vld [vmem:[#allocation4 + $0x2b8] sm:$0xff]  ;;  %v2541_v1 = vld [vmem:[#allocation4 + $0x2b0] sm:$0xff]  ;;  %v2547_v15 = vld [vmem:[#allocation4 + $0x2e0] sm:$0xff] }
 0x6a1   :  { %v2549_v20 = vld [vmem:[#allocation4 + $0x2f0] sm:$0xff]  ;;  %v2546_v0 = vld [vmem:[#allocation4 + $0x2d8] sm:$0xff]  ;;  %v2548_v47 = vld [vmem:[#allocation4 + $0x2e8] sm:$0xff] }
 0x6a2   :  { %2957 = vmatpush1.bf16.msra.mxu0 %v2483_v63  ;;  %3129 = vmatpush1.bf16.msra.mxu1 %v2485_v23  ;;  %v2554_v60 = vld [vmem:[#allocation4 + $0x318] sm:$0xff]  ;;  %v2556_v55 = vld [vmem:[#allocation4 + $0x328] sm:$0xff]  ;;  %v2553_v21 = vld [vmem:[#allocation4 + $0x310] sm:$0xff] }
 0x6a3   :  { %2958 = vmatprep.subr.bf16.mxu0 %v2491_v26  ;;  %3130 = vmatprep.subr.bf16.mxu1 %v2493_v24  ;;  %v2555_v22 = vld [vmem:[#allocation4 + $0x320] sm:$0xff]  ;;  %v2561_v63 = vld [vmem:[#allocation4 + $0x350] sm:$0xff]  ;;  %v2560_v26 = vld [vmem:[#allocation4 + $0x348] sm:$0xff] }
 0x6a4   :  { %v2563_v23 = vld [vmem:[#allocation4 + $0x360] sm:$0xff]  ;;  %v2562_v24 = vld [vmem:[#allocation4 + $0x358] sm:$0xff] }
 0x6a6   :  { %2959 = vmatpush1.bf16.msra.mxu0 %v2490_v29  ;;  %3131 = vmatpush1.bf16.msra.mxu1 %v2492_v25  ;;  %v2568_v29 = vld [vmem:[#allocation4 + $0x388] sm:$0xff]  ;;  %v2570_v25 = vld [vmem:[#allocation4 + $0x398] sm:$0xff] }
 0x6a7   :  { %2960 = vmatprep.subr.bf16.mxu0 %v2498_v43  ;;  %3132 = vmatprep.subr.bf16.mxu1 %v2500_v17  ;;  %v5128_v43 = vpack.c.bf16 %v5101_v35, %v5079_v16  ;;  %v2567_v17 = vld [vmem:[#allocation4 + $0x380] sm:$0xff]  ;;  %v2574_v16 = vld [vmem:[#allocation4 + $0x3b8] sm:$0xff]  ;;  %v2576_v35 = vld [vmem:[#allocation4 + $0x3c8] sm:$0xff] }
 0x6aa   :  { %2961 = vmatpush1.bf16.msra.mxu0 %v2497_v27  ;;  %3133 = vmatpush1.bf16.msra.mxu1 %v2499_v30  ;;  %v2569_v27 = vld [vmem:[#allocation4 + $0x390] sm:$0xff]  ;;  %v2575_v30 = vld [vmem:[#allocation4 + $0x3c0] sm:$0xff] }
 0x6ab   :  { %2962 = vmatprep.subr.bf16.mxu0 %v2505_v54  ;;  %3134 = vmatprep.subr.bf16.mxu1 %v2507_v31  ;;  %v2577_v54 = vld [vmem:[#allocation4 + $0x3d0] sm:$0xff]  ;;  %v5132_v31 = vpack.c.bf16 %v5108_v5, %v5086_v37  ;;  %v2583_v5 = vld [vmem:[#allocation4 + $0x400] sm:$0xff] }
 0x6ac   :  { %v2581_v37 = vld [vmem:[#allocation4 + $0x3f0] sm:$0xff] }
 0x6ae   :  { %2963 = vmatpush1.bf16.msra.mxu0 %v2504_v50  ;;  %3135 = vmatpush1.bf16.msra.mxu1 %v2506_v46  ;;  %v2582_v50 = vld [vmem:[#allocation4 + $0x3f8] sm:$0xff]  ;;  %v2584_v46 = vld [vmem:[#allocation4 + $0x408] sm:$0xff] }
 0x6af   :  { %2964 = vmatprep.subr.bf16.mxu0 %v2512_v59  ;;  %3136 = vmatprep.subr.bf16.mxu1 %v2514_v3  ;;  %v2589_v59 = vld [vmem:[#allocation4 + $0x430] sm:$0xff]  ;;  %v2591_v3 = vld [vmem:[#allocation4 + $0x440] sm:$0xff] }
 0x6b2   :  { %2965 = vmatpush1.bf16.msra.mxu0 %v2511_v19  ;;  %3137 = vmatpush1.bf16.msra.mxu1 %v2513_v53  ;;  %v2588_v19 = vld [vmem:[#allocation4 + $0x428] sm:$0xff]  ;;  %v2590_v53 = vld [vmem:[#allocation4 + $0x438] sm:$0xff] }
 0x6b3   :  { %2966 = vmatprep.subr.bf16.mxu0 %v2519_v12  ;;  %3138 = vmatprep.subr.bf16.mxu1 %v2521_v32  ;;  %v2596_v12 = vld [vmem:[#allocation4 + $0x468] sm:$0xff]  ;;  %v2598_v32 = vld [vmem:[#allocation4 + $0x478] sm:$0xff] }
 0x6b6   :  { %2967 = vmatpush1.bf16.msra.mxu0 %v2518_v36  ;;  %3139 = vmatpush1.bf16.msra.mxu1 %v2520_v58  ;;  %v2595_v36 = vld [vmem:[#allocation4 + $0x460] sm:$0xff]  ;;  %v2597_v58 = vld [vmem:[#allocation4 + $0x470] sm:$0xff] }
 0x6b7   :  { %2968 = vmatprep.subr.bf16.mxu0 %v2526_v44  ;;  %3140 = vmatprep.subr.bf16.mxu1 %v2528_v14  ;;  %v2603_v44 = vld [vmem:[#allocation4 + $0x4a0] sm:$0xff]  ;;  %v2605_v14 = vld [vmem:[#allocation4 + $0x4b0] sm:$0xff] }
 0x6ba   :  { %2969 = vmatpush1.bf16.msra.mxu0 %v2525_v42  ;;  %3141 = vmatpush1.bf16.msra.mxu1 %v2527_v52  ;;  %v2602_v42 = vld [vmem:[#allocation4 + $0x498] sm:$0xff]  ;;  %v2604_v52 = vld [vmem:[#allocation4 + $0x4a8] sm:$0xff] }
 0x6bb   :  { %2970 = vmatprep.subr.bf16.mxu0 %v2533_v49  ;;  %3142 = vmatprep.subr.bf16.mxu1 %v2535_v45  ;;  %v2610_v49 = vld [vmem:[#allocation4 + $0x4d8] sm:$0xff]  ;;  %v2612_v45 = vld [vmem:[#allocation4 + $0x4e8] sm:$0xff] }
 0x6be   :  { %2971 = vmatpush1.bf16.msra.mxu0 %v2532_v4  ;;  %3143 = vmatpush1.bf16.msra.mxu1 %v2534_v51  ;;  %v2609_v4 = vld [vmem:[#allocation4 + $0x4d0] sm:$0xff]  ;;  %v2611_v51 = vld [vmem:[#allocation4 + $0x4e0] sm:$0xff] }
 0x6bf   :  { %2972 = vmatprep.subr.bf16.mxu0 %v2540_v11  ;;  %3144 = vmatprep.subr.bf16.mxu1 %v2542_v18  ;;  %v2617_v11 = vld [vmem:[#allocation4 + $0x510] sm:$0xff]  ;;  %v2619_v18 = vld [vmem:[#allocation4 + $0x520] sm:$0xff] }
 0x6c2   :  { %2973 = vmatpush1.bf16.msra.mxu0 %v2539_v2  ;;  %3145 = vmatpush1.bf16.msra.mxu1 %v2541_v1  ;;  %v2616_v2 = vld [vmem:[#allocation4 + $0x508] sm:$0xff]  ;;  %v2618_v1 = vld [vmem:[#allocation4 + $0x518] sm:$0xff] }
 0x6c3   :  { %2974 = vmatprep.subr.bf16.mxu0 %v2547_v15  ;;  %3146 = vmatprep.subr.bf16.mxu1 %v2549_v20  ;;  %v2624_v15 = vld [vmem:[#allocation4 + $0x548] sm:$0xff]  ;;  %v2626_v20 = vld [vmem:[#allocation4 + $0x558] sm:$0xff] }
 0x6c6   :  { %2975 = vmatpush1.bf16.msra.mxu0 %v2546_v0  ;;  %3147 = vmatpush1.bf16.msra.mxu1 %v2548_v47  ;;  %v2623_v0 = vld [vmem:[#allocation4 + $0x540] sm:$0xff]  ;;  %v2625_v47 = vld [vmem:[#allocation4 + $0x550] sm:$0xff] }
 0x6c7   :  { %2976 = vmatprep.subr.bf16.mxu0 %v2554_v60  ;;  %3148 = vmatprep.subr.bf16.mxu1 %v2556_v55  ;;  %v2631_v60 = vld [vmem:[#allocation4 + $0x580] sm:$0xff]  ;;  %v2633_v55 = vld [vmem:[#allocation4 + $0x590] sm:$0xff] }
 0x6ca   :  { %2977 = vmatpush1.bf16.msra.mxu0 %v2553_v21  ;;  %3149 = vmatpush1.bf16.msra.mxu1 %v2555_v22  ;;  %v2630_v21 = vld [vmem:[#allocation4 + $0x578] sm:$0xff]  ;;  %v2632_v22 = vld [vmem:[#allocation4 + $0x588] sm:$0xff] }
 0x6cb   :  { %2978 = vmatprep.subr.bf16.mxu0 %v2561_v63  ;;  %3150 = vmatprep.subr.bf16.mxu1 %v2563_v23  ;;  %v2638_v63 = vld [vmem:[#allocation4 + $0x5b8] sm:$0xff]  ;;  %v2640_v23 = vld [vmem:[#allocation4 + $0x5c8] sm:$0xff] }
 0x6ce   :  { %2979 = vmatpush1.bf16.msra.mxu0 %v2560_v26  ;;  %3151 = vmatpush1.bf16.msra.mxu1 %v2562_v24  ;;  %v2637_v26 = vld [vmem:[#allocation4 + $0x5b0] sm:$0xff]  ;;  %v2639_v24 = vld [vmem:[#allocation4 + $0x5c0] sm:$0xff] }
 0x6cf   :  { %2991 = vmatprep.subr.bf16.mxu0 %v2568_v29  ;;  %3163 = vmatprep.subr.bf16.mxu1 %v2570_v25  ;;  %v2645_v29 = vld [vmem:[#allocation4 + $0x5f0] sm:$0xff]  ;;  %v2647_v25 = vld [vmem:[#allocation4 + $0x600] sm:$0xff] }
 0x6d1   :  { %2981 = vmatmul.mubr.bf16.vlgmr.msra.gmra.mrb[12].mxu0 %v5128_v43  ;;  %3153 = vmatmul.mubr.bf16.vlgmr.msra.gmra.mrb[20].mxu1 %v5128_v43 }
 0x6d2   :  { %2992 = vmatpush1.bf16.msra.mxu0 %v2567_v17  ;;  %3164 = vmatpush1.bf16.msra.mxu1 %v2569_v27  ;;  %v2644_v17 = vld [vmem:[#allocation4 + $0x5e8] sm:$0xff]  ;;  %v2646_v27 = vld [vmem:[#allocation4 + $0x5f8] sm:$0xff] }
 0x6d3   :  { %2993 = vmatprep.subr.bf16.mxu0 %v2575_v30  ;;  %3165 = vmatprep.subr.bf16.mxu1 %v2577_v54  ;;  %v2652_v30 = vld [vmem:[#allocation4 + $0x628] sm:$0xff]  ;;  %v2654_v54 = vld [vmem:[#allocation4 + $0x638] sm:$0xff] }
 0x6d4   :  { %3023 = vmatprep.mubr.bf16.mxu0 %v5132_v31  ;;  %3195 = vmatprep.mubr.bf16.mxu1 %v5132_v31 }
 0x6d6   :  { %2994 = vmatpush1.bf16.msra.mxu0 %v2574_v16  ;;  %3166 = vmatpush1.bf16.msra.mxu1 %v2576_v35  ;;  %v2651_v16 = vld [vmem:[#allocation4 + $0x620] sm:$0xff]  ;;  %v2653_v35 = vld [vmem:[#allocation4 + $0x630] sm:$0xff] }
 0x6d7   :  { %2995 = vmatprep.subr.bf16.mxu0 %v2582_v50  ;;  %3167 = vmatprep.subr.bf16.mxu1 %v2584_v46  ;;  %v2659_v50 = vld [vmem:[#allocation4 + $0x660] sm:$0xff]  ;;  %v2661_v46 = vld [vmem:[#allocation4 + $0x670] sm:$0xff] }
 0x6da   :  { %2996 = vmatpush1.bf16.msra.mxu0 %v2581_v37  ;;  %3168 = vmatpush1.bf16.msra.mxu1 %v2583_v5  ;;  %v2658_v37 = vld [vmem:[#allocation4 + $0x658] sm:$0xff]  ;;  %v2660_v5 = vld [vmem:[#allocation4 + $0x668] sm:$0xff] }
 0x6db   :  { %2997 = vmatprep.subr.bf16.mxu0 %v2589_v59  ;;  %3169 = vmatprep.subr.bf16.mxu1 %v2591_v3  ;;  %v2666_v59 = vld [vmem:[#allocation4 + $0x698] sm:$0xff]  ;;  %v2668_v3 = vld [vmem:[#allocation4 + $0x6a8] sm:$0xff] }
 0x6de   :  { %2998 = vmatpush1.bf16.msra.mxu0 %v2588_v19  ;;  %3170 = vmatpush1.bf16.msra.mxu1 %v2590_v53  ;;  %v2665_v19 = vld [vmem:[#allocation4 + $0x690] sm:$0xff]  ;;  %v2667_v53 = vld [vmem:[#allocation4 + $0x6a0] sm:$0xff] }
 0x6df   :  { %2999 = vmatprep.subr.bf16.mxu0 %v2596_v12  ;;  %3171 = vmatprep.subr.bf16.mxu1 %v2598_v32  ;;  %v2673_v12 = vld [vmem:[#allocation4 + $0x6d0] sm:$0xff]  ;;  %v2675_v32 = vld [vmem:[#allocation4 + $0x6e0] sm:$0xff] }
 0x6e2   :  { %3000 = vmatpush1.bf16.msra.mxu0 %v2595_v36  ;;  %3172 = vmatpush1.bf16.msra.mxu1 %v2597_v58  ;;  %v2672_v36 = vld [vmem:[#allocation4 + $0x6c8] sm:$0xff]  ;;  %v2674_v58 = vld [vmem:[#allocation4 + $0x6d8] sm:$0xff] }
 0x6e3   :  { %3001 = vmatprep.subr.bf16.mxu0 %v2603_v44  ;;  %3173 = vmatprep.subr.bf16.mxu1 %v2605_v14  ;;  %v2680_v44 = vld [vmem:[#allocation4 + $0x708] sm:$0xff]  ;;  %v2682_v14 = vld [vmem:[#allocation4 + $0x718] sm:$0xff] }
 0x6e6   :  { %3002 = vmatpush1.bf16.msra.mxu0 %v2602_v42  ;;  %3174 = vmatpush1.bf16.msra.mxu1 %v2604_v52  ;;  %v5140_v42 = vpack.c.bf16 %v5105_v61, %v5083_v33  ;;  %v2679_v52 = vld [vmem:[#allocation4 + $0x700] sm:$0xff]  ;;  %v2686_v33 = vld [vmem:[#allocation4 + $0x738] sm:$0xff]  ;;  %v2688_v61 = vld [vmem:[#allocation4 + $0x748] sm:$0xff] }
 0x6e7   :  { %3003 = vmatprep.subr.bf16.mxu0 %v2610_v49  ;;  %3175 = vmatprep.subr.bf16.mxu1 %v2612_v45  ;;  %v2681_v49 = vld [vmem:[#allocation4 + $0x710] sm:$0xff]  ;;  %v2687_v45 = vld [vmem:[#allocation4 + $0x740] sm:$0xff] }
 0x6ea   :  { %3004 = vmatpush1.bf16.msra.mxu0 %v2609_v4  ;;  %3176 = vmatpush1.bf16.msra.mxu1 %v2611_v51  ;;  %v2689_v4 = vld [vmem:[#allocation4 + $0x750] sm:$0xff]  ;;  %v5144_v51 = vpack.c.bf16 %v5114_v62, %v5092_v57  ;;  %v2695_v62 = vld [vmem:[#allocation4 + $0x780] sm:$0xff] }
 0x6eb   :  { %3005 = vmatprep.subr.bf16.mxu0 %v2617_v11  ;;  %3177 = vmatprep.subr.bf16.mxu1 %v2619_v18  ;;  %v2694_v11 = vld [vmem:[#allocation4 + $0x778] sm:$0xff]  ;;  %v2696_v18 = vld [vmem:[#allocation4 + $0x788] sm:$0xff]  ;;  %v2693_v57 = vld [vmem:[#allocation4 + $0x770] sm:$0xff] }
 0x6ee   :  { %3006 = vmatpush1.bf16.msra.mxu0 %v2616_v2  ;;  %3178 = vmatpush1.bf16.msra.mxu1 %v2618_v1  ;;  %v2701_v2 = vld [vmem:[#allocation4 + $0x7b0] sm:$0xff]  ;;  %v2703_v1 = vld [vmem:[#allocation4 + $0x7c0] sm:$0xff] }
 0x6ef   :  { %3007 = vmatprep.subr.bf16.mxu0 %v2624_v15  ;;  %3179 = vmatprep.subr.bf16.mxu1 %v2626_v20  ;;  %v2700_v15 = vld [vmem:[#allocation4 + $0x7a8] sm:$0xff]  ;;  %v2702_v20 = vld [vmem:[#allocation4 + $0x7b8] sm:$0xff] }
 0x6f2   :  { %3008 = vmatpush1.bf16.msra.mxu0 %v2623_v0  ;;  %3180 = vmatpush1.bf16.msra.mxu1 %v2625_v47  ;;  %v2708_v0 = vld [vmem:[#allocation4 + $0x7e8] sm:$0xff]  ;;  %v2710_v47 = vld [vmem:[#allocation4 + $0x7f8] sm:$0xff] }
 0x6f3   :  { %3009 = vmatprep.subr.bf16.mxu0 %v2631_v60  ;;  %3181 = vmatprep.subr.bf16.mxu1 %v2633_v55  ;;  %v2707_v60 = vld [vmem:[#allocation4 + $0x7e0] sm:$0xff]  ;;  %v2709_v55 = vld [vmem:[#allocation4 + $0x7f0] sm:$0xff] }
 0x6f6   :  { %3010 = vmatpush1.bf16.msra.mxu0 %v2630_v21  ;;  %3182 = vmatpush1.bf16.msra.mxu1 %v2632_v22  ;;  %v2715_v21 = vld [vmem:[#allocation4 + $0x820] sm:$0xff]  ;;  %v2717_v22 = vld [vmem:[#allocation4 + $0x830] sm:$0xff] }
 0x6f7   :  { %3011 = vmatprep.subr.bf16.mxu0 %v2638_v63  ;;  %3183 = vmatprep.subr.bf16.mxu1 %v2640_v23  ;;  %v2714_v63 = vld [vmem:[#allocation4 + $0x818] sm:$0xff]  ;;  %v2716_v23 = vld [vmem:[#allocation4 + $0x828] sm:$0xff] }
 0x6fa   :  { %3012 = vmatpush1.bf16.msra.mxu0 %v2637_v26  ;;  %3184 = vmatpush1.bf16.msra.mxu1 %v2639_v24  ;;  %v2722_v26 = vld [vmem:[#allocation4 + $0x858] sm:$0xff]  ;;  %v2724_v24 = vld [vmem:[#allocation4 + $0x868] sm:$0xff] }
 0x6fb   :  { %3013 = vmatprep.subr.bf16.mxu0 %v2645_v29  ;;  %3185 = vmatprep.subr.bf16.mxu1 %v2647_v25  ;;  %v2721_v29 = vld [vmem:[#allocation4 + $0x850] sm:$0xff]  ;;  %v2723_v25 = vld [vmem:[#allocation4 + $0x860] sm:$0xff] }
 0x6fe   :  { %3014 = vmatpush1.bf16.msra.mxu0 %v2644_v17  ;;  %3186 = vmatpush1.bf16.msra.mxu1 %v2646_v27  ;;  %v2729_v17 = vld [vmem:[#allocation4 + $0x890] sm:$0xff]  ;;  %v2731_v27 = vld [vmem:[#allocation4 + $0x8a0] sm:$0xff] }
 0x6ff   :  { %3015 = vmatprep.subr.bf16.mxu0 %v2652_v30  ;;  %3187 = vmatprep.subr.bf16.mxu1 %v2654_v54  ;;  %v2728_v30 = vld [vmem:[#allocation4 + $0x888] sm:$0xff]  ;;  %v2730_v54 = vld [vmem:[#allocation4 + $0x898] sm:$0xff] }
 0x702   :  { %3016 = vmatpush1.bf16.msra.mxu0 %v2651_v16  ;;  %3188 = vmatpush1.bf16.msra.mxu1 %v2653_v35  ;;  %v2736_v16 = vld [vmem:[#allocation4 + $0x8c8] sm:$0xff]  ;;  %v2738_v35 = vld [vmem:[#allocation4 + $0x8d8] sm:$0xff] }
 0x703   :  { %3017 = vmatprep.subr.bf16.mxu0 %v2659_v50  ;;  %3189 = vmatprep.subr.bf16.mxu1 %v2661_v46  ;;  %v2735_v50 = vld [vmem:[#allocation4 + $0x8c0] sm:$0xff]  ;;  %v2737_v46 = vld [vmem:[#allocation4 + $0x8d0] sm:$0xff] }
 0x706   :  { %3018 = vmatpush1.bf16.msra.mxu0 %v2658_v37  ;;  %3190 = vmatpush1.bf16.msra.mxu1 %v2660_v5  ;;  %v2743_v37 = vld [vmem:[#allocation4 + $0x900] sm:$0xff]  ;;  %v2745_v5 = vld [vmem:[#allocation4 + $0x910] sm:$0xff] }
 0x707   :  { %3019 = vmatprep.subr.bf16.mxu0 %v2666_v59  ;;  %3191 = vmatprep.subr.bf16.mxu1 %v2668_v3  ;;  %v2742_v59 = vld [vmem:[#allocation4 + $0x8f8] sm:$0xff]  ;;  %v2744_v3 = vld [vmem:[#allocation4 + $0x908] sm:$0xff] }
 0x70a   :  { %3020 = vmatpush1.bf16.msra.mxu0 %v2665_v19  ;;  %3192 = vmatpush1.bf16.msra.mxu1 %v2667_v53  ;;  %v2750_v19 = vld [vmem:[#allocation4 + $0x938] sm:$0xff]  ;;  %v2752_v53 = vld [vmem:[#allocation4 + $0x948] sm:$0xff] }
 0x70b   :  { %3021 = vmatprep.subr.bf16.mxu0 %v2673_v12  ;;  %3193 = vmatprep.subr.bf16.mxu1 %v2675_v32  ;;  %v2749_v12 = vld [vmem:[#allocation4 + $0x930] sm:$0xff]  ;;  %v2751_v32 = vld [vmem:[#allocation4 + $0x940] sm:$0xff] }
 0x70e   :  { %3022 = vmatpush1.bf16.msra.mxu0 %v2672_v36  ;;  %3194 = vmatpush1.bf16.msra.mxu1 %v2674_v58  ;;  %v2757_v36 = vld [vmem:[#allocation4 + $0x970] sm:$0xff]  ;;  %v2759_v58 = vld [vmem:[#allocation4 + $0x980] sm:$0xff] }
 0x70f   :  { %3034 = vmatprep.subr.bf16.mxu0 %v2680_v44  ;;  %3206 = vmatprep.subr.bf16.mxu1 %v2682_v14  ;;  %v2756_v44 = vld [vmem:[#allocation4 + $0x968] sm:$0xff]  ;;  %v2758_v14 = vld [vmem:[#allocation4 + $0x978] sm:$0xff] }
 0x711   :  { %3024 = vmatmul.mubr.bf16.vlgmr.msra.gmra.mrb[12].mxu0 %v5140_v42  ;;  %3196 = vmatmul.mubr.bf16.vlgmr.msra.gmra.mrb[20].mxu1 %v5140_v42 }
 0x712   :  { %3035 = vmatpush1.bf16.msra.mxu0 %v2679_v52  ;;  %3207 = vmatpush1.bf16.msra.mxu1 %v2681_v49  ;;  %v2764_v52 = vld [vmem:[#allocation4 + $0x9a8] sm:$0xff]  ;;  %v2766_v49 = vld [vmem:[#allocation4 + $0x9b8] sm:$0xff] }
 0x713   :  { %3036 = vmatprep.subr.bf16.mxu0 %v2687_v45  ;;  %3208 = vmatprep.subr.bf16.mxu1 %v2689_v4  ;;  %v2763_v45 = vld [vmem:[#allocation4 + $0x9a0] sm:$0xff]  ;;  %v2765_v4 = vld [vmem:[#allocation4 + $0x9b0] sm:$0xff] }
 0x714   :  { %3066 = vmatprep.mubr.bf16.mxu0 %v5144_v51  ;;  %3238 = vmatprep.mubr.bf16.mxu1 %v5144_v51 }
 0x716   :  { %3037 = vmatpush1.bf16.msra.mxu0 %v2686_v33  ;;  %3209 = vmatpush1.bf16.msra.mxu1 %v2688_v61  ;;  %v2771_v33 = vld [vmem:[#allocation4 + $0x9e0] sm:$0xff]  ;;  %v2773_v61 = vld [vmem:[#allocation4 + $0x9f0] sm:$0xff] }
 0x717   :  { %3038 = vmatprep.subr.bf16.mxu0 %v2694_v11  ;;  %3210 = vmatprep.subr.bf16.mxu1 %v2696_v18  ;;  %v2770_v11 = vld [vmem:[#allocation4 + $0x9d8] sm:$0xff]  ;;  %v2772_v18 = vld [vmem:[#allocation4 + $0x9e8] sm:$0xff] }
 0x71a   :  { %3039 = vmatpush1.bf16.msra.mxu0 %v2693_v57  ;;  %3211 = vmatpush1.bf16.msra.mxu1 %v2695_v62  ;;  %v2778_v57 = vld [vmem:[#allocation4 + $0xa18] sm:$0xff]  ;;  %v2780_v62 = vld [vmem:[#allocation4 + $0xa28] sm:$0xff] }
 0x71b   :  { %3040 = vmatprep.subr.bf16.mxu0 %v2701_v2  ;;  %3212 = vmatprep.subr.bf16.mxu1 %v2703_v1  ;;  %v2777_v2 = vld [vmem:[#allocation4 + $0xa10] sm:$0xff]  ;;  %v2779_v1 = vld [vmem:[#allocation4 + $0xa20] sm:$0xff] }
 0x71e   :  { %3041 = vmatpush1.bf16.msra.mxu0 %v2700_v15  ;;  %3213 = vmatpush1.bf16.msra.mxu1 %v2702_v20  ;;  %v2785_v15 = vld [vmem:[#allocation4 + $0xa50] sm:$0xff]  ;;  %v2787_v20 = vld [vmem:[#allocation4 + $0xa60] sm:$0xff] }
 0x71f   :  { %3042 = vmatprep.subr.bf16.mxu0 %v2708_v0  ;;  %3214 = vmatprep.subr.bf16.mxu1 %v2710_v47  ;;  %v2784_v0 = vld [vmem:[#allocation4 + $0xa48] sm:$0xff]  ;;  %v2786_v47 = vld [vmem:[#allocation4 + $0xa58] sm:$0xff] }
 0x722   :  { %3043 = vmatpush1.bf16.msra.mxu0 %v2707_v60  ;;  %3215 = vmatpush1.bf16.msra.mxu1 %v2709_v55  ;;  %v2792_v60 = vld [vmem:[#allocation4 + $0xa88] sm:$0xff]  ;;  %v2794_v55 = vld [vmem:[#allocation4 + $0xa98] sm:$0xff] }
 0x723   :  { %3044 = vmatprep.subr.bf16.mxu0 %v2715_v21  ;;  %3216 = vmatprep.subr.bf16.mxu1 %v2717_v22  ;;  %v5152_v21 = vpack.c.bf16 %v5111_v39, %v5089_v38  ;;  %v2791_v22 = vld [vmem:[#allocation4 + $0xa80] sm:$0xff]  ;;  %v2798_v38 = vld [vmem:[#allocation4 + $0xab8] sm:$0xff]  ;;  %v2800_v39 = vld [vmem:[#allocation4 + $0xac8] sm:$0xff] }
 0x726   :  { %3045 = vmatpush1.bf16.msra.mxu0 %v2714_v63  ;;  %3217 = vmatpush1.bf16.msra.mxu1 %v2716_v23  ;;  %v2793_v63 = vld [vmem:[#allocation4 + $0xa90] sm:$0xff]  ;;  %v2799_v23 = vld [vmem:[#allocation4 + $0xac0] sm:$0xff] }
 0x727   :  { %3046 = vmatprep.subr.bf16.mxu0 %v2722_v26  ;;  %3218 = vmatprep.subr.bf16.mxu1 %v2724_v24  ;;  %v2801_v26 = vld [vmem:[#allocation4 + $0xad0] sm:$0xff]  ;;  %v5156_v24 = vpack.c.bf16 %v5120_v56, %v5098_v34  ;;  %v2807_v56 = vld [vmem:[#allocation4 + $0xb00] sm:$0xff] }
 0x728   :  { %v2805_v34 = vld [vmem:[#allocation4 + $0xaf0] sm:$0xff] }
 0x72a   :  { %3047 = vmatpush1.bf16.msra.mxu0 %v2721_v29  ;;  %3219 = vmatpush1.bf16.msra.mxu1 %v2723_v25  ;;  %v2806_v29 = vld [vmem:[#allocation4 + $0xaf8] sm:$0xff]  ;;  %v2808_v25 = vld [vmem:[#allocation4 + $0xb08] sm:$0xff] }
 0x72b   :  { %3048 = vmatprep.subr.bf16.mxu0 %v2729_v17  ;;  %3220 = vmatprep.subr.bf16.mxu1 %v2731_v27  ;;  %v2813_v17 = vld [vmem:[#allocation4 + $0xb30] sm:$0xff]  ;;  %v2815_v27 = vld [vmem:[#allocation4 + $0xb40] sm:$0xff] }
 0x72e   :  { %3049 = vmatpush1.bf16.msra.mxu0 %v2728_v30  ;;  %3221 = vmatpush1.bf16.msra.mxu1 %v2730_v54  ;;  %v2812_v30 = vld [vmem:[#allocation4 + $0xb28] sm:$0xff]  ;;  %v2814_v54 = vld [vmem:[#allocation4 + $0xb38] sm:$0xff] }
 0x72f   :  { %3050 = vmatprep.subr.bf16.mxu0 %v2736_v16  ;;  %3222 = vmatprep.subr.bf16.mxu1 %v2738_v35  ;;  %v2820_v16 = vld [vmem:[#allocation4 + $0xb68] sm:$0xff]  ;;  %v2822_v35 = vld [vmem:[#allocation4 + $0xb78] sm:$0xff] }
 0x732   :  { %3051 = vmatpush1.bf16.msra.mxu0 %v2735_v50  ;;  %3223 = vmatpush1.bf16.msra.mxu1 %v2737_v46  ;;  %v2819_v50 = vld [vmem:[#allocation4 + $0xb60] sm:$0xff]  ;;  %v2821_v46 = vld [vmem:[#allocation4 + $0xb70] sm:$0xff] }
 0x733   :  { %3052 = vmatprep.subr.bf16.mxu0 %v2743_v37  ;;  %3224 = vmatprep.subr.bf16.mxu1 %v2745_v5  ;;  %v2827_v37 = vld [vmem:[#allocation4 + $0xba0] sm:$0xff]  ;;  %v2829_v5 = vld [vmem:[#allocation4 + $0xbb0] sm:$0xff] }
 0x736   :  { %3053 = vmatpush1.bf16.msra.mxu0 %v2742_v59  ;;  %3225 = vmatpush1.bf16.msra.mxu1 %v2744_v3  ;;  %v2826_v59 = vld [vmem:[#allocation4 + $0xb98] sm:$0xff]  ;;  %v2828_v3 = vld [vmem:[#allocation4 + $0xba8] sm:$0xff] }
 0x737   :  { %3054 = vmatprep.subr.bf16.mxu0 %v2750_v19  ;;  %3226 = vmatprep.subr.bf16.mxu1 %v2752_v53  ;;  %v2834_v19 = vld [vmem:[#allocation4 + $0xbd8] sm:$0xff]  ;;  %v2836_v53 = vld [vmem:[#allocation4 + $0xbe8] sm:$0xff] }
 0x73a   :  { %3055 = vmatpush1.bf16.msra.mxu0 %v2749_v12  ;;  %3227 = vmatpush1.bf16.msra.mxu1 %v2751_v32  ;;  %v2833_v12 = vld [vmem:[#allocation4 + $0xbd0] sm:$0xff]  ;;  %v2835_v32 = vld [vmem:[#allocation4 + $0xbe0] sm:$0xff] }
 0x73b   :  { %3056 = vmatprep.subr.bf16.mxu0 %v2757_v36  ;;  %3228 = vmatprep.subr.bf16.mxu1 %v2759_v58  ;;  %v2841_v36 = vld [vmem:[#allocation4 + $0xc10] sm:$0xff]  ;;  %v2843_v58 = vld [vmem:[#allocation4 + $0xc20] sm:$0xff] }
 0x73e   :  { %3057 = vmatpush1.bf16.msra.mxu0 %v2756_v44  ;;  %3229 = vmatpush1.bf16.msra.mxu1 %v2758_v14  ;;  %v2840_v44 = vld [vmem:[#allocation4 + $0xc08] sm:$0xff]  ;;  %v2842_v14 = vld [vmem:[#allocation4 + $0xc18] sm:$0xff] }
 0x73f   :  { %3058 = vmatprep.subr.bf16.mxu0 %v2764_v52  ;;  %3230 = vmatprep.subr.bf16.mxu1 %v2766_v49  ;;  %v2848_v52 = vld [vmem:[#allocation4 + $0xc48] sm:$0xff]  ;;  %v2850_v49 = vld [vmem:[#allocation4 + $0xc58] sm:$0xff] }
 0x742   :  { %3059 = vmatpush1.bf16.msra.mxu0 %v2763_v45  ;;  %3231 = vmatpush1.bf16.msra.mxu1 %v2765_v4  ;;  %v2847_v45 = vld [vmem:[#allocation4 + $0xc40] sm:$0xff]  ;;  %v2849_v4 = vld [vmem:[#allocation4 + $0xc50] sm:$0xff] }
 0x743   :  { %3060 = vmatprep.subr.bf16.mxu0 %v2771_v33  ;;  %3232 = vmatprep.subr.bf16.mxu1 %v2773_v61  ;;  %v2855_v33 = vld [vmem:[#allocation4 + $0xc80] sm:$0xff]  ;;  %v2857_v61 = vld [vmem:[#allocation4 + $0xc90] sm:$0xff] }
 0x746   :  { %3061 = vmatpush1.bf16.msra.mxu0 %v2770_v11  ;;  %3233 = vmatpush1.bf16.msra.mxu1 %v2772_v18  ;;  %v2854_v11 = vld [vmem:[#allocation4 + $0xc78] sm:$0xff]  ;;  %v2856_v18 = vld [vmem:[#allocation4 + $0xc88] sm:$0xff] }
 0x747   :  { %3062 = vmatprep.subr.bf16.mxu0 %v2778_v57  ;;  %3234 = vmatprep.subr.bf16.mxu1 %v2780_v62  ;;  %v2862_v57 = vld [vmem:[#allocation4 + $0xcb8] sm:$0xff]  ;;  %v2864_v62 = vld [vmem:[#allocation4 + $0xcc8] sm:$0xff] }
 0x74a   :  { %3063 = vmatpush1.bf16.msra.mxu0 %v2777_v2  ;;  %3235 = vmatpush1.bf16.msra.mxu1 %v2779_v1  ;;  %v2861_v2 = vld [vmem:[#allocation4 + $0xcb0] sm:$0xff]  ;;  %v2863_v1 = vld [vmem:[#allocation4 + $0xcc0] sm:$0xff] }
 0x74b   :  { %3064 = vmatprep.subr.bf16.mxu0 %v2785_v15  ;;  %3236 = vmatprep.subr.bf16.mxu1 %v2787_v20  ;;  %v2869_v15 = vld [vmem:[#allocation4 + $0xcf0] sm:$0xff]  ;;  %v2871_v20 = vld [vmem:[#allocation4 + $0xd00] sm:$0xff] }
 0x74e   :  { %3065 = vmatpush1.bf16.msra.mxu0 %v2784_v0  ;;  %3237 = vmatpush1.bf16.msra.mxu1 %v2786_v47  ;;  %v2868_v0 = vld [vmem:[#allocation4 + $0xce8] sm:$0xff]  ;;  %v2870_v47 = vld [vmem:[#allocation4 + $0xcf8] sm:$0xff] }
 0x74f   :  { %3077 = vmatprep.subr.bf16.mxu0 %v2792_v60  ;;  %3249 = vmatprep.subr.bf16.mxu1 %v2794_v55  ;;  %v2876_v60 = vld [vmem:[#allocation4 + $0xd28] sm:$0xff]  ;;  %v2878_v55 = vld [vmem:[#allocation4 + $0xd38] sm:$0xff] }
 0x751   :  { %3067 = vmatmul.mubr.bf16.vlgmr.msra.gmra.mrb[12].mxu0 %v5152_v21  ;;  %3239 = vmatmul.mubr.bf16.vlgmr.msra.gmra.mrb[20].mxu1 %v5152_v21 }
 0x752   :  { %3078 = vmatpush1.bf16.msra.mxu0 %v2791_v22  ;;  %3250 = vmatpush1.bf16.msra.mxu1 %v2793_v63  ;;  %v2875_v22 = vld [vmem:[#allocation4 + $0xd20] sm:$0xff]  ;;  %v2877_v63 = vld [vmem:[#allocation4 + $0xd30] sm:$0xff] }
 0x753   :  { %3079 = vmatprep.subr.bf16.mxu0 %v2799_v23  ;;  %3251 = vmatprep.subr.bf16.mxu1 %v2801_v26  ;;  %v2883_v23 = vld [vmem:[#allocation4 + $0xd60] sm:$0xff]  ;;  %v2885_v26 = vld [vmem:[#allocation4 + $0xd70] sm:$0xff] }
 0x754   :  { %3109 = vmatprep.mubr.bf16.mxu0 %v5156_v24  ;;  %3281 = vmatprep.mubr.bf16.mxu1 %v5156_v24 }
 0x756   :  { %3080 = vmatpush1.bf16.msra.mxu0 %v2798_v38  ;;  %3252 = vmatpush1.bf16.msra.mxu1 %v2800_v39  ;;  %v2882_v38 = vld [vmem:[#allocation4 + $0xd58] sm:$0xff]  ;;  %v2884_v39 = vld [vmem:[#allocation4 + $0xd68] sm:$0xff] }
 0x757   :  { %3081 = vmatprep.subr.bf16.mxu0 %v2806_v29  ;;  %3253 = vmatprep.subr.bf16.mxu1 %v2808_v25  ;;  %v2890_v29 = vld [vmem:[#allocation4 + $0xd98] sm:$0xff]  ;;  %v2892_v25 = vld [vmem:[#allocation4 + $0xda8] sm:$0xff] }
 0x75a   :  { %3082 = vmatpush1.bf16.msra.mxu0 %v2805_v34  ;;  %3254 = vmatpush1.bf16.msra.mxu1 %v2807_v56  ;;  %v2889_v34 = vld [vmem:[#allocation4 + $0xd90] sm:$0xff]  ;;  %v2891_v56 = vld [vmem:[#allocation4 + $0xda0] sm:$0xff] }
 0x75b   :  { %3083 = vmatprep.subr.bf16.mxu0 %v2813_v17  ;;  %3255 = vmatprep.subr.bf16.mxu1 %v2815_v27  ;;  %v2897_v17 = vld [vmem:[#allocation4 + $0xdd0] sm:$0xff]  ;;  %v2899_v27 = vld [vmem:[#allocation4 + $0xde0] sm:$0xff] }
 0x75e   :  { %3084 = vmatpush1.bf16.msra.mxu0 %v2812_v30  ;;  %3256 = vmatpush1.bf16.msra.mxu1 %v2814_v54  ;;  %v2896_v30 = vld [vmem:[#allocation4 + $0xdc8] sm:$0xff]  ;;  %v2898_v54 = vld [vmem:[#allocation4 + $0xdd8] sm:$0xff] }
 0x75f   :  { %3085 = vmatprep.subr.bf16.mxu0 %v2820_v16  ;;  %3257 = vmatprep.subr.bf16.mxu1 %v2822_v35  ;;  %v2460_v16 = vld [vmem:[#allocation4 + $0x28] sm:$0xff]  ;;  %v2517_v35 = vld [vmem:[#allocation4 + $0x1f0] sm:$0xff] }
 0x762   :  { %3086 = vmatpush1.bf16.msra.mxu0 %v2819_v50  ;;  %3258 = vmatpush1.bf16.msra.mxu1 %v2821_v46  ;;  %v5164_v50 = vpack.c.bf16 %v5117_v41, %v5095_v13  ;;  %v2459_v46 = vld [vmem:[#allocation4 + $0x20] sm:$0xff]  ;;  %v2474_v13 = vld [vmem:[#allocation4 + $0x98] sm:$0xff] }
 0x763   :  { %3087 = vmatprep.subr.bf16.mxu0 %v2827_v37  ;;  %3259 = vmatprep.subr.bf16.mxu1 %v2829_v5  ;;  %v2461_v37 = vld [vmem:[#allocation4 + $0x30] sm:$0xff]  ;;  %v2467_v5 = vld [vmem:[#allocation4 + $0x60] sm:$0xff] }
 0x764   :  { %v2531_v41 = vld [vmem:[#allocation4 + $0x260] sm:$0xff] }
 0x766   :  { %3088 = vmatpush1.bf16.msra.mxu0 %v2826_v59  ;;  %3260 = vmatpush1.bf16.msra.mxu1 %v2828_v3  ;;  %v2524_v59 = vld [vmem:[#allocation4 + $0x228] sm:$0xff]  ;;  %v2466_v3 = vld [vmem:[#allocation4 + $0x58] sm:$0xff] }
 0x767   :  { %3089 = vmatprep.subr.bf16.mxu0 %v2834_v19  ;;  %3261 = vmatprep.subr.bf16.mxu1 %v2836_v53  ;;  %v2468_v19 = vld [vmem:[#allocation4 + $0x68] sm:$0xff]  ;;  %v2473_v53 = vld [vmem:[#allocation4 + $0x90] sm:$0xff] }
 0x76a   :  { %3090 = vmatpush1.bf16.msra.mxu0 %v2833_v12  ;;  %3262 = vmatpush1.bf16.msra.mxu1 %v2835_v32  ;;  %v2475_v12 = vld [vmem:[#allocation4 + $0xa0] sm:$0xff]  ;;  %v2481_v32 = vld [vmem:[#allocation4 + $0xd0] sm:$0xff] }
 0x76b   :  { %3091 = vmatprep.subr.bf16.mxu0 %v2841_v36  ;;  %3263 = vmatprep.subr.bf16.mxu1 %v2843_v58  ;;  %v2538_v36 = vld [vmem:[#allocation4 + $0x298] sm:$0xff]  ;;  %v2480_v58 = vld [vmem:[#allocation4 + $0xc8] sm:$0xff] }
 0x76e   :  { %3092 = vmatpush1.bf16.msra.mxu0 %v2840_v44  ;;  %3264 = vmatpush1.bf16.msra.mxu1 %v2842_v14  ;;  %v2482_v44 = vld [vmem:[#allocation4 + $0xd8] sm:$0xff]  ;;  %v2488_v14 = vld [vmem:[#allocation4 + $0x108] sm:$0xff] }
 0x76f   :  { %3093 = vmatprep.subr.bf16.mxu0 %v2848_v52  ;;  %3265 = vmatprep.subr.bf16.mxu1 %v2850_v49  ;;  %v2545_v52 = vld [vmem:[#allocation4 + $0x2d0] sm:$0xff] }
 0x770   :  { %v2489_v49 = vld [vmem:[#allocation4 + $0x110] sm:$0xff] }
 0x772   :  { %3094 = vmatpush1.bf16.msra.mxu0 %v2847_v45  ;;  %3266 = vmatpush1.bf16.msra.mxu1 %v2849_v4  ;;  %v2495_v45 = vld [vmem:[#allocation4 + $0x140] sm:$0xff]  ;;  %v2552_v4 = vld [vmem:[#allocation4 + $0x308] sm:$0xff] }
 0x773   :  { %3095 = vmatprep.subr.bf16.mxu0 %v2855_v33  ;;  %3267 = vmatprep.subr.bf16.mxu1 %v2857_v61  ;;  %v2494_v33 = vld [vmem:[#allocation4 + $0x138] sm:$0xff]  ;;  %v2496_v61 = vld [vmem:[#allocation4 + $0x148] sm:$0xff] }
 0x776   :  { %3096 = vmatpush1.bf16.msra.mxu0 %v2854_v11  ;;  %3268 = vmatpush1.bf16.msra.mxu1 %v2856_v18  ;;  %v2502_v11 = vld [vmem:[#allocation4 + $0x178] sm:$0xff]  ;;  %v2559_v18 = vld [vmem:[#allocation4 + $0x340] sm:$0xff] }
 0x777   :  { %3097 = vmatprep.subr.bf16.mxu0 %v2862_v57  ;;  %3269 = vmatprep.subr.bf16.mxu1 %v2864_v62  ;;  %v2501_v57 = vld [vmem:[#allocation4 + $0x170] sm:$0xff]  ;;  %v2503_v62 = vld [vmem:[#allocation4 + $0x180] sm:$0xff] }
 0x77a   :  { %3098 = vmatpush1.bf16.msra.mxu0 %v2861_v2  ;;  %3270 = vmatpush1.bf16.msra.mxu1 %v2863_v1  ;;  %v2509_v2 = vld [vmem:[#allocation4 + $0x1b0] sm:$0xff]  ;;  %v2566_v1 = vld [vmem:[#allocation4 + $0x378] sm:$0xff] }
 0x77b   :  { %3099 = vmatprep.subr.bf16.mxu0 %v2869_v15  ;;  %3271 = vmatprep.subr.bf16.mxu1 %v2871_v20  ;;  %v2508_v15 = vld [vmem:[#allocation4 + $0x1a8] sm:$0xff]  ;;  %v2510_v20 = vld [vmem:[#allocation4 + $0x1b8] sm:$0xff] }
 0x77e   :  { %3100 = vmatpush1.bf16.msra.mxu0 %v2868_v0  ;;  %3272 = vmatpush1.bf16.msra.mxu1 %v2870_v47  ;;  %v2516_v0 = vld [vmem:[#allocation4 + $0x1e8] sm:$0xff]  ;;  %v2629_v47 = vld [vmem:[#allocation4 + $0x570] sm:$0xff] }
 0x77f   :  { %3101 = vmatprep.subr.bf16.mxu0 %v2876_v60  ;;  %3273 = vmatprep.subr.bf16.mxu1 %v2878_v55  ;;  %v2515_v60 = vld [vmem:[#allocation4 + $0x1e0] sm:$0xff]  ;;  %v2573_v55 = vld [vmem:[#allocation4 + $0x3b0] sm:$0xff] }
 0x782   :  { %3102 = vmatpush1.bf16.msra.mxu0 %v2875_v22  ;;  %3274 = vmatpush1.bf16.msra.mxu1 %v2877_v63  ;;  %v2523_v22 = vld [vmem:[#allocation4 + $0x220] sm:$0xff]  ;;  %v2636_v63 = vld [vmem:[#allocation4 + $0x5a8] sm:$0xff] }
 0x783   :  { %3103 = vmatprep.subr.bf16.mxu0 %v2883_v23  ;;  %3275 = vmatprep.subr.bf16.mxu1 %v2885_v26  ;;  %v2522_v23 = vld [vmem:[#allocation4 + $0x218] sm:$0xff]  ;;  %v2580_v26 = vld [vmem:[#allocation4 + $0x3e8] sm:$0xff] }
 0x786   :  { %3104 = vmatpush1.bf16.msra.mxu0 %v2882_v38  ;;  %3276 = vmatpush1.bf16.msra.mxu1 %v2884_v39  ;;  %v2530_v38 = vld [vmem:[#allocation4 + $0x258] sm:$0xff]  ;;  %v2643_v39 = vld [vmem:[#allocation4 + $0x5e0] sm:$0xff] }
 0x787   :  { %3105 = vmatprep.subr.bf16.mxu0 %v2890_v29  ;;  %3277 = vmatprep.subr.bf16.mxu1 %v2892_v25  ;;  %v2529_v29 = vld [vmem:[#allocation4 + $0x250] sm:$0xff]  ;;  %v2587_v25 = vld [vmem:[#allocation4 + $0x420] sm:$0xff] }
 0x78a   :  { %3106 = vmatpush1.bf16.msra.mxu0 %v2889_v34  ;;  %3278 = vmatpush1.bf16.msra.mxu1 %v2891_v56  ;;  %v2537_v34 = vld [vmem:[#allocation4 + $0x290] sm:$0xff]  ;;  %v2650_v56 = vld [vmem:[#allocation4 + $0x618] sm:$0xff] }
 0x78b   :  { %3107 = vmatprep.subr.bf16.mxu0 %v2897_v17  ;;  %3279 = vmatprep.subr.bf16.mxu1 %v2899_v27  ;;  %v2536_v17 = vld [vmem:[#allocation4 + $0x288] sm:$0xff]  ;;  %v2594_v27 = vld [vmem:[#allocation4 + $0x458] sm:$0xff] }
 0x78e   :  { %3108 = vmatpush1.bf16.msra.mxu0 %v2896_v30  ;;  %3280 = vmatpush1.bf16.msra.mxu1 %v2898_v54  ;;  %v2544_v30 = vld [vmem:[#allocation4 + $0x2c8] sm:$0xff]  ;;  %v2657_v54 = vld [vmem:[#allocation4 + $0x650] sm:$0xff] }
 0x78f   :  { %3292 = vmatprep.subr.bf16.mxu0 %v2460_v16  ;;  %3784 = vmatprep.subr.bf16.mxu1 %v2517_v35  ;;  %v2543_v16 = vld [vmem:[#allocation4 + $0x2c0] sm:$0xff]  ;;  %v2601_v35 = vld [vmem:[#allocation4 + $0x490] sm:$0xff] }
 0x791   :  { %3110 = vmatmul.mubr.bf16.vlgmr.msra.gmra.mrb[12].mxu0 %v5164_v50  ;;  %3282 = vmatmul.mubr.bf16.vlgmr.msra.gmra.mrb[20].mxu1 %v5164_v50 }
 0x792   :  { %3293 = vmatpush1.bf16.msra.mxu0 %v2459_v46  ;;  %3785 = vmatpush3.bf16.msra.mxu1 %v2461_v37  ;;  %v2551_v46 = vld [vmem:[#allocation4 + $0x300] sm:$0xff]  ;;  %v2664_v37 = vld [vmem:[#allocation4 + $0x688] sm:$0xff] }
 0x793   :  { %3294 = vmatprep.subr.bf16.mxu0 %v2467_v5  ;;  %3786 = vmatprep.subr.bf16.mxu1 %v2524_v59  ;;  %v2550_v5 = vld [vmem:[#allocation4 + $0x2f8] sm:$0xff]  ;;  %v2608_v59 = vld [vmem:[#allocation4 + $0x4c8] sm:$0xff] }
 0x794   :  { %3324 = vmatprep.mubr.bf16.mxu0 %v5122_v48  ;;  %3496 = vmatprep.mubr.bf16.mxu1 %v5122_v48  ;;  %v2487_v48 = vld [vmem:[#allocation4 + $0x100] sm:$0xff] }
 0x796   :  { %3295 = vmatpush1.bf16.msra.mxu0 %v2466_v3  ;;  %3787 = vmatpush3.bf16.msra.mxu1 %v2468_v19  ;;  %v2558_v3 = vld [vmem:[#allocation4 + $0x338] sm:$0xff]  ;;  %v2671_v19 = vld [vmem:[#allocation4 + $0x6c0] sm:$0xff] }
 0x797   :  { %3296 = vmatprep.subr.bf16.mxu0 %v2474_v13  ;;  %3788 = vmatprep.subr.bf16.mxu1 %v2531_v41  ;;  %v2557_v13 = vld [vmem:[#allocation4 + $0x330] sm:$0xff]  ;;  %v2615_v41 = vld [vmem:[#allocation4 + $0x500] sm:$0xff] }
 0x79a   :  { %3297 = vmatpush1.bf16.msra.mxu0 %v2473_v53  ;;  %3789 = vmatpush3.bf16.msra.mxu1 %v2475_v12  ;;  %v2565_v53 = vld [vmem:[#allocation4 + $0x370] sm:$0xff]  ;;  %v2678_v12 = vld [vmem:[#allocation4 + $0x6f8] sm:$0xff] }
 0x79b   :  { %3298 = vmatprep.subr.bf16.mxu0 %v2481_v32  ;;  %3790 = vmatprep.subr.bf16.mxu1 %v2538_v36  ;;  %v2564_v32 = vld [vmem:[#allocation4 + $0x368] sm:$0xff]  ;;  %v2622_v36 = vld [vmem:[#allocation4 + $0x538] sm:$0xff] }
 0x79e   :  { %3299 = vmatpush1.bf16.msra.mxu0 %v2480_v58  ;;  %3791 = vmatpush3.bf16.msra.mxu1 %v2482_v44  ;;  %v2572_v58 = vld [vmem:[#allocation4 + $0x3a8] sm:$0xff]  ;;  %v2741_v44 = vld [vmem:[#allocation4 + $0x8f0] sm:$0xff] }
 0x79f   :  { %3300 = vmatprep.subr.bf16.mxu0 %v2488_v14  ;;  %3792 = vmatprep.subr.bf16.mxu1 %v2545_v52  ;;  %v2571_v14 = vld [vmem:[#allocation4 + $0x3a0] sm:$0xff]  ;;  %v2685_v52 = vld [vmem:[#allocation4 + $0x730] sm:$0xff] }
 0x7a2   :  { %3301 = vmatpush1.bf16.msra.mxu0 %v2487_v48  ;;  %3793 = vmatpush3.bf16.msra.mxu1 %v2489_v49  ;;  %v2579_v48 = vld [vmem:[#allocation4 + $0x3e0] sm:$0xff]  ;;  %v2748_v49 = vld [vmem:[#allocation4 + $0x928] sm:$0xff] }
 0x7a3   :  { %3302 = vmatprep.subr.bf16.mxu0 %v2495_v45  ;;  %3794 = vmatprep.subr.bf16.mxu1 %v2552_v4  ;;  %v2578_v45 = vld [vmem:[#allocation4 + $0x3d8] sm:$0xff]  ;;  %v2692_v4 = vld [vmem:[#allocation4 + $0x768] sm:$0xff] }
 0x7a6   :  { %3303 = vmatpush1.bf16.msra.mxu0 %v2494_v33  ;;  %3795 = vmatpush3.bf16.msra.mxu1 %v2496_v61  ;;  %v2586_v33 = vld [vmem:[#allocation4 + $0x418] sm:$0xff]  ;;  %v2755_v61 = vld [vmem:[#allocation4 + $0x960] sm:$0xff] }
 0x7a7   :  { %3304 = vmatprep.subr.bf16.mxu0 %v2502_v11  ;;  %3796 = vmatprep.subr.bf16.mxu1 %v2559_v18  ;;  %v2585_v11 = vld [vmem:[#allocation4 + $0x410] sm:$0xff] }
 0x7a8   :  { %v2593_v18 = vld [vmem:[#allocation4 + $0x450] sm:$0xff] }
 0x7aa   :  { %3305 = vmatpush1.bf16.msra.mxu0 %v2501_v57  ;;  %3797 = vmatpush3.bf16.msra.mxu1 %v2503_v62  ;;  %v2762_v57 = vld [vmem:[#allocation4 + $0x998] sm:$0xff]  ;;  %v2592_v62 = vld [vmem:[#allocation4 + $0x448] sm:$0xff] }
 0x7ab   :  { %3306 = vmatprep.subr.bf16.mxu0 %v2509_v2  ;;  %3798 = vmatprep.subr.bf16.mxu1 %v2566_v1  ;;  %v2706_v2 = vld [vmem:[#allocation4 + $0x7d8] sm:$0xff]  ;;  %v2600_v1 = vld [vmem:[#allocation4 + $0x488] sm:$0xff] }
 0x7ae   :  { %3307 = vmatpush1.bf16.msra.mxu0 %v2508_v15  ;;  %3799 = vmatpush3.bf16.msra.mxu1 %v2510_v20  ;;  %v2769_v15 = vld [vmem:[#allocation4 + $0x9d0] sm:$0xff] }
 0x7af   :  { %3308 = vmatprep.subr.bf16.mxu0 %v2516_v0  ;;  %3806 = vmatprep.subr.bf16.mxu1 %v2629_v47  ;;  %v2713_v20 = vld [vmem:[#allocation4 + $0x810] sm:$0xff]  ;;  %v2607_v0 = vld [vmem:[#allocation4 + $0x4c0] sm:$0xff]  ;;  %v2776_v47 = vld [vmem:[#allocation4 + $0xa08] sm:$0xff] }
 0x7b1   :  { %3497 = vmatmul.mubr.bf16.vlgmr.msra.gmra.mrb[24].mxu1 %v5128_v43 }
 0x7b2   :  { %3309 = vmatpush1.bf16.msra.mxu0 %v2515_v60  ;;  %3807 = vmatpush3.bf16.msra.mxu1 %v2573_v55  ;;  %v2606_v60 = vld [vmem:[#allocation4 + $0x4b8] sm:$0xff]  ;;  %v2720_v55 = vld [vmem:[#allocation4 + $0x848] sm:$0xff] }
 0x7b3   :  { %3310 = vmatprep.subr.bf16.mxu0 %v2523_v22  ;;  %3808 = vmatprep.subr.bf16.mxu1 %v2636_v63  ;;  %v2614_v22 = vld [vmem:[#allocation4 + $0x4f8] sm:$0xff]  ;;  %v2783_v63 = vld [vmem:[#allocation4 + $0xa40] sm:$0xff] }
 0x7b4   :  { %3537 = vmatprep.mubr.bf16.mxu1 %v5132_v31 }
 0x7b6   :  { %3311 = vmatpush1.bf16.msra.mxu0 %v2522_v23  ;;  %3809 = vmatpush3.bf16.msra.mxu1 %v2580_v26  ;;  %v2613_v23 = vld [vmem:[#allocation4 + $0x4f0] sm:$0xff]  ;;  %v2727_v26 = vld [vmem:[#allocation4 + $0x880] sm:$0xff] }
 0x7b7   :  { %3312 = vmatprep.subr.bf16.mxu0 %v2530_v38  ;;  %3810 = vmatprep.subr.bf16.mxu1 %v2643_v39  ;;  %v2621_v38 = vld [vmem:[#allocation4 + $0x530] sm:$0xff]  ;;  %v2790_v39 = vld [vmem:[#allocation4 + $0xa78] sm:$0xff] }
 0x7ba   :  { %3313 = vmatpush1.bf16.msra.mxu0 %v2529_v29  ;;  %3811 = vmatpush3.bf16.msra.mxu1 %v2587_v25  ;;  %v2620_v29 = vld [vmem:[#allocation4 + $0x528] sm:$0xff]  ;;  %v2734_v25 = vld [vmem:[#allocation4 + $0x8b8] sm:$0xff] }
 0x7bb   :  { %3314 = vmatprep.subr.bf16.mxu0 %v2537_v34  ;;  %3812 = vmatprep.subr.bf16.mxu1 %v2650_v56  ;;  %v2628_v34 = vld [vmem:[#allocation4 + $0x568] sm:$0xff]  ;;  %v2853_v56 = vld [vmem:[#allocation4 + $0xc70] sm:$0xff] }
 0x7be   :  { %3315 = vmatpush1.bf16.msra.mxu0 %v2536_v17  ;;  %3813 = vmatpush3.bf16.msra.mxu1 %v2594_v27  ;;  %v2627_v17 = vld [vmem:[#allocation4 + $0x560] sm:$0xff]  ;;  %v2797_v27 = vld [vmem:[#allocation4 + $0xab0] sm:$0xff] }
 0x7bf   :  { %3316 = vmatprep.subr.bf16.mxu0 %v2544_v30  ;;  %3814 = vmatprep.subr.bf16.mxu1 %v2657_v54  ;;  %v2635_v30 = vld [vmem:[#allocation4 + $0x5a0] sm:$0xff]  ;;  %v2860_v54 = vld [vmem:[#allocation4 + $0xca8] sm:$0xff] }
 0x7c2   :  { %3317 = vmatpush1.bf16.msra.mxu0 %v2543_v16  ;;  %3815 = vmatpush3.bf16.msra.mxu1 %v2601_v35  ;;  %v2634_v16 = vld [vmem:[#allocation4 + $0x598] sm:$0xff]  ;;  %v2804_v35 = vld [vmem:[#allocation4 + $0xae8] sm:$0xff] }
 0x7c3   :  { %3318 = vmatprep.subr.bf16.mxu0 %v2551_v46  ;;  %3816 = vmatprep.subr.bf16.mxu1 %v2664_v37  ;;  %v2642_v46 = vld [vmem:[#allocation4 + $0x5d8] sm:$0xff]  ;;  %v2867_v37 = vld [vmem:[#allocation4 + $0xce0] sm:$0xff] }
 0x7c6   :  { %3319 = vmatpush1.bf16.msra.mxu0 %v2550_v5  ;;  %3817 = vmatpush3.bf16.msra.mxu1 %v2608_v59  ;;  %v2641_v5 = vld [vmem:[#allocation4 + $0x5d0] sm:$0xff]  ;;  %v2811_v59 = vld [vmem:[#allocation4 + $0xb20] sm:$0xff] }
 0x7c7   :  { %3320 = vmatprep.subr.bf16.mxu0 %v2558_v3  ;;  %3818 = vmatprep.subr.bf16.mxu1 %v2671_v19  ;;  %v2649_v3 = vld [vmem:[#allocation4 + $0x610] sm:$0xff]  ;;  %v2874_v19 = vld [vmem:[#allocation4 + $0xd18] sm:$0xff] }
 0x7ca   :  { %3321 = vmatpush1.bf16.msra.mxu0 %v2557_v13  ;;  %3819 = vmatpush3.bf16.msra.mxu1 %v2615_v41  ;;  %v2648_v13 = vld [vmem:[#allocation4 + $0x608] sm:$0xff]  ;;  %v2818_v41 = vld [vmem:[#allocation4 + $0xb58] sm:$0xff] }
 0x7cb   :  { %3322 = vmatprep.subr.bf16.mxu0 %v2565_v53  ;;  %3820 = vmatprep.subr.bf16.mxu1 %v2678_v12  ;;  %v2656_v53 = vld [vmem:[#allocation4 + $0x648] sm:$0xff]  ;;  %v2881_v12 = vld [vmem:[#allocation4 + $0xd50] sm:$0xff] }
 0x7ce   :  { %3323 = vmatpush1.bf16.msra.mxu0 %v2564_v32  ;;  %3821 = vmatpush3.bf16.msra.mxu1 %v2622_v36  ;;  %v2655_v32 = vld [vmem:[#allocation4 + $0x640] sm:$0xff]  ;;  %v2825_v36 = vld [vmem:[#allocation4 + $0xb90] sm:$0xff] }
 0x7cf   :  { %3335 = vmatprep.subr.bf16.mxu0 %v2572_v58  ;;  %3828 = vmatprep.subr.bf16.mxu1 %v2741_v44  ;;  %v2663_v58 = vld [vmem:[#allocation4 + $0x680] sm:$0xff]  ;;  %v2888_v44 = vld [vmem:[#allocation4 + $0xd88] sm:$0xff] }
 0x7d1   :  { %3325 = vmatmul.mubr.bf16.vlgmr.msra.gmra.mrb[16].mxu0 %v5128_v43  ;;  %3538 = vmatmul.mubr.bf16.vlgmr.msra.gmra.mrb[28].mxu1 %v5140_v42  ;;  %v2699_v43 = vld [vmem:[#allocation4 + $0x7a0] sm:$0xff] }
 0x7d2   :  { %3336 = vmatpush1.bf16.msra.mxu0 %v2571_v14  ;;  %3829 = vmatpush3.bf16.msra.mxu1 %v2685_v52  ;;  %v2662_v14 = vld [vmem:[#allocation4 + $0x678] sm:$0xff]  ;;  %v2832_v52 = vld [vmem:[#allocation4 + $0xbc8] sm:$0xff] }
 0x7d3   :  { %3337 = vmatprep.subr.bf16.mxu0 %v2579_v48  ;;  %3830 = vmatprep.subr.bf16.mxu1 %v2748_v49  ;;  %v2670_v48 = vld [vmem:[#allocation4 + $0x6b8] sm:$0xff]  ;;  %v2895_v49 = vld [vmem:[#allocation4 + $0xdc0] sm:$0xff] }
 0x7d4   :  { %3367 = vmatprep.mubr.bf16.mxu0 %v5132_v31  ;;  %3578 = vmatprep.mubr.bf16.mxu1 %v5144_v51  ;;  %v2599_v31 = vld [vmem:[#allocation4 + $0x480] sm:$0xff] }
 0x7d6   :  { %3338 = vmatpush1.bf16.msra.mxu0 %v2578_v45  ;;  %3831 = vmatpush3.bf16.msra.mxu1 %v2692_v4  ;;  %v2669_v45 = vld [vmem:[#allocation4 + $0x6b0] sm:$0xff]  ;;  %v2839_v4 = vld [vmem:[#allocation4 + $0xc00] sm:$0xff] }
 0x7d7   :  { %3339 = vmatprep.subr.bf16.mxu0 %v2586_v33  ;;  %3832 = vmatprep.subr.bf16.mxu1 %v2755_v61  ;;  %v2677_v33 = vld [vmem:[#allocation4 + $0x6f0] sm:$0xff]  ;;  %v2902_v61 = vld [vmem:[#allocation4 + $0xdf8] sm:$0xff] }
 0x7da   :  { %3340 = vmatpush1.bf16.msra.mxu0 %v2585_v11  ;;  %3833 = vmatpush3.bf16.msra.mxu1 %v2699_v43  ;;  %v2676_v11 = vld [vmem:[#allocation4 + $0x6e8] sm:$0xff]  ;;  %v2846_v43 = vld [vmem:[#allocation4 + $0xc38] sm:$0xff] }
 0x7db   :  { %3341 = vmatprep.subr.bf16.mxu0 %v2593_v18  ;;  %3834 = vmatprep.subr.bf16.mxu1 %v2762_v57  ;;  %v2684_v18 = vld [vmem:[#allocation4 + $0x728] sm:$0xff]  ;;  %v2683_v57 = vld [vmem:[#allocation4 + $0x720] sm:$0xff] }
 0x7de   :  { %3342 = vmatpush1.bf16.msra.mxu0 %v2592_v62  ;;  %3835 = vmatpush3.bf16.msra.mxu1 %v2706_v2  ;;  %v2691_v62 = vld [vmem:[#allocation4 + $0x760] sm:$0xff]  ;;  %v2690_v2 = vld [vmem:[#allocation4 + $0x758] sm:$0xff] }
 0x7df   :  { %3343 = vmatprep.subr.bf16.mxu0 %v2600_v1  ;;  %3836 = vmatprep.subr.bf16.mxu1 %v2769_v15  ;;  %v2698_v1 = vld [vmem:[#allocation4 + $0x798] sm:$0xff]  ;;  %v2697_v15 = vld [vmem:[#allocation4 + $0x790] sm:$0xff] }
 0x7e2   :  { %3344 = vmatpush1.bf16.msra.mxu0 %v2599_v31  ;;  %3837 = vmatpush3.bf16.msra.mxu1 %v2713_v20  ;;  %v2705_v31 = vld [vmem:[#allocation4 + $0x7d0] sm:$0xff]  ;;  %v2704_v20 = vld [vmem:[#allocation4 + $0x7c8] sm:$0xff] }
 0x7e3   :  { %3345 = vmatprep.subr.bf16.mxu0 %v2607_v0  ;;  %3838 = vmatprep.subr.bf16.mxu1 %v2776_v47  ;;  %v2712_v0 = vld [vmem:[#allocation4 + $0x808] sm:$0xff]  ;;  %v2711_v47 = vld [vmem:[#allocation4 + $0x800] sm:$0xff] }
 0x7e6   :  { %3346 = vmatpush1.bf16.msra.mxu0 %v2606_v60  ;;  %3839 = vmatpush3.bf16.msra.mxu1 %v2720_v55  ;;  %v2718_v60 = vld [vmem:[#allocation4 + $0x838] sm:$0xff] }
 0x7e7   :  { %3347 = vmatprep.subr.bf16.mxu0 %v2614_v22  ;;  %3840 = vmatprep.subr.bf16.mxu1 %v2783_v63  ;;  %v2726_v55 = vld [vmem:[#allocation4 + $0x878] sm:$0xff]  ;;  %v2733_v22 = vld [vmem:[#allocation4 + $0x8b0] sm:$0xff]  ;;  %v2732_v63 = vld [vmem:[#allocation4 + $0x8a8] sm:$0xff] }
 0x7ea   :  { %3348 = vmatpush1.bf16.msra.mxu0 %v2613_v23  ;;  %3841 = vmatpush3.bf16.msra.mxu1 %v2727_v26  ;;  %v2740_v23 = vld [vmem:[#allocation4 + $0x8e8] sm:$0xff]  ;;  %v2739_v26 = vld [vmem:[#allocation4 + $0x8e0] sm:$0xff] }
 0x7eb   :  { %3349 = vmatprep.subr.bf16.mxu0 %v2621_v38  ;;  %3842 = vmatprep.subr.bf16.mxu1 %v2790_v39  ;;  %v2747_v38 = vld [vmem:[#allocation4 + $0x920] sm:$0xff]  ;;  %v2746_v39 = vld [vmem:[#allocation4 + $0x918] sm:$0xff] }
 0x7ee   :  { %3350 = vmatpush1.bf16.msra.mxu0 %v2620_v29  ;;  %3843 = vmatpush3.bf16.msra.mxu1 %v2734_v25  ;;  %v2754_v29 = vld [vmem:[#allocation4 + $0x958] sm:$0xff]  ;;  %v2753_v25 = vld [vmem:[#allocation4 + $0x950] sm:$0xff] }
 0x7ef   :  { %3351 = vmatprep.subr.bf16.mxu0 %v2628_v34  ;;  %3850 = vmatprep.subr.bf16.mxu1 %v2853_v56  ;;  %v2761_v34 = vld [vmem:[#allocation4 + $0x990] sm:$0xff]  ;;  %v2760_v56 = vld [vmem:[#allocation4 + $0x988] sm:$0xff] }
 0x7f1   :  { %3579 = vmatmul.mubr.bf16.vlgmr.msra.gmra.mrb[32].mxu1 %v5152_v21 }
 0x7f2   :  { %3352 = vmatpush1.bf16.msra.mxu0 %v2627_v17  ;;  %3851 = vmatpush3.bf16.msra.mxu1 %v2797_v27  ;;  %v2768_v17 = vld [vmem:[#allocation4 + $0x9c8] sm:$0xff]  ;;  %v2767_v27 = vld [vmem:[#allocation4 + $0x9c0] sm:$0xff] }
 0x7f3   :  { %3353 = vmatprep.subr.bf16.mxu0 %v2635_v30  ;;  %3852 = vmatprep.subr.bf16.mxu1 %v2860_v54  ;;  %v2775_v30 = vld [vmem:[#allocation4 + $0xa00] sm:$0xff]  ;;  %v2774_v54 = vld [vmem:[#allocation4 + $0x9f8] sm:$0xff] }
 0x7f4   :  { %3619 = vmatprep.mubr.bf16.mxu1 %v5156_v24 }
 0x7f6   :  { %3354 = vmatpush1.bf16.msra.mxu0 %v2634_v16  ;;  %3853 = vmatpush3.bf16.msra.mxu1 %v2804_v35  ;;  %v2782_v16 = vld [vmem:[#allocation4 + $0xa38] sm:$0xff]  ;;  %v2781_v35 = vld [vmem:[#allocation4 + $0xa30] sm:$0xff] }
 0x7f7   :  { %3355 = vmatprep.subr.bf16.mxu0 %v2642_v46  ;;  %3854 = vmatprep.subr.bf16.mxu1 %v2867_v37  ;;  %v2789_v46 = vld [vmem:[#allocation4 + $0xa70] sm:$0xff]  ;;  %v2788_v37 = vld [vmem:[#allocation4 + $0xa68] sm:$0xff] }
 0x7fa   :  { %3356 = vmatpush1.bf16.msra.mxu0 %v2641_v5  ;;  %3855 = vmatpush3.bf16.msra.mxu1 %v2811_v59  ;;  %v2796_v5 = vld [vmem:[#allocation4 + $0xaa8] sm:$0xff]  ;;  %v2795_v59 = vld [vmem:[#allocation4 + $0xaa0] sm:$0xff] }
 0x7fb   :  { %3357 = vmatprep.subr.bf16.mxu0 %v2649_v3  ;;  %3856 = vmatprep.subr.bf16.mxu1 %v2874_v19  ;;  %v2803_v3 = vld [vmem:[#allocation4 + $0xae0] sm:$0xff]  ;;  %v2802_v19 = vld [vmem:[#allocation4 + $0xad8] sm:$0xff] }
 0x7fe   :  { %3358 = vmatpush1.bf16.msra.mxu0 %v2648_v13  ;;  %3857 = vmatpush3.bf16.msra.mxu1 %v2818_v41  ;;  %v2810_v13 = vld [vmem:[#allocation4 + $0xb18] sm:$0xff]  ;;  %v2809_v41 = vld [vmem:[#allocation4 + $0xb10] sm:$0xff] }
 0x7ff   :  { %3359 = vmatprep.subr.bf16.mxu0 %v2656_v53  ;;  %3858 = vmatprep.subr.bf16.mxu1 %v2881_v12  ;;  %v2817_v53 = vld [vmem:[#allocation4 + $0xb50] sm:$0xff]  ;;  %v2816_v12 = vld [vmem:[#allocation4 + $0xb48] sm:$0xff] }
 0x802   :  { %3360 = vmatpush1.bf16.msra.mxu0 %v2655_v32  ;;  %3859 = vmatpush3.bf16.msra.mxu1 %v2825_v36  ;;  %v2824_v32 = vld [vmem:[#allocation4 + $0xb88] sm:$0xff] }
 0x803   :  { %3361 = vmatprep.subr.bf16.mxu0 %v2663_v58  ;;  %3860 = vmatprep.subr.bf16.mxu1 %v2888_v44  ;;  %v5183_v36 = vld [vmem:[#allocation23] sm:$0xff]  ;;  %v2823_v58 = vld [vmem:[#allocation4 + $0xb80] sm:$0xff] }
 0x804   :  { %v2924_v44 = vrot.slane %v5183_v36, %v4841_v6 }
 0x806   :  { %3362 = vmatpush1.bf16.msra.mxu0 %v2662_v14  ;;  %3861 = vmatpush3.bf16.msra.mxu1 %v2832_v52  ;;  %v2920_v14 = vrot.slane %v5183_v36, %v4773_v8  ;;  %v2928_v52 = vrot.slane %v5183_v36, %v4844_v9  ;;  %v2837_v9 = vld [vmem:[#allocation4 + $0xbf0] sm:$0xff] }
 0x807   :  { %3363 = vmatprep.subr.bf16.mxu0 %v2670_v48  ;;  %3862 = vmatprep.subr.bf16.mxu1 %v2895_v49  ;;  %v2830_v48 = vld [vmem:[#allocation4 + $0xbb8] sm:$0xff] }
 0x80a   :  { %3364 = vmatpush1.bf16.msra.mxu0 %v2669_v45  ;;  %3863 = vmatpush3.bf16.msra.mxu1 %v2839_v4  ;;  %v2838_v4 = vld [vmem:[#allocation4 + $0xbf8] sm:$0xff] }
 0x80b   :  { %3365 = vmatprep.subr.bf16.mxu0 %v2677_v33  ;;  %3864 = vmatprep.subr.bf16.mxu1 %v2902_v61 }
 0x80e   :  { %3366 = vmatpush1.bf16.msra.mxu0 %v2676_v11  ;;  %3865 = vmatpush3.bf16.msra.mxu1 %v2846_v43 }
 0x80f   :  { %3378 = vmatprep.subr.bf16.mxu0 %v2684_v18 }
 0x811   :  { %3368 = vmatmul.mubr.bf16.vlgmr.msra.gmra.mrb[16].mxu0 %v5140_v42  ;;  %3620 = vmatmul.mubr.bf16.vlgmr.msra.gmra.mrb[36].mxu1 %v5164_v50  ;;  %v2719_v42 = vld [vmem:[#allocation4 + $0x840] sm:$0xff] }
 0x812   :  { %3379 = vmatpush1.bf16.msra.mxu0 %v2683_v57  ;;  %3410 = vmatprep.mubr.bf16.mxu0 %v5144_v51  ;;  %v2725_v51 = vld [vmem:[#allocation4 + $0x870] sm:$0xff] }
 0x813   :  { %3380 = vmatprep.subr.bf16.mxu0 %v2691_v62 }
 0x816   :  { %3381 = vmatpush1.bf16.msra.mxu0 %v2690_v2 }
 0x817   :  { %3382 = vmatprep.subr.bf16.mxu0 %v2698_v1 }
 0x81a   :  { %3383 = vmatpush1.bf16.msra.mxu0 %v2697_v15  ;;  %v2845_v15 = vld [vmem:[#allocation4 + $0xc30] sm:$0xff] }
 0x81b   :  { %3384 = vmatprep.subr.bf16.mxu0 %v2705_v31 }
 0x81e   :  { %3385 = vmatpush1.bf16.msra.mxu0 %v2704_v20 }
 0x81f   :  { %3386 = vmatprep.subr.bf16.mxu0 %v2712_v0  ;;  %v2844_v0 = vld [vmem:[#allocation4 + $0xc28] sm:$0xff] }
 0x822   :  { %3387 = vmatpush1.bf16.msra.mxu0 %v2711_v47  ;;  %v2852_v47 = vld [vmem:[#allocation4 + $0xc68] sm:$0xff] }
 0x823   :  { %3388 = vmatprep.subr.bf16.mxu0 %v2719_v42  ;;  %v2851_v42 = vld [vmem:[#allocation4 + $0xc60] sm:$0xff] }
 0x826   :  { %3389 = vmatpush1.bf16.msra.mxu0 %v2718_v60  ;;  %v2859_v60 = vld [vmem:[#allocation4 + $0xca0] sm:$0xff] }
 0x827   :  { %3390 = vmatprep.subr.bf16.mxu0 %v2726_v55 }
 0x82a   :  { %3391 = vmatpush1.bf16.msra.mxu0 %v2725_v51 }
 0x82b   :  { %3392 = vmatprep.subr.bf16.mxu0 %v2733_v22 }
 0x82e   :  { %3393 = vmatpush1.bf16.msra.mxu0 %v2732_v63  ;;  %v2858_v63 = vld [vmem:[#allocation4 + $0xc98] sm:$0xff] }
 0x82f   :  { %3394 = vmatprep.subr.bf16.mxu0 %v2740_v23 }
 0x832   :  { %3395 = vmatpush1.bf16.msra.mxu0 %v2739_v26  ;;  %v2866_v26 = vld [vmem:[#allocation4 + $0xcd8] sm:$0xff] }
 0x833   :  { %3396 = vmatprep.subr.bf16.mxu0 %v2747_v38 }
 0x836   :  { %3397 = vmatpush1.bf16.msra.mxu0 %v2746_v39 }
 0x837   :  { %3398 = vmatprep.subr.bf16.mxu0 %v2754_v29 }
 0x83a   :  { %3399 = vmatpush1.bf16.msra.mxu0 %v2753_v25  ;;  %v2865_v25 = vld [vmem:[#allocation4 + $0xcd0] sm:$0xff] }
 0x83b   :  { %3400 = vmatprep.subr.bf16.mxu0 %v2761_v34 }
 0x83e   :  { %3401 = vmatpush1.bf16.msra.mxu0 %v2760_v56  ;;  %v2873_v56 = vld [vmem:[#allocation4 + $0xd10] sm:$0xff] }
 0x83f   :  { %3402 = vmatprep.subr.bf16.mxu0 %v2768_v17  ;;  %v2872_v17 = vld [vmem:[#allocation4 + $0xd08] sm:$0xff] }
 0x842   :  { %3403 = vmatpush1.bf16.msra.mxu0 %v2767_v27  ;;  %v2880_v27 = vld [vmem:[#allocation4 + $0xd48] sm:$0xff] }
 0x843   :  { %3404 = vmatprep.subr.bf16.mxu0 %v2775_v30  ;;  %v2879_v30 = vld [vmem:[#allocation4 + $0xd40] sm:$0xff] }
 0x846   :  { %3405 = vmatpush1.bf16.msra.mxu0 %v2774_v54  ;;  %v2887_v54 = vld [vmem:[#allocation4 + $0xd80] sm:$0xff] }
 0x847   :  { %3406 = vmatprep.subr.bf16.mxu0 %v2782_v16  ;;  %v2886_v16 = vld [vmem:[#allocation4 + $0xd78] sm:$0xff] }
 0x84a   :  { %3407 = vmatpush1.bf16.msra.mxu0 %v2781_v35  ;;  %v2894_v35 = vld [vmem:[#allocation4 + $0xdb8] sm:$0xff] }
 0x84b   :  { %3408 = vmatprep.subr.bf16.mxu0 %v2789_v46 }
 0x84e   :  { %3409 = vmatpush1.bf16.msra.mxu0 %v2788_v37 }
 0x84f   :  { %3421 = vmatprep.subr.bf16.mxu0 %v2796_v5 }
 0x851   :  { %3411 = vmatmul.mubr.bf16.vlgmr.msra.gmra.mrb[16].mxu0 %v5152_v21  ;;  %v2831_v21 = vld [vmem:[#allocation4 + $0xbc0] sm:$0xff] }
 0x852   :  { %3422 = vmatpush1.bf16.msra.mxu0 %v2795_v59  ;;  %3453 = vmatprep.mubr.bf16.mxu0 %v5156_v24  ;;  %v2916_v24 = vrot.slane %v5183_v36, %v4770_v7 }
 0x853   :  { %3423 = vmatprep.subr.bf16.mxu0 %v2803_v3  ;;  %v2893_v3 = vld [vmem:[#allocation4 + $0xdb0] sm:$0xff] }
 0x856   :  { %3424 = vmatpush1.bf16.msra.mxu0 %v2802_v19 }
 0x857   :  { %3425 = vmatprep.subr.bf16.mxu0 %v2810_v13  ;;  %v2901_v13 = vld [vmem:[#allocation4 + $0xdf0] sm:$0xff] }
 0x85a   :  { %3426 = vmatpush1.bf16.msra.mxu0 %v2809_v41 }
 0x85b   :  { %3427 = vmatprep.subr.bf16.mxu0 %v2817_v53  ;;  %v2900_v53 = vld [vmem:[#allocation4 + $0xde8] sm:$0xff] }
 0x85e   :  { %3428 = vmatpush1.bf16.msra.mxu0 %v2816_v12  ;;  %v2940_v12 = vrot.slane %v5183_v36, %v5035_v28 }
 0x85f   :  { %3429 = vmatprep.subr.bf16.mxu0 %v2824_v32 }
 0x862   :  { %3430 = vmatpush1.bf16.msra.mxu0 %v2823_v58 }
 0x863   :  { %3431 = vmatprep.subr.bf16.mxu0 %v2831_v21 }
 0x864   :  { %v3111_v49 = vpop.f32.mrb[12].mxu0  ;;  %v3283_v45 = vpop.f32.mrb[20].mxu1 }
 0x865   :  { %v3892_v33 = vadd.f32 %v3111_v49, %v2916_v24  ;;  %v3896_v61 = vadd.f32 %v3283_v45, %v2924_v44  ;;  %v3113_v11 = vpop.f32.mrb[13].mxu0  ;;  %v3285_v43 = vpop.f32.mrb[21].mxu1 }
 0x866   :  { %v3893_v7 = vadd.f32 %v3113_v11, %v2920_v14  ;;  %v3897_v18 = vadd.f32 %v3285_v43, %v2928_v52  ;;  %v3115_v57 = vpop.f32.mrb[14].mxu0  ;;  %v3287_v6 = vpop.f32.mrb[22].mxu1  ;;  %3432 = vmatpush1.bf16.msra.mxu0 %v2830_v48 }
 0x867   :  { %4146 = vtanh.f32 %v3892_v33  ;;  %v3894_v62 = vadd.f32 %v3115_v57, %v2916_v24  ;;  %v3117_v8 = vpop.f32.mrb[15].mxu0  ;;  %v3289_v2 = vpop.f32.mrb[23].mxu1  ;;  %3433 = vmatprep.subr.bf16.mxu0 %v2838_v4  ;;  %v3898_v1 = vadd.f32 %v3287_v6, %v2924_v44 }
 0x868   :  { %4148 = vtanh.f32 %v3896_v61  ;;  %v3895_v31 = vadd.f32 %v3117_v8, %v2920_v14  ;;  %v3899_v20 = vadd.f32 %v3289_v2, %v2928_v52 }
 0x869   :  { %4150 = vtanh.f32 %v3893_v7 }
 0x86a   :  { %4152 = vtanh.f32 %v3897_v18  ;;  %3434 = vmatpush1.bf16.msra.mxu0 %v2837_v9 }
 0x86b   :  { %4154 = vtanh.f32 %v3894_v62  ;;  %3435 = vmatprep.subr.bf16.mxu0 %v2845_v15 }
 0x86c   :  { %4156 = vtanh.f32 %v3898_v1 }
 0x86d   :  { %4158 = vtanh.f32 %v3895_v31 }
 0x86e   :  { %4160 = vtanh.f32 %v3899_v20  ;;  %3436 = vmatpush1.bf16.msra.mxu0 %v2844_v0  ;;  %v2932_v20 = vrot.slane %v5183_v36, %v5029_v10  ;;  %v2936_v0 = vrot.slane %v5183_v36, %v5032_v40 }
 0x86f   :  { %3437 = vmatprep.subr.bf16.mxu0 %v2852_v47 }
 0x871   :  { %v4147_v55 = vpop.eup %4146 }
 0x872   :  { %v4149_v51 = vpop.eup %4148  ;;  %3642 = vst [vmem:[%s5256_s14] sm:$0xff] %v4147_v55  ;;  %3438 = vmatpush1.bf16.msra.mxu0 %v2851_v42 }
 0x873   :  { %v4151_v22 = vpop.eup %4150  ;;  %3644 = vst [vmem:[%s5256_s14 + $0x10] sm:$0xff] %v4149_v51  ;;  %3439 = vmatprep.subr.bf16.mxu0 %v2859_v60 }
 0x874   :  { %v4153_v23 = vpop.eup %4152  ;;  %3643 = vst [vmem:[%s5256_s14 + $0x8] sm:$0xff] %v4151_v22 }
 0x875   :  { %v4155_v38 = vpop.eup %4154  ;;  %3645 = vst [vmem:[%s5256_s14 + $0x18] sm:$0xff] %v4153_v23 }
 0x876   :  { %v4157_v39 = vpop.eup %4156  ;;  %3649 = vst [vmem:[%s5256_s14 + $0x38] sm:$0xff] %v4155_v38  ;;  %3440 = vmatpush1.bf16.msra.mxu0 %v2858_v63 }
 0x877   :  { %v4159_v29 = vpop.eup %4158  ;;  %3651 = vst [vmem:[%s5256_s14 + $0x48] sm:$0xff] %v4157_v39  ;;  %3441 = vmatprep.subr.bf16.mxu0 %v2866_v26 }
 0x878   :  { %v4161_v34 = vpop.eup %4160  ;;  %3650 = vst [vmem:[%s5256_s14 + $0x40] sm:$0xff] %v4159_v29 }
 0x879   :  { %3652 = vst [vmem:[%s5256_s14 + $0x50] sm:$0xff] %v4161_v34 }
 0x87a   :  { %3442 = vmatpush1.bf16.msra.mxu0 %v2865_v25 }
 0x87b   :  { %3443 = vmatprep.subr.bf16.mxu0 %v2873_v56 }
 0x87e   :  { %3444 = vmatpush1.bf16.msra.mxu0 %v2872_v17 }
 0x87f   :  { %3445 = vmatprep.subr.bf16.mxu0 %v2880_v27 }
 0x882   :  { %3446 = vmatpush1.bf16.msra.mxu0 %v2879_v30 }
 0x883   :  { %3447 = vmatprep.subr.bf16.mxu0 %v2887_v54 }
 0x884   :  { %v3800_v46 = vpop.f32.mrb[24].mxu1 }
 0x885   :  { %v3801_v37 = vpop.f32.mrb[25].mxu1 }
 0x886   :  { %3448 = vmatpush1.bf16.msra.mxu0 %v2886_v16  ;;  %v3802_v5 = vadd.f32 %v3801_v37, %v3800_v46  ;;  %v3803_v59 = vpop.f32.mrb[26].mxu1 }
 0x887   :  { %3449 = vmatprep.subr.bf16.mxu0 %v2894_v35  ;;  %v3804_v19 = vpop.f32.mrb[27].mxu1 }
 0x888   :  { %v3805_v41 = vadd.f32 %v3804_v19, %v3803_v59  ;;  %v3499_v32 = vadd.f32 %v3802_v5, %v2940_v12 }
 0x88a   :  { %3450 = vmatpush1.bf16.msra.mxu0 %v2893_v3  ;;  %v3502_v24 = vadd.f32 %v3805_v41, %v2940_v12 }
 0x88b   :  { %3451 = vmatprep.subr.bf16.mxu0 %v2901_v13 }
 0x88e   :  { %3452 = vmatpush1.bf16.msra.mxu0 %v2900_v53 }
 0x891   :  { %3454 = vmatmul.mubr.bf16.vlgmr.msra.gmra.mrb[16].mxu0 %v5164_v50 }
 0x8a4   :  { %v3822_v58 = vpop.f32.mrb[28].mxu1 }
 0x8a5   :  { %v3823_v21 = vpop.f32.mrb[29].mxu1 }
 0x8a6   :  { %v3824_v44 = vadd.f32 %v3823_v21, %v3822_v58  ;;  %v3825_v14 = vpop.f32.mrb[30].mxu1 }
 0x8a7   :  { %v3826_v52 = vpop.f32.mrb[31].mxu1 }
 0x8a8   :  { %v3540_v48 = vadd.f32 %v3824_v44, %v3499_v32  ;;  %v3827_v49 = vadd.f32 %v3826_v52, %v3825_v14 }
 0x8aa   :  { %v3543_v45 = vadd.f32 %v3827_v49, %v3502_v24 }
 0x8c4   :  { %v3844_v4 = vpop.f32.mrb[32].mxu1 }
 0x8c5   :  { %v3845_v33 = vpop.f32.mrb[33].mxu1 }
 0x8c6   :  { %v3846_v61 = vadd.f32 %v3845_v33, %v3844_v4  ;;  %v3847_v11 = vpop.f32.mrb[34].mxu1 }
 0x8c7   :  { %v3848_v43 = vpop.f32.mrb[35].mxu1 }
 0x8c8   :  { %v3581_v7 = vadd.f32 %v3846_v61, %v3540_v48  ;;  %v3849_v50 = vadd.f32 %v3848_v43, %v3847_v11 }
 0x8ca   :  { %v3584_v18 = vadd.f32 %v3849_v50, %v3543_v45 }
 0x8e4   :  { %v3866_v57 = vpop.f32.mrb[36].mxu1 }
 0x8e5   :  { %v3867_v28 = vpop.f32.mrb[37].mxu1 }
 0x8e6   :  { %v3868_v6 = vadd.f32 %v3867_v28, %v3866_v57  ;;  %v3869_v62 = vpop.f32.mrb[38].mxu1 }
 0x8e7   :  { %v3870_v8 = vpop.f32.mrb[39].mxu1 }
 0x8e8   :  { %v3622_v2 = vadd.f32 %v3868_v6, %v3581_v7  ;;  %v3871_v9 = vadd.f32 %v3870_v8, %v3869_v62 }
 0x8ea   :  { %4162 = vtanh.f32 %v3622_v2  ;;  %v3625_v1 = vadd.f32 %v3871_v9, %v3584_v18 }
 0x8ec   :  { %4164 = vtanh.f32 %v3625_v1 }
 0x8f4   :  { %v4163_v15 = vpop.eup %4162 }
 0x8f5   :  { %3648 = vst [vmem:[%s5256_s14 + $0x30] sm:$0xff] %v4163_v15 }
 0x8f6   :  { %v4165_v31 = vpop.eup %4164 }
 0x8f7   :  { %3655 = vst [vmem:[%s5256_s14 + $0x68] sm:$0xff] %v4165_v31 }
 0x964   :  { %v3455_v47 = vpop.f32.mrb[16].mxu0 }
 0x965   :  { %v3900_v42 = vadd.f32 %v3455_v47, %v2932_v20  ;;  %v3457_v60 = vpop.f32.mrb[17].mxu0 }
 0x966   :  { %v3901_v55 = vadd.f32 %v3457_v60, %v2936_v0  ;;  %v3459_v51 = vpop.f32.mrb[18].mxu0 }
 0x967   :  { %4166 = vtanh.f32 %v3900_v42  ;;  %v3902_v22 = vadd.f32 %v3459_v51, %v2932_v20  ;;  %v3461_v63 = vpop.f32.mrb[19].mxu0 }
 0x968   :  { %4168 = vtanh.f32 %v3901_v55  ;;  %v3903_v23 = vadd.f32 %v3461_v63, %v2936_v0 }
 0x969   :  { %4170 = vtanh.f32 %v3902_v22 }
 0x96a   :  { %4172 = vtanh.f32 %v3903_v23 }
 0x971   :  { %v4167_v26 = vpop.eup %4166 }
 0x972   :  { %v4169_v38 = vpop.eup %4168  ;;  %3646 = vst [vmem:[%s5256_s14 + $0x20] sm:$0xff] %v4167_v26 }
 0x973   :  { %v4171_v10 = vpop.eup %4170  ;;  %3647 = vst [vmem:[%s5256_s14 + $0x28] sm:$0xff] %v4169_v38 }
 0x974   :  { %v4173_v40 = vpop.eup %4172  ;;  %3653 = vst [vmem:[%s5256_s14 + $0x58] sm:$0xff] %v4171_v10 }
 0x975   :  { %3654 = vst [vmem:[%s5256_s14 + $0x60] sm:$0xff] %v4173_v40 }
 0x976   :  { %3660 = vsyncpa [#allocation7], 1 }
 0x977   :  { %3661 = vsyncpa [#allocation9], 1 }
 0x978   :  { %3662 = vsyncpa [#allocation12], 1 }
 0x979   :  { %3663 = vsyncpa [#allocation15], 1 }
 0x97a   :  { %3664 = vsyncpa [#allocation18], 1 }
 0x97b   :  { %3665 = vsyncpa [#allocation21], 1 }
 0x97c   :  { %3666 = vsyncpa [#allocation24], 1 }
 0x97d   :  { %3667 = vsyncmov [#allocation5] }
 0x980   :  { %s3668_s27 = vpop.sfrf %3667 }
 0x981   :  { %p3773_p12 = scmp.ne.s32.totalorder %s3668_s27, 0 }
 0x983   :  { %3672 = shalt.err (%p3773_p12)  }
 0x984   :  { %3674 = vsyncmov [#allocation5 + $0x1] }
 0x987   :  { %s3675_s0 = vpop.sfrf %3674 }
 0x988   :  { %p3774_p13 = scmp.ne.s32.totalorder %s3675_s0, 0 }
 0x98a   :  { %3679 = shalt.err (%p3774_p13)  }

</bundles_post_ra>
